<compile_context>
chip_gen: v5e
topology: v5e:2x2
jax: 0.10.0
libtpu: 0.0.40
codegen_flags: <defaults>
</compile_context>

<pallas_src>
import functools

import jax
import jax.numpy as jnp
import numpy as np
from jax import lax
from jax.experimental import pallas as pl
from jax.experimental.pallas import tpu as pltpu


def _silu(x):
    return x * jax.nn.sigmoid(x)


# ---------------------------------------------------------------------------
# Kernel
# ---------------------------------------------------------------------------
def resnet_block_kernel(x_ref, temb_ref,
                        wc1_ref, b1_ref, g1_ref, be1_ref,
                        wt_ref, bt_ref,
                        wc2_ref, b2_ref, g2_ref, be2_ref,
                        wres_ref, bres_ref,
                        ssub_ref, ssup_ref, gavg_ref,
                        out_ref, *, H, WC, eps=1e-5):
    """One batch element per grid step.

    x_ref     : (1, H, W*Cin)  bf16  image, (W, C) flattened into the lane axis
    temb_ref  : (1, 1, T)      f32   time embedding
    wc?_ref   : (K, 3*WC)      bf16  banded conv weights (3 H-offsets concat'd)
    wt_ref    : (T, WC)        bf16  time-MLP linear, tiled over W
    wres_ref  : (W*Cin, WC)    bf16  block-diagonal 1x1 residual conv
    b/g/be    : (1, WC)        f32   biases / GroupNorm affine, tiled over W
    ssub/ssup : (H, H)         f32   +-1 row-shift matrices (zero-padded conv)
    gavg_ref  : (WC, WC)       f32   per-group averaging matrix (1/n folded in)
    out_ref   : (1, H, WC)     f32   lane-dense output
    """
    f32 = jnp.float32
    bf16 = jnp.bfloat16

    ssub = ssub_ref[...]
    ssup = ssup_ref[...]
    gavg = gavg_ref[...]

    def conv3x3(x_b, wcat_ref, b_ref):
        # x_b: (H, K) bf16 ; wcat: (K, 3*WC) bf16 ; b: (1, WC) f32
        z = jnp.dot(x_b, wcat_ref[...], preferred_element_type=f32)  # (H, 3*WC)
        y = (z[:, WC:2 * WC]
             + jnp.dot(ssub, z[:, :WC], preferred_element_type=f32)
             + jnp.dot(ssup, z[:, 2 * WC:], preferred_element_type=f32))
        return y + b_ref[...]

    def groupnorm(h, g_ref, be_ref):
        # Centered two-pass variance; group stats via one averaging matmul,
        # so no lane<->sublane reshapes are needed.
        mean = jnp.dot(jnp.sum(h, axis=0, keepdims=True), gavg,
                       preferred_element_type=f32)                   # (1, WC)
        d = h - mean
        var = jnp.dot(jnp.sum(d * d, axis=0, keepdims=True), gavg,
                      preferred_element_type=f32)
        return d * lax.rsqrt(var + eps) * g_ref[...] + be_ref[...]

    x = x_ref[0]                                                     # (H, W*Cin) bf16

    # ---- block1: conv3x3 -> GroupNorm -> SiLU ----
    h = conv3x3(x, wc1_ref, b1_ref)
    h = _silu(groupnorm(h, g1_ref, be1_ref))

    # ---- time-embedding MLP (SiLU -> Linear), weights pre-tiled over W ----
    t = _silu(temb_ref[0])                                           # (1, T) f32
    t = jnp.dot(t.astype(bf16), wt_ref[...],
                preferred_element_type=f32) + bt_ref[...]            # (1, WC)
    h = h + t                                                        # broadcast over H

    # ---- block2: conv3x3 -> GroupNorm -> SiLU ----
    h2 = conv3x3(h.astype(bf16), wc2_ref, b2_ref)
    h2 = _silu(groupnorm(h2, g2_ref, be2_ref))

    # ---- residual 1x1 conv (block-diagonal matmul on the flattened lanes) ----
    res = jnp.dot(x, wres_ref[...], preferred_element_type=f32) + bres_ref[...]

    out_ref[0] = h2 + res


# ---------------------------------------------------------------------------
# Host-side weight reshaping (pure layout plumbing, done once per call)
# ---------------------------------------------------------------------------
def _banded_conv_weight(w, W):
    """(3, 3, Cin, Cout) -> (W*Cin, 3*W*Cout) banded block-Toeplitz matrix.

    Column block a in {0,1,2} holds H-offset r = a-1; within a block
    M[wi*Cin+ci, wo*Cout+co] = w[a, wi-wo+1, ci, co] for |wi - wo| <= 1.
    """
    _, _, cin, cout = w.shape
    wi = np.arange(W)[:, None, None]
    bb = np.arange(3)[None, :, None]
    wo = np.arange(W)[None, None, :]
    sel = (wi == wo + bb - 1).astype(np.float32)                     # (W, 3, W)
    pieces = []
    for a in range(3):
        m = jnp.einsum('xbv,bij->xivj', sel, w[a])                   # (W,Cin,W,Cout)
        pieces.append(m.reshape(W * cin, W * cout))
    return jnp.concatenate(pieces, axis=1)                           # (W*Cin, 3*W*Cout)


def _blockdiag_weight(wres, W):
    """(Cin, Cout) -> (W*Cin, W*Cout) block-diagonal 1x1-conv matrix."""
    cin, cout = wres.shape
    eye = np.eye(W, dtype=np.float32)
    m = jnp.einsum('xv,ij->xivj', eye, wres)
    return m.reshape(W * cin, W * cout)


def _group_avg_matrix(W, cout, groups, H):
    cg = cout // groups
    lane_group = (np.arange(W * cout) % cout) // cg
    same = (lane_group[:, None] == lane_group[None, :]).astype(np.float32)
    return same / float(H * W * cg)                                  # (WC, WC)


# ---------------------------------------------------------------------------
# Wrapper
# ---------------------------------------------------------------------------
def resnet_block_forward(x_nchw, time_emb, params, *, groups):
    B, Cin, H, W = x_nchw.shape
    Cout = params["w1"].shape[-1]
    T = params["wt"].shape[0]
    WC = W * Cout
    bf16, f32 = jnp.bfloat16, jnp.float32

    # Activations: NCHW -> NHWC -> (B, H, W*C), bf16 for the MXU.
    x3 = (jnp.transpose(x_nchw, (0, 2, 3, 1))
          .reshape(B, H, W * Cin).astype(bf16))
    temb3 = time_emb.reshape(B, 1, T).astype(f32)

    def tile_w(v):  # (1, Cout) -> (1, W*Cout); lane l = w*Cout + c
        return jnp.tile(v.reshape(1, Cout).astype(f32), (1, W))

    wc1 = _banded_conv_weight(params["w1"], W).astype(bf16)
    wc2 = _banded_conv_weight(params["w2"], W).astype(bf16)
    wres = _blockdiag_weight(params["wres"], W).astype(bf16)
    wt = jnp.tile(params["wt"].astype(bf16), (1, W))                 # (T, W*Cout)

    b1, g1, be1 = tile_w(params["b1"]), tile_w(params["g1"]), tile_w(params["be1"])
    b2, g2, be2 = tile_w(params["b2"]), tile_w(params["g2"]), tile_w(params["be2"])
    bt, bres = tile_w(params["bt"]), tile_w(params["bres"])

    ssub = jnp.asarray(np.eye(H, k=-1, dtype=np.float32))            # y[h] += z[h-1]
    ssup = jnp.asarray(np.eye(H, k=+1, dtype=np.float32))            # y[h] += z[h+1]
    gavg = jnp.asarray(_group_avg_matrix(W, Cout, groups, H))

    kernel = functools.partial(resnet_block_kernel, H=H, WC=WC)

    inputs = (x3, temb3,
              wc1, b1, g1, be1,
              wt, bt,
              wc2, b2, g2, be2,
              wres, bres,
              ssub, ssup, gavg)

    def batched_spec(a):
        n = a.ndim
        return pl.BlockSpec((1,) + a.shape[1:], lambda b: (b,) + (0,) * (n - 1))

    def const_spec(a):
        n = a.ndim
        return pl.BlockSpec(a.shape, lambda b: (0,) * n)

    in_specs = ([batched_spec(x3), batched_spec(temb3)]
                + [const_spec(a) for a in inputs[2:]])

    out3 = pl.pallas_call(
        kernel,
        out_shape=jax.ShapeDtypeStruct((B, H, WC), f32),
        grid_spec=pltpu.PrefetchScalarGridSpec(
            num_scalar_prefetch=0,
            grid=(B,),
            in_specs=in_specs,
            out_specs=pl.BlockSpec((1, H, WC), lambda b: (b, 0, 0)),
        ),
        compiler_params=pltpu.CompilerParams(
            dimension_semantics=("parallel",),
            vmem_limit_bytes=48 * 1024 * 1024,
        ),
    )(*inputs)

    out_nhwc = out3.reshape(B, H, W, Cout)
    return jnp.transpose(out_nhwc, (0, 3, 1, 2))                     # back to NCHW


# ---------------------------------------------------------------------------
# Pure-JAX reference (PyTorch module semantics, all-f32)
# ---------------------------------------------------------------------------
def reference(x, temb, params, groups, eps=1e-5):
    def conv3x3(x, w, b):
        w_oihw = jnp.transpose(w, (3, 2, 0, 1))
        y = lax.conv_general_dilated(x, w_oihw, (1, 1), "SAME",
                                     dimension_numbers=("NCHW", "OIHW", "NCHW"))
        return y + b.reshape(1, -1, 1, 1)

    def gn(x, gamma, beta):
        B, C, H, W = x.shape
        xg = x.reshape(B, groups, C // groups, H, W)
        mean = xg.mean(axis=(2, 3, 4), keepdims=True)
        var = ((xg - mean) ** 2).mean(axis=(2, 3, 4), keepdims=True)
        xn = (xg - mean) / jnp.sqrt(var + eps)
        return (xn.reshape(B, C, H, W) * gamma.reshape(1, -1, 1, 1)
                + beta.reshape(1, -1, 1, 1))

    h = _silu(gn(conv3x3(x, params["w1"], params["b1"]), params["g1"], params["be1"]))
    t = _silu(temb) @ params["wt"] + params["bt"]
    h = h + t[:, :, None, None]
    h = _silu(gn(conv3x3(h, params["w2"], params["b2"]), params["g2"], params["be2"]))
    res = jnp.einsum("bchw,cd->bdhw", x, params["wres"]) + params["bres"].reshape(1, -1, 1, 1)
    return h + res


if __name__ == "__main__":
    B, Cin, Cout, H, W = 2, 4, 16, 16, 16
    groups, temb_dim = 8, 32

    key = jax.random.PRNGKey(0)
    keys = jax.random.split(key, 16)

    def nrm(k, shape, scale=0.1):
        return (scale * jax.random.normal(k, shape)).astype(jnp.float32)

    params = dict(
        w1=nrm(keys[0], (3, 3, Cin, Cout)),   b1=nrm(keys[1], (1, Cout)),
        g1=1.0 + nrm(keys[2], (1, Cout)),     be1=nrm(keys[3], (1, Cout)),
        wt=nrm(keys[4], (temb_dim, Cout)),    bt=nrm(keys[5], (1, Cout)),
        w2=nrm(keys[6], (3, 3, Cout, Cout)),  b2=nrm(keys[7], (1, Cout)),
        g2=1.0 + nrm(keys[8], (1, Cout)),     be2=nrm(keys[9], (1, Cout)),
        wres=nrm(keys[10], (Cin, Cout)),      bres=nrm(keys[11], (1, Cout)),
    )

    x = jax.random.normal(keys[12], (B, Cin, H, W), jnp.float32)
    temb = jax.random.normal(keys[13], (B, temb_dim), jnp.float32)

    out = resnet_block_forward(x, temb, params, groups=groups)
    out = jax.block_until_ready(out)

    ref = reference(x, temb, params, groups)
    assert out.shape == (B, Cout, H, W)
    # bf16 MXU inputs vs. an all-f32 reference -> tolerance widened accordingly.
    np.testing.assert_allclose(np.asarray(out), np.asarray(ref),
                               rtol=5e-2, atol=5e-2)

    print("KERNEL_OK")
</pallas_src>

<mosaic_0001>
module attributes {stable_mosaic.version = 11 : i64} {
  func.func @resnet_block_kernel(%arg0: i32, %arg1: memref<1x16x64xbf16, #tpu.memory_space<vmem>>, %arg2: memref<1x1x32xf32, #tpu.memory_space<vmem>>, %arg3: memref<64x768xbf16, #tpu.memory_space<vmem>>, %arg4: memref<1x256xf32, #tpu.memory_space<vmem>>, %arg5: memref<1x256xf32, #tpu.memory_space<vmem>>, %arg6: memref<1x256xf32, #tpu.memory_space<vmem>>, %arg7: memref<32x256xbf16, #tpu.memory_space<vmem>>, %arg8: memref<1x256xf32, #tpu.memory_space<vmem>>, %arg9: memref<256x768xbf16, #tpu.memory_space<vmem>>, %arg10: memref<1x256xf32, #tpu.memory_space<vmem>>, %arg11: memref<1x256xf32, #tpu.memory_space<vmem>>, %arg12: memref<1x256xf32, #tpu.memory_space<vmem>>, %arg13: memref<64x256xbf16, #tpu.memory_space<vmem>>, %arg14: memref<1x256xf32, #tpu.memory_space<vmem>>, %arg15: memref<16x16xf32, #tpu.memory_space<vmem>>, %arg16: memref<16x16xf32, #tpu.memory_space<vmem>>, %arg17: memref<256x256xf32, #tpu.memory_space<vmem>>, %arg18: memref<1x16x256xf32, #tpu.memory_space<vmem>>) attributes {dimension_semantics = [#tpu.dimension_semantics<parallel>], iteration_bounds = array<i64: 2>, scalar_prefetch = 0 : i64, scratch_operands = 0 : i64, tpu.core_type = #tpu.core_type<tc>, window_params = [{transform_indices = @transform_0, window_bounds = array<i64: 1, 16, 64>}, {transform_indices = @transform_1, window_bounds = array<i64: 1, 1, 32>}, {pipeline_mode = #tpu.pipeline_mode<synchronous>, transform_indices = @transform_2, window_bounds = array<i64: 64, 768>}, {pipeline_mode = #tpu.pipeline_mode<synchronous>, transform_indices = @transform_3, window_bounds = array<i64: 1, 256>}, {pipeline_mode = #tpu.pipeline_mode<synchronous>, transform_indices = @transform_4, window_bounds = array<i64: 1, 256>}, {pipeline_mode = #tpu.pipeline_mode<synchronous>, transform_indices = @transform_5, window_bounds = array<i64: 1, 256>}, {pipeline_mode = #tpu.pipeline_mode<synchronous>, transform_indices = @transform_6, window_bounds = array<i64: 32, 256>}, {pipeline_mode = #tpu.pipeline_mode<synchronous>, transform_indices = @transform_7, window_bounds = array<i64: 1, 256>}, {pipeline_mode = #tpu.pipeline_mode<synchronous>, transform_indices = @transform_8, window_bounds = array<i64: 256, 768>}, {pipeline_mode = #tpu.pipeline_mode<synchronous>, transform_indices = @transform_9, window_bounds = array<i64: 1, 256>}, {pipeline_mode = #tpu.pipeline_mode<synchronous>, transform_indices = @transform_10, window_bounds = array<i64: 1, 256>}, {pipeline_mode = #tpu.pipeline_mode<synchronous>, transform_indices = @transform_11, window_bounds = array<i64: 1, 256>}, {pipeline_mode = #tpu.pipeline_mode<synchronous>, transform_indices = @transform_12, window_bounds = array<i64: 64, 256>}, {pipeline_mode = #tpu.pipeline_mode<synchronous>, transform_indices = @transform_13, window_bounds = array<i64: 1, 256>}, {pipeline_mode = #tpu.pipeline_mode<synchronous>, transform_indices = @transform_14, window_bounds = array<i64: 16, 16>}, {pipeline_mode = #tpu.pipeline_mode<synchronous>, transform_indices = @transform_15, window_bounds = array<i64: 16, 16>}, {pipeline_mode = #tpu.pipeline_mode<synchronous>, transform_indices = @transform_16, window_bounds = array<i64: 256, 256>}, {transform_indices = @transform_17, window_bounds = array<i64: 1, 16, 256>}]} {
    %c0 = arith.constant 0 : index
    %c0_0 = arith.constant 0 : index
    %0 = vector.load %arg15[%c0, %c0_0] : memref<16x16xf32, #tpu.memory_space<vmem>>, vector<16x16xf32>
    %c0_1 = arith.constant 0 : index
    %c0_2 = arith.constant 0 : index
    %1 = vector.load %arg16[%c0_1, %c0_2] : memref<16x16xf32, #tpu.memory_space<vmem>>, vector<16x16xf32>
    %c0_3 = arith.constant 0 : index
    %c0_4 = arith.constant 0 : index
    %2 = vector.load %arg17[%c0_3, %c0_4] : memref<256x256xf32, #tpu.memory_space<vmem>>, vector<256x256xf32>
    %c0_5 = arith.constant 0 : index
    %c0_6 = arith.constant 0 : index
    %c0_7 = arith.constant 0 : index
    %3 = vector.load %arg1[%c0_5, %c0_6, %c0_7] : memref<1x16x64xbf16, #tpu.memory_space<vmem>>, vector<1x16x64xbf16>
    %4 = vector.shape_cast %3 : vector<1x16x64xbf16> to vector<16x64xbf16>
    %c0_8 = arith.constant 0 : index
    %c0_9 = arith.constant 0 : index
    %5 = vector.load %arg3[%c0_8, %c0_9] : memref<64x768xbf16, #tpu.memory_space<vmem>>, vector<64x768xbf16>
    %cst = arith.constant dense<0.000000e+00> : vector<16x768xf32>
    %6 = tpu.matmul %4, %5, %cst {dimension_numbers = #tpu.dot_dimension_numbers<[1], [0], [0], [1], [0, 0, 1, 1], [], []>} : vector<16x64xbf16>, vector<64x768xbf16>, vector<16x768xf32> -> vector<16x768xf32>
    %7 = vector.extract_strided_slice %6 {offsets = [0, 256], sizes = [16, 256], strides = [1, 1]} : vector<16x768xf32> to vector<16x256xf32>
    %8 = vector.extract_strided_slice %6 {offsets = [0, 0], sizes = [16, 256], strides = [1, 1]} : vector<16x768xf32> to vector<16x256xf32>
    %cst_10 = arith.constant dense<0.000000e+00> : vector<16x256xf32>
    %9 = tpu.matmul %0, %8, %cst_10 {dimension_numbers = #tpu.dot_dimension_numbers<[1], [0], [0], [1], [0, 0, 1, 1], [], []>} : vector<16x16xf32>, vector<16x256xf32>, vector<16x256xf32> -> vector<16x256xf32>
    %10 = arith.addf %7, %9 : vector<16x256xf32>
    %11 = vector.extract_strided_slice %6 {offsets = [0, 512], sizes = [16, 256], strides = [1, 1]} : vector<16x768xf32> to vector<16x256xf32>
    %cst_11 = arith.constant dense<0.000000e+00> : vector<16x256xf32>
    %12 = tpu.matmul %1, %11, %cst_11 {dimension_numbers = #tpu.dot_dimension_numbers<[1], [0], [0], [1], [0, 0, 1, 1], [], []>} : vector<16x16xf32>, vector<16x256xf32>, vector<16x256xf32> -> vector<16x256xf32>
    %13 = arith.addf %10, %12 : vector<16x256xf32>
    %c0_12 = arith.constant 0 : index
    %c0_13 = arith.constant 0 : index
    %14 = vector.load %arg4[%c0_12, %c0_13] : memref<1x256xf32, #tpu.memory_space<vmem>>, vector<1x256xf32>
    %15 = vector.broadcast %14 : vector<1x256xf32> to vector<16x256xf32>
    %16 = arith.addf %13, %15 : vector<16x256xf32>
    %cst_14 = arith.constant dense<0.000000e+00> : vector<256xf32>
    %17 = vector.multi_reduction <add>, %16, %cst_14 [0] : vector<16x256xf32> to vector<256xf32>
    %18 = vector.shape_cast %17 : vector<256xf32> to vector<1x256xf32>
    %cst_15 = arith.constant dense<0.000000e+00> : vector<1x256xf32>
    %19 = tpu.matmul %18, %2, %cst_15 {dimension_numbers = #tpu.dot_dimension_numbers<[1], [0], [0], [1], [0, 0, 1, 1], [], []>} : vector<1x256xf32>, vector<256x256xf32>, vector<1x256xf32> -> vector<1x256xf32>
    %20 = vector.broadcast %19 : vector<1x256xf32> to vector<16x256xf32>
    %21 = arith.subf %16, %20 : vector<16x256xf32>
    %22 = arith.mulf %21, %21 : vector<16x256xf32>
    %cst_16 = arith.constant dense<0.000000e+00> : vector<256xf32>
    %23 = vector.multi_reduction <add>, %22, %cst_16 [0] : vector<16x256xf32> to vector<256xf32>
    %24 = vector.shape_cast %23 : vector<256xf32> to vector<1x256xf32>
    %cst_17 = arith.constant dense<0.000000e+00> : vector<1x256xf32>
    %25 = tpu.matmul %24, %2, %cst_17 {dimension_numbers = #tpu.dot_dimension_numbers<[1], [0], [0], [1], [0, 0, 1, 1], [], []>} : vector<1x256xf32>, vector<256x256xf32>, vector<1x256xf32> -> vector<1x256xf32>
    %cst_18 = arith.constant 9.99999974E-6 : f32
    %26 = vector.broadcast %cst_18 : f32 to vector<1x256xf32>
    %27 = arith.addf %25, %26 : vector<1x256xf32>
    %28 = math.rsqrt %27 : vector<1x256xf32>
    %29 = vector.broadcast %28 : vector<1x256xf32> to vector<16x256xf32>
    %30 = arith.mulf %21, %29 : vector<16x256xf32>
    %c0_19 = arith.constant 0 : index
    %c0_20 = arith.constant 0 : index
    %31 = vector.load %arg5[%c0_19, %c0_20] : memref<1x256xf32, #tpu.memory_space<vmem>>, vector<1x256xf32>
    %32 = vector.broadcast %31 : vector<1x256xf32> to vector<16x256xf32>
    %33 = arith.mulf %30, %32 : vector<16x256xf32>
    %c0_21 = arith.constant 0 : index
    %c0_22 = arith.constant 0 : index
    %34 = vector.load %arg6[%c0_21, %c0_22] : memref<1x256xf32, #tpu.memory_space<vmem>>, vector<1x256xf32>
    %35 = vector.broadcast %34 : vector<1x256xf32> to vector<16x256xf32>
    %36 = arith.addf %33, %35 : vector<16x256xf32>
    %37 = arith.negf %36 : vector<16x256xf32>
    %38 = math.exp %37 : vector<16x256xf32>
    %cst_23 = arith.constant 1.000000e+00 : f32
    %39 = vector.broadcast %cst_23 : f32 to vector<16x256xf32>
    %40 = arith.addf %39, %38 : vector<16x256xf32>
    %41 = arith.divf %39, %40 : vector<16x256xf32>
    %42 = arith.mulf %36, %41 : vector<16x256xf32>
    %c0_24 = arith.constant 0 : index
    %c0_25 = arith.constant 0 : index
    %c0_26 = arith.constant 0 : index
    %43 = vector.load %arg2[%c0_24, %c0_25, %c0_26] : memref<1x1x32xf32, #tpu.memory_space<vmem>>, vector<1x1x32xf32>
    %44 = vector.shape_cast %43 : vector<1x1x32xf32> to vector<1x32xf32>
    %45 = arith.negf %44 : vector<1x32xf32>
    %46 = math.exp %45 : vector<1x32xf32>
    %cst_27 = arith.constant 1.000000e+00 : f32
    %47 = vector.broadcast %cst_27 : f32 to vector<1x32xf32>
    %48 = arith.addf %47, %46 : vector<1x32xf32>
    %49 = arith.divf %47, %48 : vector<1x32xf32>
    %50 = arith.mulf %44, %49 : vector<1x32xf32>
    %51 = arith.truncf %50 : vector<1x32xf32> to vector<1x32xbf16>
    %c0_28 = arith.constant 0 : index
    %c0_29 = arith.constant 0 : index
    %52 = vector.load %arg7[%c0_28, %c0_29] : memref<32x256xbf16, #tpu.memory_space<vmem>>, vector<32x256xbf16>
    %cst_30 = arith.constant dense<0.000000e+00> : vector<1x256xf32>
    %53 = tpu.matmul %51, %52, %cst_30 {dimension_numbers = #tpu.dot_dimension_numbers<[1], [0], [0], [1], [0, 0, 1, 1], [], []>} : vector<1x32xbf16>, vector<32x256xbf16>, vector<1x256xf32> -> vector<1x256xf32>
    %c0_31 = arith.constant 0 : index
    %c0_32 = arith.constant 0 : index
    %54 = vector.load %arg8[%c0_31, %c0_32] : memref<1x256xf32, #tpu.memory_space<vmem>>, vector<1x256xf32>
    %55 = arith.addf %53, %54 : vector<1x256xf32>
    %56 = vector.broadcast %55 : vector<1x256xf32> to vector<16x256xf32>
    %57 = arith.addf %42, %56 : vector<16x256xf32>
    %58 = arith.truncf %57 : vector<16x256xf32> to vector<16x256xbf16>
    %c0_33 = arith.constant 0 : index
    %c0_34 = arith.constant 0 : index
    %59 = vector.load %arg9[%c0_33, %c0_34] : memref<256x768xbf16, #tpu.memory_space<vmem>>, vector<256x768xbf16>
    %cst_35 = arith.constant dense<0.000000e+00> : vector<16x768xf32>
    %60 = tpu.matmul %58, %59, %cst_35 {dimension_numbers = #tpu.dot_dimension_numbers<[1], [0], [0], [1], [0, 0, 1, 1], [], []>} : vector<16x256xbf16>, vector<256x768xbf16>, vector<16x768xf32> -> vector<16x768xf32>
    %61 = vector.extract_strided_slice %60 {offsets = [0, 256], sizes = [16, 256], strides = [1, 1]} : vector<16x768xf32> to vector<16x256xf32>
    %62 = vector.extract_strided_slice %60 {offsets = [0, 0], sizes = [16, 256], strides = [1, 1]} : vector<16x768xf32> to vector<16x256xf32>
    %cst_36 = arith.constant dense<0.000000e+00> : vector<16x256xf32>
    %63 = tpu.matmul %0, %62, %cst_36 {dimension_numbers = #tpu.dot_dimension_numbers<[1], [0], [0], [1], [0, 0, 1, 1], [], []>} : vector<16x16xf32>, vector<16x256xf32>, vector<16x256xf32> -> vector<16x256xf32>
    %64 = arith.addf %61, %63 : vector<16x256xf32>
    %65 = vector.extract_strided_slice %60 {offsets = [0, 512], sizes = [16, 256], strides = [1, 1]} : vector<16x768xf32> to vector<16x256xf32>
    %cst_37 = arith.constant dense<0.000000e+00> : vector<16x256xf32>
    %66 = tpu.matmul %1, %65, %cst_37 {dimension_numbers = #tpu.dot_dimension_numbers<[1], [0], [0], [1], [0, 0, 1, 1], [], []>} : vector<16x16xf32>, vector<16x256xf32>, vector<16x256xf32> -> vector<16x256xf32>
    %67 = arith.addf %64, %66 : vector<16x256xf32>
    %c0_38 = arith.constant 0 : index
    %c0_39 = arith.constant 0 : index
    %68 = vector.load %arg10[%c0_38, %c0_39] : memref<1x256xf32, #tpu.memory_space<vmem>>, vector<1x256xf32>
    %69 = vector.broadcast %68 : vector<1x256xf32> to vector<16x256xf32>
    %70 = arith.addf %67, %69 : vector<16x256xf32>
    %cst_40 = arith.constant dense<0.000000e+00> : vector<256xf32>
    %71 = vector.multi_reduction <add>, %70, %cst_40 [0] : vector<16x256xf32> to vector<256xf32>
    %72 = vector.shape_cast %71 : vector<256xf32> to vector<1x256xf32>
    %cst_41 = arith.constant dense<0.000000e+00> : vector<1x256xf32>
    %73 = tpu.matmul %72, %2, %cst_41 {dimension_numbers = #tpu.dot_dimension_numbers<[1], [0], [0], [1], [0, 0, 1, 1], [], []>} : vector<1x256xf32>, vector<256x256xf32>, vector<1x256xf32> -> vector<1x256xf32>
    %74 = vector.broadcast %73 : vector<1x256xf32> to vector<16x256xf32>
    %75 = arith.subf %70, %74 : vector<16x256xf32>
    %76 = arith.mulf %75, %75 : vector<16x256xf32>
    %cst_42 = arith.constant dense<0.000000e+00> : vector<256xf32>
    %77 = vector.multi_reduction <add>, %76, %cst_42 [0] : vector<16x256xf32> to vector<256xf32>
    %78 = vector.shape_cast %77 : vector<256xf32> to vector<1x256xf32>
    %cst_43 = arith.constant dense<0.000000e+00> : vector<1x256xf32>
    %79 = tpu.matmul %78, %2, %cst_43 {dimension_numbers = #tpu.dot_dimension_numbers<[1], [0], [0], [1], [0, 0, 1, 1], [], []>} : vector<1x256xf32>, vector<256x256xf32>, vector<1x256xf32> -> vector<1x256xf32>
    %cst_44 = arith.constant 9.99999974E-6 : f32
    %80 = vector.broadcast %cst_44 : f32 to vector<1x256xf32>
    %81 = arith.addf %79, %80 : vector<1x256xf32>
    %82 = math.rsqrt %81 : vector<1x256xf32>
    %83 = vector.broadcast %82 : vector<1x256xf32> to vector<16x256xf32>
    %84 = arith.mulf %75, %83 : vector<16x256xf32>
    %c0_45 = arith.constant 0 : index
    %c0_46 = arith.constant 0 : index
    %85 = vector.load %arg11[%c0_45, %c0_46] : memref<1x256xf32, #tpu.memory_space<vmem>>, vector<1x256xf32>
    %86 = vector.broadcast %85 : vector<1x256xf32> to vector<16x256xf32>
    %87 = arith.mulf %84, %86 : vector<16x256xf32>
    %c0_47 = arith.constant 0 : index
    %c0_48 = arith.constant 0 : index
    %88 = vector.load %arg12[%c0_47, %c0_48] : memref<1x256xf32, #tpu.memory_space<vmem>>, vector<1x256xf32>
    %89 = vector.broadcast %88 : vector<1x256xf32> to vector<16x256xf32>
    %90 = arith.addf %87, %89 : vector<16x256xf32>
    %91 = arith.negf %90 : vector<16x256xf32>
    %92 = math.exp %91 : vector<16x256xf32>
    %cst_49 = arith.constant 1.000000e+00 : f32
    %93 = vector.broadcast %cst_49 : f32 to vector<16x256xf32>
    %94 = arith.addf %93, %92 : vector<16x256xf32>
    %95 = arith.divf %93, %94 : vector<16x256xf32>
    %96 = arith.mulf %90, %95 : vector<16x256xf32>
    %c0_50 = arith.constant 0 : index
    %c0_51 = arith.constant 0 : index
    %97 = vector.load %arg13[%c0_50, %c0_51] : memref<64x256xbf16, #tpu.memory_space<vmem>>, vector<64x256xbf16>
    %cst_52 = arith.constant dense<0.000000e+00> : vector<16x256xf32>
    %98 = tpu.matmul %4, %97, %cst_52 {dimension_numbers = #tpu.dot_dimension_numbers<[1], [0], [0], [1], [0, 0, 1, 1], [], []>} : vector<16x64xbf16>, vector<64x256xbf16>, vector<16x256xf32> -> vector<16x256xf32>
    %c0_53 = arith.constant 0 : index
    %c0_54 = arith.constant 0 : index
    %99 = vector.load %arg14[%c0_53, %c0_54] : memref<1x256xf32, #tpu.memory_space<vmem>>, vector<1x256xf32>
    %100 = vector.broadcast %99 : vector<1x256xf32> to vector<16x256xf32>
    %101 = arith.addf %98, %100 : vector<16x256xf32>
    %102 = arith.addf %96, %101 : vector<16x256xf32>
    %c0_55 = arith.constant 0 : index
    %c0_56 = arith.constant 0 : index
    %c0_57 = arith.constant 0 : index
    %103 = vector.load %arg18[%c0_55, %c0_56, %c0_57] : memref<1x16x256xf32, #tpu.memory_space<vmem>>, vector<1x16x256xf32>
    %104 = vector.shape_cast %103 : vector<1x16x256xf32> to vector<16x256xf32>
    %105 = vector.shape_cast %102 : vector<16x256xf32> to vector<1x16x256xf32>
    tpu.vector_store %arg18[%c0_55, %c0_56, %c0_57], %105 {strides = array<i32>} : memref<1x16x256xf32, #tpu.memory_space<vmem>>, vector<1x16x256xf32>,
    return
  }
  func.func @transform_0(%arg0: i32) -> (i32, i32, i32) {
    %c0_i32 = arith.constant 0 : i32
    %c0_i32_0 = arith.constant 0 : i32
    %c0_i32_1 = arith.constant 0 : i32
    return %arg0, %c0_i32, %c0_i32_0 : i32, i32, i32
  }
  func.func @transform_1(%arg0: i32) -> (i32, i32, i32) {
    %c0_i32 = arith.constant 0 : i32
    %c0_i32_0 = arith.constant 0 : i32
    %c0_i32_1 = arith.constant 0 : i32
    return %arg0, %c0_i32, %c0_i32_0 : i32, i32, i32
  }
  func.func @transform_2(%arg0: i32) -> (i32, i32) {
    %c0_i32 = arith.constant 0 : i32
    %c0_i32_0 = arith.constant 0 : i32
    %c0_i32_1 = arith.constant 0 : i32
    return %c0_i32, %c0_i32_0 : i32, i32
  }
  func.func @transform_3(%arg0: i32) -> (i32, i32) {
    %c0_i32 = arith.constant 0 : i32
    %c0_i32_0 = arith.constant 0 : i32
    %c0_i32_1 = arith.constant 0 : i32
    return %c0_i32, %c0_i32_0 : i32, i32
  }
  func.func @transform_4(%arg0: i32) -> (i32, i32) {
    %c0_i32 = arith.constant 0 : i32
    %c0_i32_0 = arith.constant 0 : i32
    %c0_i32_1 = arith.constant 0 : i32
    return %c0_i32, %c0_i32_0 : i32, i32
  }
  func.func @transform_5(%arg0: i32) -> (i32, i32) {
    %c0_i32 = arith.constant 0 : i32
    %c0_i32_0 = arith.constant 0 : i32
    %c0_i32_1 = arith.constant 0 : i32
    return %c0_i32, %c0_i32_0 : i32, i32
  }
  func.func @transform_6(%arg0: i32) -> (i32, i32) {
    %c0_i32 = arith.constant 0 : i32
    %c0_i32_0 = arith.constant 0 : i32
    %c0_i32_1 = arith.constant 0 : i32
    return %c0_i32, %c0_i32_0 : i32, i32
  }
  func.func @transform_7(%arg0: i32) -> (i32, i32) {
    %c0_i32 = arith.constant 0 : i32
    %c0_i32_0 = arith.constant 0 : i32
    %c0_i32_1 = arith.constant 0 : i32
    return %c0_i32, %c0_i32_0 : i32, i32
  }
  func.func @transform_8(%arg0: i32) -> (i32, i32) {
    %c0_i32 = arith.constant 0 : i32
    %c0_i32_0 = arith.constant 0 : i32
    %c0_i32_1 = arith.constant 0 : i32
    return %c0_i32, %c0_i32_0 : i32, i32
  }
  func.func @transform_9(%arg0: i32) -> (i32, i32) {
    %c0_i32 = arith.constant 0 : i32
    %c0_i32_0 = arith.constant 0 : i32
    %c0_i32_1 = arith.constant 0 : i32
    return %c0_i32, %c0_i32_0 : i32, i32
  }
  func.func @transform_10(%arg0: i32) -> (i32, i32) {
    %c0_i32 = arith.constant 0 : i32
    %c0_i32_0 = arith.constant 0 : i32
    %c0_i32_1 = arith.constant 0 : i32
    return %c0_i32, %c0_i32_0 : i32, i32
  }
  func.func @transform_11(%arg0: i32) -> (i32, i32) {
    %c0_i32 = arith.constant 0 : i32
    %c0_i32_0 = arith.constant 0 : i32
    %c0_i32_1 = arith.constant 0 : i32
    return %c0_i32, %c0_i32_0 : i32, i32
  }
  func.func @transform_12(%arg0: i32) -> (i32, i32) {
    %c0_i32 = arith.constant 0 : i32
    %c0_i32_0 = arith.constant 0 : i32
    %c0_i32_1 = arith.constant 0 : i32
    return %c0_i32, %c0_i32_0 : i32, i32
  }
  func.func @transform_13(%arg0: i32) -> (i32, i32) {
    %c0_i32 = arith.constant 0 : i32
    %c0_i32_0 = arith.constant 0 : i32
    %c0_i32_1 = arith.constant 0 : i32
    return %c0_i32, %c0_i32_0 : i32, i32
  }
  func.func @transform_14(%arg0: i32) -> (i32, i32) {
    %c0_i32 = arith.constant 0 : i32
    %c0_i32_0 = arith.constant 0 : i32
    %c0_i32_1 = arith.constant 0 : i32
    return %c0_i32, %c0_i32_0 : i32, i32
  }
  func.func @transform_15(%arg0: i32) -> (i32, i32) {
    %c0_i32 = arith.constant 0 : i32
    %c0_i32_0 = arith.constant 0 : i32
    %c0_i32_1 = arith.constant 0 : i32
    return %c0_i32, %c0_i32_0 : i32, i32
  }
  func.func @transform_16(%arg0: i32) -> (i32, i32) {
    %c0_i32 = arith.constant 0 : i32
    %c0_i32_0 = arith.constant 0 : i32
    %c0_i32_1 = arith.constant 0 : i32
    return %c0_i32, %c0_i32_0 : i32, i32
  }
  func.func @transform_17(%arg0: i32) -> (i32, i32, i32) {
    %c0_i32 = arith.constant 0 : i32
    %c0_i32_0 = arith.constant 0 : i32
    %c0_i32_1 = arith.constant 0 : i32
    return %arg0, %c0_i32, %c0_i32_0 : i32, i32, i32
  }
}

</mosaic_0001>

<bundles_post_ra>
// kernel: tpu_custom_call.1
= control target key start
LH: loop header
LB: loop body
LE: loop exit
PB: predicated region body
PF: predicated region fallthrough
CT: control target
= control target key end

     0   :  { %s5547_s0 = inlined_call_operand.hbm [shape: bf16[2,16,64], index: 0, kind: input, shape index: {}]   ;;  %s5548_s1 = inlined_call_operand.hbm [shape: f32[2,1,32], index: 1, kind: input, shape index: {}]   ;;  %s5549_s2 = inlined_call_operand.hbm [shape: bf16[64,768], index: 2, kind: input, shape index: {}]   ;;  %s5550_s3 = inlined_call_operand.vmem [shape: f32[1,256], index: 3, kind: input, shape index: {}]   ;;  %s5551_s4 = inlined_call_operand.hbm [shape: f32[1,256], index: 4, kind: input, shape index: {}]   ;;  %s5552_s5 = inlined_call_operand.vmem [shape: f32[1,256], index: 5, kind: input, shape index: {}]   ;;  %s5553_s6 = inlined_call_operand.hbm [shape: bf16[32,256], index: 6, kind: input, shape index: {}]   ;;  %s5554_s7 = inlined_call_operand.vmem [shape: f32[1,256], index: 7, kind: input, shape index: {}]   ;;  %s5555_s8 = inlined_call_operand.hbm [shape: bf16[256,768], index: 8, kind: input, shape index: {}]   ;;  %s5556_s9 = inlined_call_operand.vmem [shape: f32[1,256], index: 9, kind: input, shape index: {}]   ;;  %s5557_s10 = inlined_call_operand.hbm [shape: f32[1,256], index: 10, kind: input, shape index: {}]   ;;  %s5558_s11 = inlined_call_operand.vmem [shape: f32[1,256], index: 11, kind: input, shape index: {}]   ;;  %s5559_s12 = inlined_call_operand.hbm [shape: bf16[64,256], index: 12, kind: input, shape index: {}]   ;;  %s5560_s13 = inlined_call_operand.vmem [shape: f32[1,256], index: 13, kind: input, shape index: {}]   ;;  %s5561_s14 = inlined_call_operand.hbm [shape: f32[16,16], index: 14, kind: input, shape index: {}]   ;;  %s5562_s15 = inlined_call_operand.hbm [shape: f32[16,16], index: 15, kind: input, shape index: {}]   ;;  %s5563_s16 = inlined_call_operand.hbm [shape: f32[256,256], index: 16, kind: input, shape index: {}]   ;;  %s5564_s17 = inlined_call_operand.hbm [shape: f32[2,16,256], index: 17, kind: output, shape index: {}]  }
   0x1   :  { %5577 = sst [smem:[#allocation39_spill]] %s5547_s0 }
   0x2   :  { %5578 = sst [smem:[#allocation40_spill]] %s5548_s1 }
   0x3   :  { %5579 = sst [smem:[#allocation41_spill]] %s5549_s2 }
   0x4   :  { %5580 = sst [smem:[#allocation42_spill]] %s5551_s4 }
   0x5   :  { %5581 = sst [smem:[#allocation43_spill]] %s5553_s6 }
   0x6   :  { %5582 = sst [smem:[#allocation44_spill]] %s5554_s7 }
   0x7   :  { %5583 = sst [smem:[#allocation45_spill]] %s5555_s8 }
   0x8   :  { %5584 = sst [smem:[#allocation46_spill]] %s5556_s9 }
   0x9   :  { %5585 = sst [smem:[#allocation47_spill]] %s5557_s10 }
   0xa   :  { %5586 = sst [smem:[#allocation48_spill]] %s5558_s11 }
   0xb   :  { %5587 = sst [smem:[#allocation49_spill]] %s5559_s12 }
   0xc   :  { %5588 = sst [smem:[#allocation50_spill]] %s5560_s13 }
   0xd   :  { %5589 = sst [smem:[#allocation51_spill]] %s5561_s14 }
   0xe   :  { %5590 = sst [smem:[#allocation52_spill]] %s5562_s15 }
   0xf   :  { %5591 = sst [smem:[#allocation53_spill]] %s5563_s16 }
  0x10   :  { %5592 = sst [smem:[#allocation54_spill]] %s5564_s17 }
  0x11   :  { %22 = vsyncpa [#allocation3], 0 }
  0x12   :  { %24 = vsyncpa [#allocation3 + $0x1], 0 }
  0x13   :  { %25 = vsyncpa [#allocation6], 0 }
  0x14   :  { %27 = vsyncpa [#allocation6 + $0x1], 0 }
  0x15   :  { %28 = vsyncpa [#allocation9], 0 }
  0x16   :  { %29 = vsyncpa [#allocation12], 0 }
  0x17   :  { %30 = vsyncpa [#allocation15], 0 }
  0x18   :  { %31 = vsyncpa [#allocation18], 0 }
  0x19   :  { %32 = vsyncpa [#allocation4], 0 }
  0x1a   :  { %34 = vsyncpa [#allocation4 + $0x1], 0  ;;  %s4584_s24 = smov 0   ;;  %s4586_s25 = smov 0  }
  0x1b   :  { %s4588_s26 = smov 0   ;;  %s4590_s27 = smov 0  }
  0x1c LB: > { %5593 = sst [smem:[#allocation29_spill]] %s4469_s26  ;;  %s4608_s30 = sadd.s32 4294967295, %s4473_s27   ;;  %s4473_s27 = sphi %s4590_s27, %s5645_s27   ;;  %s4469_s26 = sphi %s4588_s26, %s5642_s26   ;;  %s4465_s25 = sphi %s4586_s25, %s5644_s25   ;;  %s4461_s24 = sphi %s4584_s24, %s5643_s24  }
  0x1d   : > { %s5594_s2 = sld [smem:[#allocation41_spill]]  ;;  %p3055_p0 = scmp.ge.s32.totalorder %s4473_s27, 1 }
  0x1e   : > { %p61_p1 = scmp.eq.s32.totalorder %s4608_s30, 0  ;;  %p438_p2 = scmp.lt.s32.totalorder %s4473_s27, 3 }
  0x1f   : > { %s4475_s19 = smov [#allocation7]   ;;  %s5596_s4 = sld [smem:[#allocation42_spill]] }
  0x20   : > { %p4613_p3 = pnand %p3055_p0, %p438_p2  ;;  %s451_s1 = sshll.u32 %s4475_s19, 4  ;;  %s452_s1 = int_to_ptr.vmem [resolvable:$true] %s451_s1 }
  0x21   : > { %s5598_s8 = sld [smem:[#allocation45_spill]]  ;;  %s4477_s13 = smov 384  }
  0x22   : > { %p3830_p4 = pneg %p4613_p3  ;;  %s4478_s11 = smov 24  }
  0x23   : > { %s449_s0 = sshll.u32 %s5594_s2, 4  ;;  %s4476_s2 = smov [#allocation8]   ;;  %s450_s0 = int_to_ptr.hbm [resolvable:$true] %s449_s0 }
  0x24   : > { %p4625_p6 = pnand %p3830_p4, %p61_p1  ;;  %s469_s17 = sshll.u32 %s4476_s2, 4  ;;  %s470_s17 = int_to_ptr.vmem [resolvable:$true] %s469_s17 }
  0x25   : > { %s467_s22 = sshll.u32 %s5596_s4, 4  ;;  %s4479_s20 = smov [#allocation11]   ;;  %s468_s22 = int_to_ptr.hbm [resolvable:$true] %s467_s22 }
  0x26   : > { %3833 = dma.hbm_to_vmem [thread:$0]  (!%p4625_p6), %s450_s0, 3072, %s452_s1, [#allocation6], %s4477_s13, %s4477_s13, %s4478_s11  }
  0x27   : > { %s498_s19 = sshll.u32 %s5598_s8, 4  ;;  %s500_s21 = sshll.u32 %s4479_s20, 4  ;;  %s499_s19 = int_to_ptr.hbm [resolvable:$true] %s498_s19  ;;  %s501_s21 = int_to_ptr.vmem [resolvable:$true] %s500_s21 }
  0x28   : > { %3836 = dma.hbm_to_vmem [thread:$0]  (!%p4625_p6), %s468_s22, 32, %s470_s17, [#allocation9]  }
  0x29   : > { %s5599_s12 = sld [smem:[#allocation49_spill]]  ;;  %s4480_s2 = smov [#allocation14]  }
  0x2a   : > { %3842 = dma.hbm_to_vmem [thread:$0]  (!%p4625_p6), %s499_s19, 12288, %s501_s21, [#allocation12], %s4477_s13, %s4477_s13, %s4478_s11  }
  0x2b   : > { %s532_s28 = sshll.u32 %s4480_s2, 4  ;;  %s5600_s15 = sld [smem:[#allocation52_spill]]  ;;  %s533_s28 = int_to_ptr.vmem [resolvable:$true] %s532_s28 }
  0x2c   : > { %s4481_s17 = smov 128   ;;  %s4482_s22 = smov 8  }
  0x2d   : > { %s5601_s6 = sld [smem:[#allocation43_spill]]  ;;  %s4483_s8 = smov [#allocation17]  }
  0x2e   : > { %s563_s11 = sshll.u32 %s4483_s8, 4  ;;  %s4484_s13 = smov [#allocation10]   ;;  %s564_s11 = int_to_ptr.vmem [resolvable:$true] %s563_s11 }
  0x2f   : > { %s530_s7 = sshll.u32 %s5599_s12, 4  ;;  %s483_s19 = sshll.u32 %s4484_s13, 4  ;;  %s531_s7 = int_to_ptr.hbm [resolvable:$true] %s530_s7  ;;  %s484_s19 = int_to_ptr.vmem [resolvable:$true] %s483_s19 }
  0x30   : > { %3848 = dma.hbm_to_vmem [thread:$0]  (!%p4625_p6), %s531_s7, 1024, %s533_s28, [#allocation15], %s4481_s17, %s4481_s17, %s4482_s22  }
  0x31   : > { %s561_s1 = sshll.u32 %s5600_s15, 4  ;;  %s5602_s10 = sld [smem:[#allocation47_spill]]  ;;  %s562_s1 = int_to_ptr.hbm [resolvable:$true] %s561_s1 }
  0x32   : > { %3854 = dma.hbm_to_vmem [thread:$0]  (!%p4625_p6), %s562_s1, 256, %s564_s11, [#allocation18], %s4481_s17, %s4481_s17, %s4482_s22  }
  0x33   : > { %s481_s9 = sshll.u32 %s5601_s6, 4  ;;  %s5603_s14 = sld [smem:[#allocation51_spill]]  ;;  %s482_s9 = int_to_ptr.hbm [resolvable:$true] %s481_s9 }
  0x34   : > { %3839 = dma.hbm_to_vmem [thread:$0]  (!%p4625_p6), %s482_s9, 512, %s484_s19, [#allocation9], %s4481_s17, %s4481_s17, %s4482_s22  }
  0x35   : > { %s4485_s8 = smov [#allocation13]   ;;  %s4486_s1 = smov [#allocation16]  }
  0x36   : > { %s518_s20 = sshll.u32 %s4485_s8, 4  ;;  %s549_s4 = sshll.u32 %s4486_s1, 4  ;;  %s519_s20 = int_to_ptr.vmem [resolvable:$true] %s518_s20  ;;  %s550_s4 = int_to_ptr.vmem [resolvable:$true] %s549_s4 }
  0x37   : > { %s516_s29 = sshll.u32 %s5602_s10, 4  ;;  %s5604_s16 = sld [smem:[#allocation53_spill]]  ;;  %s517_s29 = int_to_ptr.hbm [resolvable:$true] %s516_s29 }
  0x38   : > { %3845 = dma.hbm_to_vmem [thread:$0]  (!%p4625_p6), %s517_s29, 32, %s519_s20, [#allocation12]  }
  0x39   : > { %s547_s0 = sshll.u32 %s5603_s14, 4  ;;  %s4487_s19 = smov [#allocation19]   ;;  %s548_s0 = int_to_ptr.hbm [resolvable:$true] %s547_s0 }
  0x3a   : > { %3851 = dma.hbm_to_vmem [thread:$0]  (!%p4625_p6), %s548_s0, 256, %s550_s4, [#allocation15], %s4481_s17, %s4481_s17, %s4482_s22  }
  0x3b   : > { %s577_s21 = sshll.u32 %s4487_s19, 4  ;;  %s4488_s2 = smov 256   ;;  %s578_s21 = int_to_ptr.vmem [resolvable:$true] %s577_s21 }
  0x3c   : > { %s4489_s29 = smov 16   ;;  %s3054_s7 = sadd.s32 4294967294, %s4473_s27  }
  0x3d   : > { %s575_s13 = sshll.u32 %s5604_s16, 4  ;;  %s4670_s28 = sadd.s32 1, %s4473_s27   ;;  %s576_s13 = int_to_ptr.hbm [resolvable:$true] %s575_s13 }
  0x3e   : > { %3857 = dma.hbm_to_vmem [thread:$0]  (!%p4625_p6), %s576_s13, 8192, %s578_s21, [#allocation18], %s4488_s2, %s4488_s2, %s4489_s29  }
  0x3f   : > { %s47_s8 = sadd.s32 1, %s4469_s26  ;;  %s44_s20 = ssub.s32 %s4473_s27, %s4670_s28 }
  0x40   : > { %p54_p7 = scmp.ne.s32.totalorder %s4469_s26, %s4465_s25  ;;  %p45_p8 = scmp.eq.s32.totalorder %s44_s20, 0 }
  0x41   : > { %p55_p9 = scmp.eq.s32.totalorder %s4473_s27, 0  ;;  %p60_p10 = scmp.ne.s32.totalorder %s4465_s25, %s4461_s24 }
  0x42   : > { %p425_p11 = scmp.eq.s32.totalorder %s4608_s30, 1  ;;  %p431_p2 = scmp.eq.s32.totalorder %s3054_s7, 1 }
  0x43   : > { %s4682_s17 = scalar_select %p45_p8, %s4469_s26, %s47_s8  }
  0x44   : > { %p4684_p12 = por %p55_p9, %p54_p7  ;;  %p4690_p13 = por %p61_p1, %p60_p10 }
  0x45   : > { %5605 = sst [smem:[#allocation30_spill]] %s4682_s17  ;;  %p4694_p0 = por %p425_p11, %p54_p7 }
  0x46   : > { %p3878_p4 = scmp.lt.s32.totalorder %s4473_s27, 2  ;;  %s4700_s1 = sand.u32 1, %s4469_s26  }
  0x47   : > { %p4702_p6 = por %p431_p2, %p60_p10  ;;  %s3066_s9 = sshll.u32 %s4700_s1, 3 }
  0x48   : > { %s3653_s11 = sshll.u32 %s4473_s27, 3  ;;  %s5610_s21 = sld [smem:[#allocation39_spill]] }
  0x49   : > { %s595_s8 = scalar_lea.vmem [#allocation2], %s3066_s9  ;;  %p4713_p7 = pnand %p3878_p4, %p4684_p12 }
  0x4a   : > { %s603_s20 = sshll.u32 %s595_s8, 4  ;;  %s613_s6 = sand.u32 1, %s4473_s27   ;;  %s604_s20 = int_to_ptr.vmem [resolvable:$true] %s603_s20 }
  0x4b   : > { %s592_s10 = scalar_lea.sflag [#allocation3], %s4700_s1  ;;  %p4327_p9 = pneg %p4713_p7 }
  0x4e   : > { %s600_s2 = scalar_lea.hbm %s5610_s21, %s3653_s11  ;;  %s4330_s11 = scalar_lea.hbm %s5610_s21, 16 }
  0x4f   : > { %s601_s29 = sshll.u32 %s600_s2, 4  ;;  %s602_s29 = int_to_ptr.hbm [resolvable:$true] %s601_s29 }
  0x50   : > { %s4323_s12 = sshra.s32 %s602_s29, 4  ;;  %s4324_s12 = int_to_ptr.hbm [resolvable:$true] %s4323_s12 }
  0x51   : > { %s4325_s14 = scalar_lea.hbm %s4324_s12, 8  ;;  %p4331_p12 = scmp.lt.s32.totalorder %s4324_s12, %s5610_s21 }
  0x52   : > { %p4326_p8 = scmp.ne.s32.totalorder %s4324_s12, %s4325_s14  ;;  %p4332_p2 = scmp.lt.s32.totalorder %s4330_s11, %s4325_s14 }
  0x54   : > { %p4328_p10 = pnand %p4327_p9, %p4326_p8  ;;  %p4333_p4 = por %p4332_p2, %p4331_p12 }
  0x56   : > { %p4329_p11 = pneg %p4328_p10 }
  0x58   : > { %p4334_p5 = pnand %p4333_p4, %p4329_p11 }
  0x5a   : > { %4337 = shalt.err (!%p4334_p5)
}
  0x5b   : > { %s4490_s2 = smov 64   ;;  %s4491_s8 = smov 4  }
  0x5c   : > { %3861 = dma.hbm_to_vmem [thread:$0]  (!%p4713_p7), %s602_s29, 128, %s604_s20, %s592_s10, %s4490_s2, %s4490_s2, %s4491_s8  }
  0x5d   : > { %s5612_s9 = sld [smem:[#allocation40_spill]]  ;;  %s616_s26 = scalar_lea.vmem [#allocation5], %s4700_s1 }
  0x5e   : > { %s623_s13 = sshll.u32 %s616_s26, 4  ;;  %s614_s12 = scalar_lea.sflag [#allocation6], %s613_s6  ;;  %s624_s13 = int_to_ptr.vmem [resolvable:$true] %s623_s13 }
  0x63   : > { %s619_s22 = scalar_lea.hbm %s5612_s9, %s4473_s27  ;;  %s4360_s29 = scalar_lea.hbm %s5612_s9, 2 }
  0x64   : > { %s621_s17 = sshll.u32 %s619_s22, 4  ;;  %s622_s17 = int_to_ptr.hbm [resolvable:$true] %s621_s17 }
  0x65   : > { %s4353_s14 = sshra.s32 %s622_s17, 4  ;;  %s4354_s14 = int_to_ptr.hbm [resolvable:$true] %s4353_s14 }
  0x66   : > { %s4355_s11 = scalar_lea.hbm %s4354_s14, 1  ;;  %p4361_p11 = scmp.lt.s32.totalorder %s4354_s14, %s5612_s9 }
  0x67   : > { %p4356_p5 = scmp.ne.s32.totalorder %s4354_s14, %s4355_s11  ;;  %p4362_p12 = scmp.lt.s32.totalorder %s4360_s29, %s4355_s11 }
  0x69   : > { %p4358_p8 = pnand %p4356_p5, %p4327_p9  ;;  %p4363_p2 = por %p4362_p12, %p4361_p11 }
  0x6b   : > { %p4359_p10 = pneg %p4358_p8 }
  0x6d   : > { %p4364_p4 = pnand %p4363_p2, %p4359_p10 }
  0x6f   : > { %4367 = shalt.err (!%p4364_p4)
}
  0x70   : > { %3864 = dma.hbm_to_vmem [thread:$0]  (!%p4713_p7), %s622_s17, 16, %s624_s13, %s614_s12  }
  0x71   : > { %632 = sbr.rel (%p4613_p3) target bundleno = 1492 (0x5d4), region = 88 }
  0x76   : > { %s4751_s6 = sand.u32 1, %s4465_s25  }
  0x77   : > { %s3070_s26 = sshll.u32 %s4751_s6, 3  ;;  %s635_s1 = scalar_lea.sflag [#allocation3], %s4751_s6 }
  0x78   : > { %s4755_s20 = scalar_lea.vmem [#allocation2], %s3070_s26 }
  0x79   : > { %4428 = dma.done.wait (%p4690_p13), %s635_s1, 128  }
  0x7a   : > { %4430 = vsyncadd (%p4690_p13), %s635_s1, 4294967168  ;;  %s644_s18 = sand.u32 1, %s4608_s30   ;;  %s647_s7 = scalar_lea.vmem [#allocation5], %s4751_s6 }
  0x7b   : > { %s645_s17 = scalar_lea.sflag [#allocation6], %s644_s18 }
  0x7c   : > { %4432 = dma.done.wait (%p4690_p13), %s645_s17, 16  }
  0x7d   : > { %4434 = vsyncadd (%p4690_p13), %s645_s17, 4294967280 }
  0x7e   : > { %4436 = dma.done.wait (%p61_p1), [#allocation6], 3072  }
  0x7f   : > { %4438 = vsyncadd (%p61_p1), [#allocation6], 4294964224 }
  0x80   : > { %4440 = dma.done.wait (%p61_p1), [#allocation9], 544  }
  0x81   : > { %4442 = vsyncadd (%p61_p1), [#allocation9], 4294966752 }
  0x82   : > { %4444 = dma.done.wait (%p61_p1), [#allocation12], 12320  }
  0x83   : > { %4446 = vsyncadd (%p61_p1), [#allocation12], 4294954976 }
  0x84   : > { %4448 = dma.done.wait (%p61_p1), [#allocation15], 1280  }
  0x85   : > { %4450 = vsyncadd (%p61_p1), [#allocation15], 4294966016 }
  0x86   : > { %4452 = dma.done.wait (%p61_p1), [#allocation18], 8448  }
  0x87   : > { %4454 = vsyncadd (%p61_p1), [#allocation18], 4294958848  ;;  %v3159_v0 = vld [vmem:[#allocation7 + $0x90] sm:$0xf]  ;;  %v3676_v1 = vld [vmem:[#allocation7 + $0xa4] sm:$0xf0] }
  0x88   : > { %v3673_v2 = vld [vmem:[#allocation7 + $0x94] sm:$0xf]  ;;  %v3160_v3 = vor.u32 %v3676_v1, %v3159_v0  ;;  %v3161_v4 = vld [vmem:[#allocation7 + $0xa8] sm:$0xf0]  ;;  %v3135_v5 = vld [vmem:[#allocation7 + $0x60] sm:$0xf] }
  0x89   : > { %v3670_v6 = vld [vmem:[#allocation7 + $0x74] sm:$0xf0]  ;;  %v3164_v7 = vor.u32 %v3673_v2, %v3161_v4  ;;  %v3667_v8 = vld [vmem:[#allocation7 + $0x64] sm:$0xf]  ;;  %v3137_v9 = vld [vmem:[#allocation7 + $0x78] sm:$0xf0] }
  0x8a   : > { %976 = vmatpush.bf16.msra.mxu0 %v3160_v3  ;;  %v3136_v10 = vor.u32 %v3670_v6, %v3135_v5  ;;  %v3140_v11 = vor.u32 %v3667_v8, %v3137_v9  ;;  %v3111_v12 = vld [vmem:[#allocation7 + $0x30] sm:$0xf]  ;;  %v3664_v13 = vld [vmem:[#allocation7 + $0x44] sm:$0xf0]  ;;  %v3661_v14 = vld [vmem:[#allocation7 + $0x34] sm:$0xf] }
  0x8b   : > { %990 = vmatpush.bf16.msra.mxu1 %v3164_v7  ;;  %v3113_v15 = vld [vmem:[#allocation7 + $0x48] sm:$0xf0]  ;;  %v3112_v16 = vor.u32 %v3664_v13, %v3111_v12  ;;  %v3087_v18 = vld [vmem:[#allocation7] sm:$0xf]  ;;  %v3658_v19 = vld [vmem:[#allocation7 + $0x14] sm:$0xf0] }
  0x8c   : > { %v3116_v17 = vor.u32 %v3661_v14, %v3113_v15  ;;  %v3655_v20 = vld [vmem:[#allocation7 + $0x4] sm:$0xf]  ;;  %v3089_v21 = vld [vmem:[#allocation7 + $0x18] sm:$0xf0]  ;;  %v3175_v22 = vld [vmem:[#allocation7 + $0xa0] sm:$0xf]  ;;  %v3088_v26 = vor.u32 %v3658_v19, %v3087_v18 }
  0x8d   : > { %v3678_v23 = vld [vmem:[#allocation7 + $0xb4] sm:$0xf0]  ;;  %v3675_v24 = vld [vmem:[#allocation7 + $0xa4] sm:$0xf]  ;;  %v3177_v25 = vld [vmem:[#allocation7 + $0xb8] sm:$0xf0]  ;;  %v3092_v31 = vor.u32 %v3655_v20, %v3089_v21 }
  0x8e   : > { %977 = vmatpush.bf16.msra.mxu0 %v3136_v10  ;;  %v3151_v27 = vld [vmem:[#allocation7 + $0x70] sm:$0xf]  ;;  %v3167_v28 = vld [vmem:[#allocation7 + $0x98] sm:$0xf]  ;;  %v3674_v30 = vld [vmem:[#allocation7 + $0x9c] sm:$0xf]  ;;  %v3176_v32 = vor.u32 %v3678_v23, %v3175_v22  ;;  %v3180_v37 = vor.u32 %v3675_v24, %v3177_v25 }
  0x8f   : > { %991 = vmatpush.bf16.msra.mxu1 %v3140_v11  ;;  %v3677_v29 = vld [vmem:[#allocation7 + $0xac] sm:$0xf0]  ;;  %v3169_v34 = vld [vmem:[#allocation7 + $0xb0] sm:$0xf0]  ;;  %v3143_v35 = vld [vmem:[#allocation7 + $0x68] sm:$0xf] }
  0x90   : > { %v3168_v33 = vor.u32 %v3677_v29, %v3167_v28  ;;  %v3671_v36 = vld [vmem:[#allocation7 + $0x7c] sm:$0xf0]  ;;  %v3672_v38 = vld [vmem:[#allocation7 + $0x84] sm:$0xf0]  ;;  %v3172_v39 = vor.u32 %v3674_v30, %v3169_v34  ;;  %v3668_v40 = vld [vmem:[#allocation7 + $0x6c] sm:$0xf] }
  0x91   : > { %v3145_v41 = vld [vmem:[#allocation7 + $0x80] sm:$0xf0]  ;;  %v3654_v42 = vld [vmem:[%s4755_s20] sm:$0xff]  ;;  %v3144_v45 = vor.u32 %v3671_v36, %v3143_v35  ;;  %vm968_vm0 = vcmask 523264   ;;  %v3152_v49 = vor.u32 %v3672_v38, %v3151_v27  ;;  %v3127_v53 = vld [vmem:[#allocation7 + $0x40] sm:$0xf] }
  0x92   : > { %978 = vmatpush.bf16.msra.mxu0 %v3112_v16  ;;  %v3669_v43 = vld [vmem:[#allocation7 + $0x74] sm:$0xf]  ;;  %v3153_v44 = vld [vmem:[#allocation7 + $0x88] sm:$0xf0]  ;;  %1004 = vmatpush.bf16.msra.mxu2 %v3168_v33  ;;  %v3148_v46 = vor.u32 %v3668_v40, %v3145_v41  ;;  %v3119_v47 = vld [vmem:[#allocation7 + $0x38] sm:$0xf] }
  0x93   : > { %992 = vmatpush.bf16.msra.mxu1 %v3116_v17  ;;  %1018 = vmatpush.bf16.msra.mxu3 %v3172_v39  ;;  %v3665_v48 = vld [vmem:[#allocation7 + $0x4c] sm:$0xf0]  ;;  %v3662_v50 = vld [vmem:[#allocation7 + $0x3c] sm:$0xf]  ;;  %v3121_v51 = vld [vmem:[#allocation7 + $0x50] sm:$0xf0]  ;;  %v3156_v52 = vor.u32 %v3669_v43, %v3153_v44 }
  0x94   : > { %v3666_v54 = vld [vmem:[#allocation7 + $0x54] sm:$0xf0]  ;;  %v3663_v55 = vld [vmem:[#allocation7 + $0x44] sm:$0xf]  ;;  %v3129_v56 = vld [vmem:[#allocation7 + $0x58] sm:$0xf0]  ;;  %v3120_v57 = vor.u32 %v3665_v48, %v3119_v47  ;;  %v3124_v58 = vor.u32 %v3662_v50, %v3121_v51 }
  0x95   : > { %v3095_v59 = vld [vmem:[#allocation7 + $0x8] sm:$0xf]  ;;  %v3659_v60 = vld [vmem:[#allocation7 + $0x1c] sm:$0xf0]  ;;  %v3128_v61 = vor.u32 %v3666_v54, %v3127_v53  ;;  %v3656_v62 = vld [vmem:[#allocation7 + $0xc] sm:$0xf]  ;;  %v3132_v0 = vor.u32 %v3663_v55, %v3129_v56 }
  0x96   : > { %979 = vmatpush.bf16.msra.mxu0 %v3088_v26  ;;  %1005 = vmatpush.bf16.msra.mxu2 %v3144_v45  ;;  %v3097_v63 = vld [vmem:[#allocation7 + $0x20] sm:$0xf0]  ;;  %v3103_v1 = vld [vmem:[#allocation7 + $0x10] sm:$0xf]  ;;  %v3660_v2 = vld [vmem:[#allocation7 + $0x24] sm:$0xf0]  ;;  %v3096_v5 = vor.u32 %v3659_v60, %v3095_v59 }
  0x97   : > { %993 = vmatpush.bf16.msra.mxu1 %v3092_v31  ;;  %1019 = vmatpush.bf16.msra.mxu3 %v3148_v46  ;;  %v3657_v3 = vld [vmem:[#allocation7 + $0x14] sm:$0xf]  ;;  %v3105_v4 = vld [vmem:[#allocation7 + $0x28] sm:$0xf0]  ;;  %v3100_v6 = vor.u32 %v3656_v62, %v3097_v63  ;;  %v3104_v7 = vor.u32 %v3660_v2, %v3103_v1  ;;  %v749_v13 = vld [vmem:[#allocation16] sm:$0xff]  ;;  %vm1056_vm1 = vcmask 130048  }
  0x98   : > { %v3108_v8 = vor.u32 %v3657_v3, %v3105_v4  ;;  %v750_v16 = vld [vmem:[#allocation16 + $0x8] sm:$0xff]  ;;  %v751_v19 = vld [vmem:[#allocation17] sm:$0xff]  ;;  %v752_v20 = vld [vmem:[#allocation17 + $0x8] sm:$0xff]  ;;  %vm1555_vm6 = vcmask 261120   ;;  %s5629_s14 = sld [smem:[#allocation44_spill]]  ;;  %s3080_s18 = sshll.u32 %s4751_s6, 5 }
  0x99   : > { %3181 = vmatmul.msk.bf16.vlgmr.msra.gmra.mxu0 %vm968_vm0, %v3654_v42  ;;  %v4802_v21 = vld [vmem:[#allocation19 + $0xf0] sm:$0xff]  ;;  %v4806_v23 = vld [vmem:[#allocation19 + $0xf8] sm:$0xff]  ;;  %v4814_v25 = vld [vmem:[#allocation19 + $0xe0] sm:$0xff]  ;;  %s5634_s10 = sld [smem:[#allocation46_spill]]  ;;  %s3787_s17 = sshll.u32 %s4608_s30, 5 }
  0x9a   : > { %1032 = vmatpush.bf16.msrb.mxu0 %v3176_v32  ;;  %3182 = vmatmul.msk.bf16.vlgmr.msra.gmra.mxu1 %vm968_vm0, %v3654_v42  ;;  %v4804_v22 = vld [vmem:[#allocation19 + $0x1f0] sm:$0xff]  ;;  %v4810_v24 = vld [vmem:[#allocation19 + $0x1f8] sm:$0xff]  ;;  %v4816_v26 = vld [vmem:[#allocation19 + $0x1e0] sm:$0xff]  ;;  %s5635_s16 = sld [smem:[#allocation48_spill]]  ;;  %s747_s8 = scalar_lea.vmem [#allocation20], %s3080_s18 }
  0x9b   : > { %1046 = vmatpush.bf16.msrb.mxu1 %v3180_v37  ;;  %1006 = vmatpush.bf16.msra.mxu2 %v3120_v57  ;;  %v4818_v27 = vld [vmem:[#allocation19 + $0xe8] sm:$0xff]  ;;  %v4826_v29 = vld [vmem:[#allocation19 + $0xd0] sm:$0xff]  ;;  %v4830_v31 = vld [vmem:[#allocation19 + $0xd8] sm:$0xff]  ;;  %s5639_s23 = sld [smem:[#allocation54_spill]]  ;;  %s2874_s22 = sshll.u32 %s747_s8, 4  ;;  %s2875_s22 = int_to_ptr.vmem [resolvable:$true] %s2874_s22 }
  0x9c   : > { %1020 = vmatpush.bf16.msra.mxu3 %v3124_v58  ;;  %v4822_v28 = vld [vmem:[#allocation19 + $0x1e8] sm:$0xff]  ;;  %v4828_v30 = vld [vmem:[#allocation19 + $0x1d0] sm:$0xff]  ;;  %v4834_v32 = vld [vmem:[#allocation19 + $0x1d8] sm:$0xff]  ;;  %s2862_s12 = scalar_lea.sflag [#allocation4], %s4751_s6 }
  0x9d   : > { %v4838_v33 = vld [vmem:[#allocation19 + $0xc0] sm:$0xff]  ;;  %v4842_v35 = vld [vmem:[#allocation19 + $0xc8] sm:$0xff]  ;;  %v4850_v37 = vld [vmem:[#allocation19 + $0xb0] sm:$0xff] }
  0x9e   : > { %1033 = vmatpush.bf16.msrb.mxu0 %v3152_v49  ;;  %v4840_v34 = vld [vmem:[#allocation19 + $0x1c0] sm:$0xff]  ;;  %v4846_v36 = vld [vmem:[#allocation19 + $0x1c8] sm:$0xff]  ;;  %v4852_v38 = vld [vmem:[#allocation19 + $0x1b0] sm:$0xff] }
  0x9f   : > { %1047 = vmatpush.bf16.msrb.mxu1 %v3156_v52  ;;  %1007 = vmatpush.bf16.msra.mxu2 %v3096_v5  ;;  %v4854_v39 = vld [vmem:[#allocation19 + $0xb8] sm:$0xff]  ;;  %v4860_v41 = vld [vmem:[#allocation19 + $0xa0] sm:$0xff]  ;;  %v4868_v44 = vld [vmem:[#allocation19 + $0xa8] sm:$0xff] }
  0xa0   : > { %1021 = vmatpush.bf16.msra.mxu3 %v3100_v6  ;;  %v4858_v40 = vld [vmem:[#allocation19 + $0x1b8] sm:$0xff]  ;;  %v4870_v45 = vld [vmem:[#allocation19 + $0x1a8] sm:$0xff]  ;;  %v4878_v47 = vld [vmem:[#allocation19 + $0x90] sm:$0xff] }
  0xa1   : > { %v4880_v48 = vld [vmem:[#allocation19 + $0x190] sm:$0xff]  ;;  %v4882_v49 = vld [vmem:[#allocation19 + $0x98] sm:$0xff]  ;;  %v4890_v51 = vld [vmem:[#allocation19 + $0x80] sm:$0xff]  ;;  %s2873_s2 = scalar_lea.hbm %s5639_s23, %s3787_s17  ;;  %s4403_s29 = scalar_lea.hbm %s5639_s23, 64 }
  0xa2   : > { %1034 = vmatpush.bf16.msrb.mxu0 %v3128_v61  ;;  %3183 = vmatmul.msk.bf16.vlgmr.msra.gmra.mxu2 %vm968_vm0, %v3654_v42  ;;  %v4886_v50 = vld [vmem:[#allocation19 + $0x198] sm:$0xff]  ;;  %v4892_v52 = vld [vmem:[#allocation19 + $0x180] sm:$0xff]  ;;  %v4894_v53 = vld [vmem:[#allocation19 + $0x88] sm:$0xff]  ;;  %s2876_s13 = sshll.u32 %s2873_s2, 4  ;;  %s2877_s13 = int_to_ptr.hbm [resolvable:$true] %s2876_s13 }
  0xa3   : > { %1048 = vmatpush.bf16.msrb.mxu1 %v3132_v0  ;;  %3184 = vmatmul.msk.bf16.vlgmr.msra.gmra.mxu3 %vm968_vm0, %v3654_v42  ;;  %v4898_v54 = vld [vmem:[#allocation19 + $0x188] sm:$0xff]  ;;  %v4902_v55 = vld [vmem:[#allocation19 + $0x70] sm:$0xff]  ;;  %v4906_v57 = vld [vmem:[#allocation19 + $0x78] sm:$0xff] }
  0xa4   : > { %v4904_v56 = vld [vmem:[#allocation19 + $0x170] sm:$0xff]  ;;  %v4910_v58 = vld [vmem:[#allocation19 + $0x178] sm:$0xff]  ;;  %v4914_v59 = vld [vmem:[#allocation19 + $0x60] sm:$0xff] }
  0xa5   : > { %v4916_v60 = vld [vmem:[#allocation19 + $0x160] sm:$0xff]  ;;  %v4918_v61 = vld [vmem:[#allocation19 + $0x68] sm:$0xff]  ;;  %v4928_v0 = vld [vmem:[#allocation19 + $0x50] sm:$0xff] }
  0xa6   : > { %1035 = vmatpush.bf16.msrb.mxu0 %v3104_v7  ;;  %v4922_v62 = vld [vmem:[#allocation19 + $0x168] sm:$0xff]  ;;  %v4930_v1 = vld [vmem:[#allocation19 + $0x150] sm:$0xff]  ;;  %v4932_v2 = vld [vmem:[#allocation19 + $0x58] sm:$0xff] }
  0xa7   : > { %1049 = vmatpush.bf16.msrb.mxu1 %v3108_v8  ;;  %v4938_v4 = vld [vmem:[#allocation19 + $0x158] sm:$0xff]  ;;  %v4942_v5 = vld [vmem:[#allocation19 + $0x40] sm:$0xff]  ;;  %v4946_v7 = vld [vmem:[#allocation19 + $0x48] sm:$0xff] }
  0xa8   : > { %v4944_v6 = vld [vmem:[#allocation19 + $0x140] sm:$0xff]  ;;  %v4950_v8 = vld [vmem:[#allocation19 + $0x148] sm:$0xff] }
  0xa9   : > { %3185 = vmatmul.msk.bf16.vlgmr.msrb.gmra.mxu0 %vm968_vm0, %v3654_v42 }
  0xaa   : > { %3186 = vmatmul.msk.bf16.vlgmr.msrb.gmra.mxu1 %vm968_vm0, %v3654_v42  ;;  %v4862_v42 = vld [vmem:[#allocation19 + $0x1a0] sm:$0xff] }
 0x116   : > { %v981_v9 = vpop.f32.mrf.mxu0 }
 0x117   : > { %v995_v10 = vpop.f32.mrf.mxu1 }
 0x11e   : > { %v983_v11 = vpop.f32.mrf.mxu0 }
 0x11f   : > { %v997_v12 = vpop.f32.mrf.mxu1  ;;  %1077 = vmatpush.msrb.mxu2 %v983_v11  ;;  %v4958_v11 = vld [vmem:[#allocation19 + $0x38] sm:$0xff] }
 0x120   : > { %1100 = vmatpush.msrb.mxu3 %v997_v12  ;;  %5614 = vst [vmem:[#allocation32_spill] sm:$0xff] %v4958_v11  ;;  %v4962_v12 = vld [vmem:[#allocation19 + $0x138] sm:$0xff] }
 0x121   : > { %1078 = vmatpush.msrb.mxu2 %v981_v9  ;;  %v4954_v9 = vld [vmem:[#allocation19 + $0x30] sm:$0xff]  ;;  %5615 = vst [vmem:[#allocation33_spill] sm:$0xff] %v4962_v12 }
 0x122   : > { %1101 = vmatpush.msrb.mxu3 %v995_v10  ;;  %3187 = vmatmul.msk.f32.vlgmr.msrb.gmra.mxu2 %vm1056_vm1, %v749_v13  ;;  %5613 = vst [vmem:[#allocation31_spill] sm:$0xff] %v4954_v9  ;;  %v4956_v10 = vld [vmem:[#allocation19 + $0x130] sm:$0xff] }
 0x123   : > { %3189 = vmatmul.msk.f32.vlgmr.msrb.gmra.mxu3 %vm1056_vm1, %v749_v13  ;;  %1193 = vmatpush.msra.mxu2 %v4802_v21  ;;  %v4966_v13 = vld [vmem:[#allocation19 + $0x20] sm:$0xff] }
 0x124   : > { %1213 = vmatpush.msra.mxu3 %v4804_v22  ;;  %5616 = vst [vmem:[#allocation34_spill] sm:$0xff] %v4966_v13 }
 0x125   : > { %1194 = vmatpush.msra.mxu2 %v4814_v25  ;;  %v4864_v43 = vpop.f32.mrf.mxu2 }
 0x126   : > { %v1037_v14 = vpop.f32.mrf.mxu0  ;;  %1214 = vmatpush.msra.mxu3 %v4816_v26  ;;  %v4872_v46 = vpop.f32.mrf.mxu3 }
 0x127   : > { %v1051_v15 = vpop.f32.mrf.mxu1  ;;  %1195 = vmatpush.msra.mxu2 %v4826_v29 }
 0x128   : > { %1215 = vmatpush.msra.mxu3 %v4828_v30 }
 0x129   : > { %1196 = vmatpush.msra.mxu2 %v4838_v33 }
 0x12a   : > { %3188 = vmatmul.msk.f32.gmra.mxu2 %vm1056_vm1, %v750_v16  ;;  %1216 = vmatpush.msra.mxu3 %v4840_v34 }
 0x12b   : > { %3190 = vmatmul.msk.f32.gmra.mxu3 %vm1056_vm1, %v750_v16  ;;  %1197 = vmatpush.msra.mxu2 %v4850_v37  ;;  %v4974_v16 = vld [vmem:[#allocation19 + $0x128] sm:$0xff] }
 0x12c   : > { %1217 = vmatpush.msra.mxu3 %v4852_v38 }
 0x12d   : > { %1198 = vmatpush.msra.mxu2 %v4860_v41  ;;  %v4924_v63 = vpop.f32.mrf.mxu2 }
 0x12e   : > { %v1039_v17 = vpop.f32.mrf.mxu0  ;;  %1218 = vmatpush.msra.mxu3 %v4862_v42  ;;  %v4934_v3 = vpop.f32.mrf.mxu3 }
 0x12f   : > { %v1053_v18 = vpop.f32.mrf.mxu1  ;;  %1133 = vmatpush.msra.mxu0 %v1039_v17  ;;  %1199 = vmatpush.msra.mxu2 %v4878_v47  ;;  %v4976_v17 = vld [vmem:[#allocation19 + $0x10] sm:$0xff] }
 0x130   : > { %1156 = vmatpush.msra.mxu1 %v1053_v18  ;;  %1219 = vmatpush.msra.mxu3 %v4880_v48  ;;  %v4978_v18 = vld [vmem:[#allocation19 + $0x110] sm:$0xff] }
 0x131   : > { %1134 = vmatpush.msra.mxu0 %v1037_v14  ;;  %1200 = vmatpush.msra.mxu2 %v4890_v51  ;;  %v4968_v14 = vld [vmem:[#allocation19 + $0x120] sm:$0xff] }
 0x132   : > { %1157 = vmatpush.msra.mxu1 %v1051_v15  ;;  %3191 = vmatmul.msk.f32.vlgmr.msra.gmra.mxu0 %vm1056_vm1, %v751_v19  ;;  %5617 = vst [vmem:[#allocation35_spill] sm:$0xff] %v4968_v14  ;;  %v4970_v15 = vld [vmem:[#allocation19 + $0x28] sm:$0xff] }
 0x133   : > { %3193 = vmatmul.msk.f32.vlgmr.msra.gmra.mxu1 %vm1056_vm1, %v751_v19  ;;  %1233 = vmatpush.msrb.mxu0 %v4806_v23  ;;  %5618 = vst [vmem:[#allocation36_spill] sm:$0xff] %v4970_v15  ;;  %v4982_v19 = vld [vmem:[#allocation19 + $0x18] sm:$0xff] }
 0x134   : > { %1253 = vmatpush.msrb.mxu1 %v4810_v24  ;;  %1220 = vmatpush.msra.mxu3 %v4892_v52  ;;  %5619 = vst [vmem:[#allocation37_spill] sm:$0xff] %v4982_v19 }
 0x135   : > { %1234 = vmatpush.msrb.mxu0 %v4818_v27  ;;  %1201 = vmatpush.msra.mxu2 %v4902_v55 }
 0x136   : > { %1254 = vmatpush.msrb.mxu1 %v4822_v28  ;;  %1221 = vmatpush.msra.mxu3 %v4904_v56 }
 0x137   : > { %1235 = vmatpush.msrb.mxu0 %v4830_v31  ;;  %1202 = vmatpush.msra.mxu2 %v4914_v59 }
 0x138   : > { %1255 = vmatpush.msrb.mxu1 %v4834_v32  ;;  %1222 = vmatpush.msra.mxu3 %v4916_v60 }
 0x139   : > { %1236 = vmatpush.msrb.mxu0 %v4842_v35  ;;  %1203 = vmatpush.msra.mxu2 %v4928_v0 }
 0x13a   : > { %3192 = vmatmul.msk.f32.gmra.mxu0 %vm1056_vm1, %v752_v20  ;;  %1256 = vmatpush.msrb.mxu1 %v4846_v36 }
 0x13b   : > { %3194 = vmatmul.msk.f32.gmra.mxu1 %vm1056_vm1, %v752_v20  ;;  %1237 = vmatpush.msrb.mxu0 %v4854_v39  ;;  %v4984_v20 = vld [vmem:[#allocation19 + $0x118] sm:$0xff] }
 0x13c   : > { %1257 = vmatpush.msrb.mxu1 %v4858_v40  ;;  %1223 = vmatpush.msra.mxu3 %v4930_v1 }
 0x13d   : > { %1238 = vmatpush.msrb.mxu0 %v4868_v44  ;;  %1204 = vmatpush.msra.mxu2 %v4942_v5 }
 0x13e   : > { %1258 = vmatpush.msrb.mxu1 %v4870_v45  ;;  %1224 = vmatpush.msra.mxu3 %v4944_v6 }
 0x13f   : > { %1239 = vmatpush.msrb.mxu0 %v4882_v49  ;;  %1205 = vmatpush.msra.mxu2 %v4954_v9  ;;  %v4994_v9 = vld [vmem:[#allocation19 + $0x108] sm:$0xff] }
 0x140   : > { %1259 = vmatpush.msrb.mxu1 %v4886_v50  ;;  %1225 = vmatpush.msra.mxu3 %v4956_v10 }
 0x141   : > { %1240 = vmatpush.msrb.mxu0 %v4894_v53  ;;  %1206 = vmatpush.msra.mxu2 %v4966_v13  ;;  %v4990_v13 = vld [vmem:[#allocation19 + $0x100] sm:$0xff] }
 0x142   : > { %1260 = vmatpush.msrb.mxu1 %v4898_v54  ;;  %1226 = vmatpush.msra.mxu3 %v4968_v14  ;;  %v4992_v14 = vld [vmem:[#allocation19 + $0x8] sm:$0xff] }
 0x143   : > { %1241 = vmatpush.msrb.mxu0 %v4906_v57  ;;  %1207 = vmatpush.msra.mxu2 %v4976_v17  ;;  %5620 = vst [vmem:[#allocation38_spill] sm:$0xff] %v4992_v14 }
 0x144   : > { %1261 = vmatpush.msrb.mxu1 %v4910_v58  ;;  %1227 = vmatpush.msra.mxu3 %v4978_v18 }
 0x145   : > { %1242 = vmatpush.msrb.mxu0 %v4918_v61 }
 0x146   : > { %1262 = vmatpush.msrb.mxu1 %v4922_v62  ;;  %1228 = vmatpush.msra.mxu3 %v4990_v13 }
 0x147   : > { %1243 = vmatpush.msrb.mxu0 %v4932_v2 }
 0x148   : > { %1263 = vmatpush.msrb.mxu1 %v4938_v4  ;;  %1317 = vmatpush.msrb.mxu3 %v4804_v22  ;;  %v1169_v22 = vld [vmem:[%s5550_s3] sm:$0x3] }
 0x149   : > { %1244 = vmatpush.msrb.mxu0 %v4946_v7 }
 0x14a   : > { %1264 = vmatpush.msrb.mxu1 %v4950_v8  ;;  %1318 = vmatpush.msrb.mxu3 %v4816_v26 }
 0x14b   : > { %1245 = vmatpush.msrb.mxu0 %v4958_v11  ;;  %v4986_v11 = vld [vmem:[#allocation19] sm:$0xff] }
 0x14c   : > { %1265 = vmatpush.msrb.mxu1 %v4962_v12  ;;  %1208 = vmatpush.msra.mxu2 %v4986_v11 }
 0x14d   : > { %1246 = vmatpush.msrb.mxu0 %v4970_v15  ;;  %1319 = vmatpush.msrb.mxu3 %v4828_v30 }
 0x14e   : > { %1266 = vmatpush.msrb.mxu1 %v4974_v16  ;;  %1297 = vmatpush.msrb.mxu2 %v4802_v21 }
 0x14f   : > { %1247 = vmatpush.msrb.mxu0 %v4982_v19  ;;  %1320 = vmatpush.msrb.mxu3 %v4840_v34 }
 0x150   : > { %1267 = vmatpush.msrb.mxu1 %v4984_v20  ;;  %1298 = vmatpush.msrb.mxu2 %v4814_v25 }
 0x151   : > { %1248 = vmatpush.msrb.mxu0 %v4992_v14  ;;  %1321 = vmatpush.msrb.mxu3 %v4852_v38 }
 0x152   : > { %1268 = vmatpush.msrb.mxu1 %v4994_v9  ;;  %1299 = vmatpush.msrb.mxu2 %v4826_v29 }
 0x153   : > { %1337 = vmatpush.msra.mxu0 %v4806_v23  ;;  %1322 = vmatpush.msrb.mxu3 %v4862_v42 }
 0x154   : > { %1357 = vmatpush.msra.mxu1 %v4810_v24  ;;  %1300 = vmatpush.msrb.mxu2 %v4838_v33 }
 0x155   : > { %1338 = vmatpush.msra.mxu0 %v4818_v27  ;;  %1323 = vmatpush.msrb.mxu3 %v4880_v48 }
 0x156   : > { %1358 = vmatpush.msra.mxu1 %v4822_v28  ;;  %1301 = vmatpush.msrb.mxu2 %v4850_v37  ;;  %v1171_v28 = vperm.slane %v1169_v22, 0 }
 0x157   : > { %1339 = vmatpush.msra.mxu0 %v4830_v31  ;;  %v1172_v31 = vperm.slane %v1169_v22, 1  ;;  %1324 = vmatpush.msrb.mxu3 %v4892_v52  ;;  %v5623_v52 = vld [vmem:[#allocation32_spill] sm:$0xff] }
 0x158   : > { %1359 = vmatpush.msra.mxu1 %v4834_v32  ;;  %1302 = vmatpush.msrb.mxu2 %v4860_v41 }
 0x159   : > { %1340 = vmatpush.msra.mxu0 %v4842_v35  ;;  %1325 = vmatpush.msrb.mxu3 %v4904_v56  ;;  %v5625_v56 = vld [vmem:[#allocation34_spill] sm:$0xff] }
 0x15a   : > { %1360 = vmatpush.msra.mxu1 %v4846_v36  ;;  %1303 = vmatpush.msrb.mxu2 %v4878_v47 }
 0x15b   : > { %1341 = vmatpush.msra.mxu0 %v4854_v39  ;;  %1326 = vmatpush.msrb.mxu3 %v4916_v60  ;;  %v5627_v60 = vld [vmem:[#allocation37_spill] sm:$0xff] }
 0x15c   : > { %1361 = vmatpush.msra.mxu1 %v4858_v40  ;;  %1304 = vmatpush.msrb.mxu2 %v4890_v51  ;;  %v5622_v51 = vld [vmem:[#allocation31_spill] sm:$0xff] }
 0x15d   : > { %1342 = vmatpush.msra.mxu0 %v4868_v44  ;;  %1327 = vmatpush.msrb.mxu3 %v4930_v1 }
 0x15e   : > { %1362 = vmatpush.msra.mxu1 %v4870_v45  ;;  %1305 = vmatpush.msrb.mxu2 %v4902_v55 }
 0x15f   : > { %1343 = vmatpush.msra.mxu0 %v4882_v49  ;;  %1328 = vmatpush.msrb.mxu3 %v4944_v6  ;;  %v5621_v49 = vld [vmem:[#allocation33_spill] sm:$0xff] }
 0x160   : > { %1363 = vmatpush.msra.mxu1 %v4886_v50  ;;  %1306 = vmatpush.msrb.mxu2 %v4914_v59 }
 0x161   : > { %1344 = vmatpush.msra.mxu0 %v4894_v53  ;;  %1329 = vmatpush.msrb.mxu3 %v4956_v10  ;;  %v1503_v10 = vld [vmem:[%s647_s7] sm:$0x1] }
 0x162   : > { %1364 = vmatpush.msra.mxu1 %v4898_v54  ;;  %1307 = vmatpush.msrb.mxu2 %v4928_v0  ;;  %v5624_v54 = vld [vmem:[#allocation35_spill] sm:$0xff]  ;;  %v3681_v0 = vld [vmem:[#allocation10 + $0x14] sm:$0xf] }
 0x163   : > { %1345 = vmatpush.msra.mxu0 %v4906_v57  ;;  %1330 = vmatpush.msrb.mxu3 %v5624_v54  ;;  %v5626_v57 = vld [vmem:[#allocation36_spill] sm:$0xff] }
 0x164   : > { %1365 = vmatpush.msra.mxu1 %v4910_v58  ;;  %1308 = vmatpush.msrb.mxu2 %v4942_v5 }
 0x165   : > { %1346 = vmatpush.msra.mxu0 %v4918_v61  ;;  %1331 = vmatpush.msrb.mxu3 %v4978_v18  ;;  %v5628_v61 = vld [vmem:[#allocation38_spill] sm:$0xff] }
 0x166   : > { %1366 = vmatpush.msra.mxu1 %v4922_v62  ;;  %1309 = vmatpush.msrb.mxu2 %v5622_v51  ;;  %v3210_v62 = vld [vmem:[#allocation10 + $0x10] sm:$0xf] }
 0x167   : > { %1347 = vmatpush.msra.mxu0 %v4932_v2  ;;  %1332 = vmatpush.msrb.mxu3 %v4990_v13  ;;  %v3212_v2 = vld [vmem:[#allocation10 + $0x18] sm:$0xf0]  ;;  %v3199_v13 = vmul.f32 -1.442695, %v1503_v10 }
 0x168   : > { %1367 = vmatpush.msra.mxu1 %v4938_v4  ;;  %1310 = vmatpush.msrb.mxu2 %v5625_v56  ;;  %v3680_v4 = vld [vmem:[#allocation10 + $0x4] sm:$0xf0]  ;;  %v3215_v6 = vor.u32 %v3681_v0, %v3212_v2  ;;  %v3580_v56 = vld [vmem:[#allocation11 + $0x2d0] sm:$0xf]  ;;  %v3767_v0 = vld [vmem:[#allocation11 + $0x2a4] sm:$0xf] }
 0x169   : > { %1348 = vmatpush.msra.mxu0 %v4946_v7  ;;  %v3679_v7 = vld [vmem:[#allocation10 + $0x4] sm:$0xf]  ;;  %3940 = vpow2.f32 %v3199_v13  ;;  %v3558_v2 = vld [vmem:[#allocation11 + $0x2b8] sm:$0xf0]  ;;  %v3761_v13 = vld [vmem:[#allocation11 + $0x274] sm:$0xf] }
 0x16a   : > { %1368 = vmatpush.msra.mxu1 %v4950_v8  ;;  %1311 = vmatpush.msrb.mxu2 %v4976_v17  ;;  %v3204_v8 = vld [vmem:[#allocation10 + $0x8] sm:$0xf0] }
 0x16b   : > { %1349 = vmatpush.msra.mxu0 %v5623_v52 }
 0x16c   : > { %1369 = vmatpush.msra.mxu1 %v5621_v49  ;;  %1312 = vmatpush.msrb.mxu2 %v4986_v11 }
 0x16d   : > { %1350 = vmatpush.msra.mxu0 %v5626_v57  ;;  %v3776_v57 = vld [vmem:[#allocation11 + $0x2e4] sm:$0xf0] }
 0x16e   : > { %1370 = vmatpush.msra.mxu1 %v4974_v16 }
 0x16f   : > { %1351 = vmatpush.msra.mxu0 %v5627_v60  ;;  %v3582_v60 = vld [vmem:[#allocation11 + $0x2e8] sm:$0xf0] }
 0x170   : > { %1371 = vmatpush.msra.mxu1 %v4984_v20 }
 0x171   : > { %1352 = vmatpush.msra.mxu0 %v5628_v61 }
 0x172   : > { %1372 = vmatpush.msra.mxu1 %v4994_v9 }
 0x1a5   : > { %v1080_v12 = vpop.f32.mrf.mxu2 }
 0x1a6   : > { %v1103_v15 = vpop.f32.mrf.mxu3  ;;  %v1109_v23 = vadd.f32 %v1080_v12, %v4864_v43 }
 0x1a7   : > { %v1110_v25 = vadd.f32 %v1103_v15, %v4872_v46 }
 0x1ad   : > { %v1083_v21 = vpop.f32.mrf.mxu2 }
 0x1ae   : > { %v1106_v24 = vpop.f32.mrf.mxu3  ;;  %v1111_v26 = vadd.f32 %v1083_v21, %v4924_v63  ;;  %v3682_v63 = vld [vmem:[#allocation10 + $0x14] sm:$0xf0] }
 0x1af   : > { %v1136_v19 = vpop.f32.mrf.mxu0  ;;  %v1112_v29 = vadd.f32 %v1106_v24, %v4934_v3  ;;  %v3211_v1 = vor.u32 %v3682_v63, %v3210_v62  ;;  %v3202_v3 = vld [vmem:[#allocation10] sm:$0xf]  ;;  %v3770_v63 = vld [vmem:[#allocation11 + $0x2b4] sm:$0xf0] }
 0x1b0   : > { %v1159_v14 = vpop.f32.mrf.mxu1  ;;  %v1165_v27 = vadd.f32 %v1136_v19, %v1109_v23  ;;  %v3203_v9 = vor.u32 %v3680_v4, %v3202_v3  ;;  %v3941_v23 = vpop.eup %3940  ;;  %v3556_v62 = vld [vmem:[#allocation11 + $0x2a0] sm:$0xf]  ;;  %v3561_v3 = vor.u32 %v3767_v0, %v3558_v2  ;;  %v3388_v4 = vld [vmem:[#allocation11 + $0x150] sm:$0xf]  ;;  %v3737_v0 = vld [vmem:[#allocation11 + $0x1b4] sm:$0xf] }
 0x1b1   : > { %v1166_v30 = vadd.f32 %v1159_v14, %v1110_v25  ;;  %v3207_v14 = vor.u32 %v3679_v7, %v3204_v8  ;;  %v3390_v8 = vld [vmem:[#allocation11 + $0x168] sm:$0xf0] }
 0x1b2   : > { %v5037_v36 = vadd.f32 %v1171_v28, %v1165_v27  ;;  %v3438_v2 = vld [vmem:[#allocation11 + $0x1c8] sm:$0xf0] }
 0x1b3   : > { %v5043_v38 = vadd.f32 %v1172_v31, %v1166_v30 }
 0x1b7   : > { %v1139_v32 = vpop.f32.mrf.mxu0 }
 0x1b8   : > { %v1167_v33 = vadd.f32 %v1139_v32, %v1111_v26  ;;  %v1162_v34 = vpop.f32.mrf.mxu1  ;;  %v1507_v26 = vadd.f32 1.0, %v3941_v23 }
 0x1b9   : > { %v1168_v35 = vadd.f32 %v1162_v34, %v1112_v29 }
 0x1ba   : > { %v5039_v37 = vadd.f32 %v1171_v28, %v1167_v33  ;;  %3942 = vrcp.f32 %v1507_v26  ;;  %vm1513_vm2 = vweird.f32 %v1507_v26 }
 0x1bb   : > { %v5045_v39 = vadd.f32 %v1172_v31, %v1168_v35 }
 0x1bc   : > { %v1179_v40 = vadd.f32 %v5039_v37, %v5037_v36 }
 0x1bd   : > { %v1186_v41 = vadd.f32 %v5045_v39, %v5043_v38 }
 0x1be   : > { %v1180_v42 = vrot.slane %v1179_v40, 4 }
 0x1bf   : > { %v1187_v43 = vrot.slane %v1186_v41, 4 }
 0x1c0   : > { %v1181_v44 = vadd.f32 %v1180_v42, %v1179_v40  ;;  %v3943_v35 = vpop.eup %3942  ;;  %v1519_v42 = vand.u32 2147483648, %v1507_v26 }
 0x1c1   : > { %v1188_v45 = vadd.f32 %v1187_v43, %v1186_v41  ;;  %v1509_v40 = vmul.f32 %v3943_v35, %v1507_v26  ;;  %vm1514_vm3 = vweird.f32 %v3943_v35 }
 0x1c2   : > { %v1182_v46 = vrot.slane %v1181_v44, 2  ;;  %vm1515_vm4 = vmor %vm1513_vm2, %vm1514_vm3 }
 0x1c3   : > { %v1189_v47 = vrot.slane %v1188_v45, 2  ;;  %v1510_v43 = vsub.f32 1.0, %v1509_v40  ;;  %v3484_v40 = vld [vmem:[#allocation11 + $0x210] sm:$0xf] }
 0x1c4   : > { %v1183_v48 = vadd.f32 %v1182_v46, %v1181_v44 }
 0x1c5   : > { %v1190_v50 = vadd.f32 %v1189_v47, %v1188_v45  ;;  %v1511_v46 = vmul.f32 %v3943_v35, %v1510_v43  ;;  %v3486_v43 = vld [vmem:[#allocation11 + $0x228] sm:$0xf0] }
 0x1c6   : > { %v1184_v53 = vrot.slane %v1183_v48, 1 }
 0x1c7   : > { %v1191_v55 = vrot.slane %v1190_v50, 1  ;;  %v1512_v49 = vadd.f32 %v3943_v35, %v1511_v46  ;;  %v3707_v46 = vld [vmem:[#allocation11 + $0xc4] sm:$0xf] }
 0x1c8   : > { %v1185_v58 = vadd.f32 %v1184_v53, %v1183_v48  ;;  %v1520_v48 = vor.u32 1.1754944e-38, %v1519_v42 }
 0x1c9   : > { %v1192_v59 = vadd.f32 %v1191_v55, %v1190_v50  ;;  %v1516_v51 = vsel %vm1515_vm4, %v3943_v35, %v1512_v49 }
 0x1ca   : > { %1209 = vmatmul.f32.vlgmr.msra.gmra.mxu2 %v1185_v58  ;;  %1249 = vmatmul.f32.vlgmr.msrb.gmra.mxu0 %v1185_v58  ;;  %v3773_v58 = vld [vmem:[#allocation11 + $0x2d4] sm:$0xf] }
 0x1cb   : > { %1229 = vmatmul.f32.vlgmr.msra.gmra.mxu3 %v1192_v59  ;;  %1269 = vmatmul.f32.vlgmr.msrb.gmra.mxu1 %v1192_v59  ;;  %v3581_v59 = vor.u32 %v3776_v57, %v3580_v56  ;;  %v3585_v61 = vor.u32 %v3773_v58, %v3582_v60  ;;  %v3292_v56 = vld [vmem:[#allocation11 + $0x90] sm:$0xf]  ;;  %v3704_v57 = vld [vmem:[#allocation11 + $0xa4] sm:$0xf0]  ;;  %v3701_v58 = vld [vmem:[#allocation11 + $0x94] sm:$0xf] }
 0x1cc   : > { %1565 = vmatpush.bf16.msrb.mxu0 %v3211_v1  ;;  %1578 = vmatpush.bf16.msrb.mxu1 %v3215_v6  ;;  %v3557_v1 = vor.u32 %v3770_v63, %v3556_v62  ;;  %v3725_v6 = vld [vmem:[#allocation11 + $0x154] sm:$0xf]  ;;  %v3294_v60 = vld [vmem:[#allocation11 + $0xa8] sm:$0xf0]  ;;  %v3436_v62 = vld [vmem:[#allocation11 + $0x1b0] sm:$0xf] }
 0x1cd   : > { %2183 = vmatpush.bf16.msra.mxu3 %v3581_v59  ;;  %v3293_v59 = vor.u32 %v3704_v57, %v3292_v56  ;;  %v3740_v63 = vld [vmem:[#allocation11 + $0x1c4] sm:$0xf0]  ;;  %v3540_v56 = vld [vmem:[#allocation11 + $0x278] sm:$0xf]  ;;  %v3765_v57 = vld [vmem:[#allocation11 + $0x28c] sm:$0xf0] }
 0x1d0   : > { %1566 = vmatpush.bf16.msrb.mxu0 %v3203_v9  ;;  %1579 = vmatpush.bf16.msrb.mxu1 %v3207_v14  ;;  %v3764_v9 = vld [vmem:[#allocation11 + $0x284] sm:$0xf0]  ;;  %v3534_v14 = vld [vmem:[#allocation11 + $0x288] sm:$0xf0] }
 0x1d1   : > { %2184 = vmatpush.bf16.msra.mxu3 %v3557_v1  ;;  %v3437_v1 = vor.u32 %v3740_v63, %v3436_v62  ;;  %v3542_v62 = vld [vmem:[#allocation11 + $0x290] sm:$0xf0]  ;;  %v3372_v63 = vld [vmem:[#allocation11 + $0x128] sm:$0xf] }
 0x247   : > { %v1250_v5 = vpop.f32.mrf.mxu0 }
 0x248   : > { %v1270_v12 = vpop.f32.mrf.mxu1 }
 0x249   : > { %v1271_v11 = vadd.f32 %v1270_v12, %v1250_v5  ;;  %v3728_v5 = vld [vmem:[#allocation11 + $0x164] sm:$0xf0]  ;;  %v3532_v12 = vld [vmem:[#allocation11 + $0x270] sm:$0xf] }
 0x24a   : > { %v3389_v7 = vor.u32 %v3728_v5, %v3388_v4  ;;  %v3698_v4 = vld [vmem:[#allocation11 + $0x74] sm:$0xf0]  ;;  %v3441_v5 = vor.u32 %v3737_v0, %v3438_v2  ;;  %v3720_v2 = vld [vmem:[#allocation11 + $0x12c] sm:$0xf] }
 0x24b   : > { %v1274_v15 = vperm.slane %v1271_v11, 0  ;;  %v3533_v11 = vor.u32 %v3764_v9, %v3532_v12 }
 0x24c   : > { %2169 = vmatpush.bf16.msra.mxu2 %v3389_v7  ;;  %v3695_v7 = vld [vmem:[#allocation11 + $0x64] sm:$0xf] }
 0x24d   : > { %v5088_v16 = vsub.f32 %v5043_v38, %v1274_v15  ;;  %v5091_v17 = vsub.f32 %v5045_v39, %v1274_v15  ;;  %v1210_v18 = vpop.f32.mrf.mxu2  ;;  %v3537_v15 = vor.u32 %v3761_v13, %v3534_v14  ;;  %2185 = vmatpush.bf16.msra.mxu3 %v3533_v11  ;;  %v3734_v13 = vld [vmem:[#allocation11 + $0x194] sm:$0xf0]  ;;  %v3731_v11 = vld [vmem:[#allocation11 + $0x184] sm:$0xf]  ;;  %v3414_v14 = vld [vmem:[#allocation11 + $0x198] sm:$0xf0] }
 0x24e   : > { %v1230_v19 = vpop.f32.mrf.mxu3 }
 0x24f   : > { %v1280_v20 = vmul.f32 %v5088_v16, %v5088_v16  ;;  %v1282_v21 = vmul.f32 %v5091_v17, %v5091_v17  ;;  %v1231_v22 = vadd.f32 %v1230_v19, %v1210_v18  ;;  %v3364_v18 = vld [vmem:[#allocation11 + $0x120] sm:$0xf]  ;;  %v3722_v19 = vld [vmem:[#allocation11 + $0x134] sm:$0xf0] }
 0x251   : > { %v1290_v24 = vadd.f32 %v1282_v21, %v1280_v20  ;;  %v1273_v25 = vperm.slane %v1231_v22, 0  ;;  %v3719_v20 = vld [vmem:[#allocation11 + $0x124] sm:$0xf]  ;;  %v3365_v21 = vor.u32 %v3722_v19, %v3364_v18  ;;  %v3366_v22 = vld [vmem:[#allocation11 + $0x138] sm:$0xf0]  ;;  %v3417_v19 = vor.u32 %v3731_v11, %v3414_v14 }
 0x252   : > { %v3369_v23 = vor.u32 %v3719_v20, %v3366_v22  ;;  %v3588_v20 = vld [vmem:[#allocation11 + $0x2d8] sm:$0xf]  ;;  %v3717_v11 = vld [vmem:[#allocation11 + $0x10c] sm:$0xf0] }
 0x253   : > { %v1291_v27 = vrot.slane %v1290_v24, 4  ;;  %v5098_v28 = vsub.f32 %v5037_v36, %v1273_v25  ;;  %v5101_v29 = vsub.f32 %v5039_v37, %v1273_v25  ;;  %v1517_v37 = vand.u32 2147483647, %v1507_v26  ;;  %v3758_v25 = vld [vmem:[#allocation11 + $0x254] sm:$0xf0]  ;;  %2170 = vmatpush.bf16.msra.mxu2 %v3365_v21 }
 0x254   : > { %v3755_v26 = vld [vmem:[#allocation11 + $0x244] sm:$0xf]  ;;  %v3777_v21 = vld [vmem:[#allocation11 + $0x2ec] sm:$0xf0] }
 0x255   : > { %v1292_v30 = vadd.f32 %v1291_v27, %v1290_v24  ;;  %v1279_v31 = vmul.f32 %v5098_v28, %v5098_v28  ;;  %v1281_v32 = vmul.f32 %v5101_v29, %v5101_v29  ;;  %vm1518_vm5 = vcmp.eq.f32.partialorder %v1517_v37, 8.507059e+37  ;;  %v3508_v24 = vld [vmem:[#allocation11 + $0x240] sm:$0xf] }
 0x256   : > { %v1521_v53 = vsel %vm1518_vm5, %v1520_v48, %v1516_v51  ;;  %v3509_v27 = vor.u32 %v3758_v25, %v3508_v24  ;;  %v3318_v48 = vld [vmem:[#allocation11 + $0xd8] sm:$0xf0]  ;;  %v3746_v51 = vld [vmem:[#allocation11 + $0x1f4] sm:$0xf0]  ;;  %v3590_v25 = vld [vmem:[#allocation11 + $0x2f0] sm:$0xf0] }
 0x257   : > { %v1293_v33 = vrot.slane %v1292_v30, 2  ;;  %v1283_v34 = vadd.f32 %v1281_v32, %v1279_v31  ;;  %v1523_v54 = vmul.f32 %v1521_v53, %v1503_v10  ;;  %v3393_v10 = vor.u32 %v3725_v6, %v3390_v8  ;;  %v3340_v32 = vld [vmem:[#allocation11 + $0xf0] sm:$0xf]  ;;  %v3270_v8 = vld [vmem:[#allocation11 + $0x78] sm:$0xf0] }
 0x258   : > { %2186 = vmatpush.bf16.msra.mxu3 %v3509_v27  ;;  %v3321_v49 = vor.u32 %v3707_v46, %v3318_v48  ;;  %v3273_v9 = vor.u32 %v3695_v7, %v3270_v8  ;;  %v3774_v24 = vld [vmem:[#allocation11 + $0x2dc] sm:$0xf]  ;;  %v3683_v46 = vld [vmem:[#allocation11 + $0x4] sm:$0xf]  ;;  %v3396_v48 = vld [vmem:[#allocation11 + $0x158] sm:$0xf] }
 0x259   : > { %v1284_v38 = vrot.slane %v1283_v34, 4  ;;  %v1294_v39 = vadd.f32 %v1293_v33, %v1292_v30  ;;  %v1524_v55 = vpack.c.bf16 %v1523_v54, %v1523_v54  ;;  %v3510_v30 = vld [vmem:[#allocation11 + $0x258] sm:$0xf0]  ;;  %v3716_v33 = vld [vmem:[#allocation11 + $0x104] sm:$0xf0] }
 0x25a   : > { %v3513_v31 = vor.u32 %v3755_v26, %v3510_v30  ;;  %v3341_v35 = vor.u32 %v3716_v33, %v3340_v32  ;;  %v3462_v54 = vld [vmem:[#allocation11 + $0x1f8] sm:$0xf0]  ;;  %v3244_v26 = vld [vmem:[#allocation11 + $0x30] sm:$0xf]  ;;  %v3593_v30 = vor.u32 %v3774_v24, %v3590_v25  ;;  %v3689_v32 = vld [vmem:[#allocation11 + $0x34] sm:$0xf] }
 0x25b   : > { %v1285_v41 = vadd.f32 %v1284_v38, %v1283_v34  ;;  %v1295_v36 = vrot.slane %v1294_v39, 1  ;;  %v3713_v34 = vld [vmem:[#allocation11 + $0xf4] sm:$0xf]  ;;  %v3342_v38 = vld [vmem:[#allocation11 + $0x108] sm:$0xf0] }
 0x25c   : > { %2171 = vmatpush.bf16.msra.mxu2 %v3341_v35  ;;  %v3246_v33 = vld [vmem:[#allocation11 + $0x48] sm:$0xf0]  ;;  %v3759_v7 = vld [vmem:[#allocation11 + $0x25c] sm:$0xf0]  ;;  %v3750_v24 = vld [vmem:[#allocation11 + $0x21c] sm:$0xf] }
 0x25d   : > { %v1286_v44 = vrot.slane %v1285_v41, 2  ;;  %v1296_v45 = vadd.f32 %v1295_v36, %v1294_v39  ;;  %v3345_v39 = vor.u32 %v3713_v34, %v3342_v38  ;;  %v3749_v36 = vld [vmem:[#allocation11 + $0x214] sm:$0xf]  ;;  %v3249_v35 = vor.u32 %v3689_v32, %v3246_v33  ;;  %v3564_v38 = vld [vmem:[#allocation11 + $0x2a8] sm:$0xf] }
 0x25e   : > { %v3489_v37 = vor.u32 %v3749_v36, %v3486_v43  ;;  %v3566_v36 = vld [vmem:[#allocation11 + $0x2c0] sm:$0xf0]  ;;  %v3686_v43 = vld [vmem:[#allocation11 + $0x14] sm:$0xf0]  ;;  %v3756_v8 = vld [vmem:[#allocation11 + $0x24c] sm:$0xf] }
 0x25f   : > { %1333 = vmatmul.f32.vlgmr.msrb.gmra.mxu3 %v1296_v45  ;;  %1373 = vmatmul.f32.vlgmr.msra.gmra.mxu1 %v1296_v45  ;;  %v1287_v47 = vadd.f32 %v1286_v44, %v1285_v41  ;;  %v3752_v41 = vld [vmem:[#allocation11 + $0x224] sm:$0xf0]  ;;  %v3316_v44 = vld [vmem:[#allocation11 + $0xc0] sm:$0xf]  ;;  %v3710_v45 = vld [vmem:[#allocation11 + $0xd4] sm:$0xf0] }
 0x260   : > { %2211 = vmatpush.bf16.msra.mxu1 %v3585_v61  ;;  %v3485_v42 = vor.u32 %v3752_v41, %v3484_v40  ;;  %v3297_v61 = vor.u32 %v3701_v58, %v3294_v60  ;;  %v3768_v40 = vld [vmem:[#allocation11 + $0x2ac] sm:$0xf]  ;;  %v3541_v60 = vor.u32 %v3765_v57, %v3540_v56  ;;  %v3494_v25 = vld [vmem:[#allocation11 + $0x230] sm:$0xf0]  ;;  %v3747_v56 = vld [vmem:[#allocation11 + $0x1fc] sm:$0xf0] }
 0x261   : > { %v1288_v50 = vrot.slane %v1287_v47, 1  ;;  %v3744_v57 = vld [vmem:[#allocation11 + $0x1ec] sm:$0xf] }
 0x262   : > { %2187 = vmatpush.bf16.msra.mxu3 %v3485_v42  ;;  %v3220_v42 = vld [vmem:[#allocation11] sm:$0xf] }
 0x263   : > { %v1289_v52 = vadd.f32 %v1288_v50, %v1287_v47  ;;  %v3317_v47 = vor.u32 %v3710_v45, %v3316_v44  ;;  %v3460_v50 = vld [vmem:[#allocation11 + $0x1e0] sm:$0xf]  ;;  %v3569_v44 = vor.u32 %v3768_v40, %v3566_v36  ;;  %v3221_v45 = vor.u32 %v3686_v43, %v3220_v42  ;;  %v5116_v40 = vld [vmem:[#allocation8] sm:$0x3]  ;;  %v3324_v43 = vld [vmem:[#allocation11 + $0xc8] sm:$0xf] }
 0x264   : > { %2212 = vmatpush.bf16.msra.mxu1 %v3561_v3  ;;  %v3461_v53 = vor.u32 %v3746_v51, %v3460_v50  ;;  %v3268_v3 = vld [vmem:[#allocation11 + $0x60] sm:$0xf]  ;;  %v3729_v51 = vld [vmem:[#allocation11 + $0x16c] sm:$0xf0] }
 0x265   : > { %1313 = vmatmul.f32.vlgmr.msrb.gmra.mxu2 %v1289_v52  ;;  %1353 = vmatmul.f32.vlgmr.msra.gmra.mxu0 %v1289_v52  ;;  %v3743_v52 = vld [vmem:[#allocation11 + $0x1e4] sm:$0xf]  ;;  %v3269_v6 = vor.u32 %v3698_v4, %v3268_v3 }
 0x266   : > { %2197 = vmatpush.bf16.msra.mxu0 %v3393_v10  ;;  %2172 = vmatpush.bf16.msra.mxu2 %v3317_v47  ;;  %v3412_v10 = vld [vmem:[#allocation11 + $0x180] sm:$0xf]  ;;  %v3222_v47 = vld [vmem:[#allocation11 + $0x18] sm:$0xf0]  ;;  %v3374_v3 = vld [vmem:[#allocation11 + $0x140] sm:$0xf0] }
 0x267   : > { %3217 = vmatmul.msk.bf16.vlgmr.msrb.gmra.mxu1 %vm1555_vm6, %v1524_v55  ;;  %2188 = vmatpush.bf16.msra.mxu3 %v3461_v53  ;;  %v3413_v18 = vor.u32 %v3734_v13, %v3412_v10  ;;  %v3225_v50 = vor.u32 %v3683_v46, %v3222_v47  ;;  %v3348_v13 = vld [vmem:[#allocation11 + $0xf8] sm:$0xf]  ;;  %v3708_v47 = vld [vmem:[#allocation11 + $0xcc] sm:$0xf] }
 0x268   : > { %2213 = vmatpush.bf16.msra.mxu1 %v3537_v15 }
 0x26a   : > { %2198 = vmatpush.bf16.msra.mxu0 %v3369_v23  ;;  %2173 = vmatpush.bf16.msra.mxu2 %v3293_v59  ;;  %v3589_v23 = vor.u32 %v3777_v21, %v3588_v20  ;;  %v3492_v21 = vld [vmem:[#allocation11 + $0x218] sm:$0xf] }
 0x26b   : > { %2189 = vmatpush.bf16.msra.mxu3 %v3437_v1  ;;  %v3723_v1 = vld [vmem:[#allocation11 + $0x13c] sm:$0xf0] }
 0x26c   : > { %2214 = vmatpush.bf16.msra.mxu1 %v3513_v31  ;;  %v3692_v31 = vld [vmem:[#allocation11 + $0x44] sm:$0xf0] }
 0x26d   : > { %3216 = vmatmul.msk.bf16.vlgmr.msrb.gmra.mxu0 %vm1555_vm6, %v1524_v55  ;;  %v3465_v55 = vor.u32 %v3743_v52, %v3462_v54  ;;  %v3245_v34 = vor.u32 %v3692_v31, %v3244_v26  ;;  %v3726_v52 = vld [vmem:[#allocation11 + $0x15c] sm:$0xf]  ;;  %v3397_v54 = vor.u32 %v3729_v51, %v3396_v48  ;;  %v3468_v51 = vld [vmem:[#allocation11 + $0x1e8] sm:$0xf] }
 0x26e   : > { %2199 = vmatpush.bf16.msra.mxu0 %v3345_v39  ;;  %2174 = vmatpush.bf16.msra.mxu2 %v3269_v6  ;;  %v3771_v39 = vld [vmem:[#allocation11 + $0x2bc] sm:$0xf0]  ;;  %v3516_v6 = vld [vmem:[#allocation11 + $0x248] sm:$0xf] }
 0x26f   : > { %2190 = vmatpush.bf16.msra.mxu3 %v3413_v18  ;;  %v3565_v41 = vor.u32 %v3771_v39, %v3564_v38  ;;  %v3517_v14 = vor.u32 %v3759_v7, %v3516_v6  ;;  %v3350_v18 = vld [vmem:[#allocation11 + $0x110] sm:$0xf0]  ;;  %v3444_v6 = vld [vmem:[#allocation11 + $0x1b8] sm:$0xf]  ;;  %v3741_v7 = vld [vmem:[#allocation11 + $0x1cc] sm:$0xf0] }
 0x270   : > { %2215 = vmatpush.bf16.msra.mxu1 %v3489_v37 }
 0x272   : > { %2200 = vmatpush.bf16.msra.mxu0 %v3321_v49  ;;  %2175 = vmatpush.bf16.msra.mxu2 %v3245_v34 }
 0x273   : > { %2239 = vmatpush.bf16.msrb.mxu3 %v3589_v23  ;;  %v3349_v23 = vor.u32 %v3717_v11, %v3348_v13  ;;  %v3446_v13 = vld [vmem:[#allocation11 + $0x1d0] sm:$0xf0] }
 0x274   : > { %2216 = vmatpush.bf16.msra.mxu1 %v3465_v55  ;;  %v3398_v55 = vld [vmem:[#allocation11 + $0x170] sm:$0xf0] }
 0x275   : > { %v3401_v59 = vor.u32 %v3726_v52, %v3398_v55 }
 0x276   : > { %2201 = vmatpush.bf16.msra.mxu0 %v3297_v61  ;;  %v3762_v61 = vld [vmem:[#allocation11 + $0x27c] sm:$0xf]  ;;  %2176 = vmatpush.bf16.msra.mxu2 %v3221_v45 }
 0x277   : > { %2240 = vmatpush.bf16.msrb.mxu3 %v3565_v41  ;;  %v3545_v0 = vor.u32 %v3762_v61, %v3542_v62  ;;  %v5121_v41 = vld [vmem:[%s5552_s5] sm:$0x3]  ;;  %v3470_v61 = vld [vmem:[#allocation11 + $0x200] sm:$0xf0]  ;;  %v3300_v62 = vld [vmem:[#allocation11 + $0x98] sm:$0xf] }
 0x278   : > { %2217 = vmatpush.bf16.msra.mxu1 %v3441_v5  ;;  %v3373_v5 = vor.u32 %v3723_v1, %v3372_v63  ;;  %v3705_v63 = vld [vmem:[#allocation11 + $0xac] sm:$0xf0]  ;;  %v1415_v11 = vperm.slane %v5121_v41, 0 }
 0x27a   : > { %2202 = vmatpush.bf16.msra.mxu0 %v3273_v9  ;;  %2225 = vmatpush.bf16.msrb.mxu2 %v3397_v54  ;;  %v3518_v9 = vld [vmem:[#allocation11 + $0x260] sm:$0xf0]  ;;  %v1416_v54 = vperm.slane %v5121_v41, 1 }
 0x27b   : > { %2241 = vmatpush.bf16.msrb.mxu3 %v3541_v60  ;;  %v3521_v20 = vor.u32 %v3756_v8, %v3518_v9  ;;  %v3469_v60 = vor.u32 %v3747_v56, %v3468_v51  ;;  %v3738_v8 = vld [vmem:[#allocation11 + $0x1bc] sm:$0xf]  ;;  %v3228_v51 = vld [vmem:[#allocation11 + $0x8] sm:$0xf] }
 0x27c   : > { %2218 = vmatpush.bf16.msra.mxu1 %v3417_v19 }
 0x27e   : > { %2203 = vmatpush.bf16.msra.mxu0 %v3249_v35  ;;  %2226 = vmatpush.bf16.msrb.mxu2 %v3373_v5  ;;  %v3497_v35 = vor.u32 %v3750_v24, %v3494_v25  ;;  %v3696_v25 = vld [vmem:[#allocation11 + $0x6c] sm:$0xf] }
 0x27f   : > { %2242 = vmatpush.bf16.msrb.mxu3 %v3517_v14  ;;  %v3445_v14 = vor.u32 %v3741_v7, %v3444_v6 }
 0x280   : > { %2267 = vmatpush.bf16.msrb.mxu1 %v3593_v30 }
 0x282   : > { %2204 = vmatpush.bf16.msra.mxu0 %v3225_v50  ;;  %2227 = vmatpush.bf16.msrb.mxu2 %v3349_v23  ;;  %v3326_v50 = vld [vmem:[#allocation11 + $0xe0] sm:$0xf0] }
 0x283   : > { %v3329_v55 = vor.u32 %v3708_v47, %v3326_v50 }
 0x284   : > { %2268 = vmatpush.bf16.msrb.mxu1 %v3569_v44 }
 0x286   : > { %2253 = vmatpush.bf16.msrb.mxu0 %v3401_v59 }
 0x288   : > { %2269 = vmatpush.bf16.msrb.mxu1 %v3545_v0 }
 0x28c   : > { %2270 = vmatpush.bf16.msrb.mxu1 %v3521_v20 }
 0x290   : > { %2271 = vmatpush.bf16.msrb.mxu1 %v3497_v35 }
 0x2dc   : > { %v1374_v22 = vpop.f32.mrf.mxu1 }
 0x2e2   : > { %v1354_v12 = vpop.f32.mrf.mxu0  ;;  %v1334_v53 = vpop.f32.mrf.mxu3 }
 0x2e3   : > { %v1355_v15 = vadd.f32 1e-05, %v1354_v12  ;;  %v3377_v12 = vor.u32 %v3720_v2, %v3374_v3  ;;  %v3302_v2 = vld [vmem:[#allocation11 + $0xb0] sm:$0xf0] }
 0x2e5   : > { %v5107_v27 = vadd.f32 %v1374_v22, %v1355_v15  ;;  %v3714_v15 = vld [vmem:[#allocation11 + $0xfc] sm:$0xf]  ;;  %v3753_v22 = vld [vmem:[#allocation11 + $0x22c] sm:$0xf0]  ;;  %2254 = vmatpush.bf16.msrb.mxu0 %v3377_v12 }
 0x2e6   : > { %v3353_v30 = vor.u32 %v3714_v15, %v3350_v18  ;;  %v3493_v32 = vor.u32 %v3753_v22, %v3492_v21  ;;  %v3449_v15 = vor.u32 %v3738_v8, %v3446_v13  ;;  %v3276_v18 = vld [vmem:[#allocation11 + $0x68] sm:$0xf] }
 0x2e7   : > { %3944 = vrsqrt.f32 %v5107_v27  ;;  %vm1393_vm8 = vweird.f32 %v5107_v27 }
 0x2e8   : > { %v1314_v37 = vpop.f32.mrf.mxu2  ;;  %2243 = vmatpush.bf16.msrb.mxu3 %v3493_v32  ;;  %v3420_v32 = vld [vmem:[#allocation11 + $0x188] sm:$0xf] }
 0x2e9   : > { %v1315_v49 = vadd.f32 1e-05, %v1314_v37  ;;  %2255 = vmatpush.bf16.msrb.mxu0 %v3353_v30  ;;  %v3711_v37 = vld [vmem:[#allocation11 + $0xdc] sm:$0xf0] }
 0x2ea   : > { %v5123_v45 = vpop.f32.mrf.mxu0  ;;  %v3325_v46 = vor.u32 %v3711_v37, %v3324_v43  ;;  %v3693_v43 = vld [vmem:[#allocation11 + $0x4c] sm:$0xf0] }
 0x2eb   : > { %v5110_v58 = vadd.f32 %v1334_v53, %v1315_v49  ;;  %v5126_v49 = vpop.f32.mrf.mxu1 }
 0x2ec   : > { %2228 = vmatpush.bf16.msrb.mxu2 %v3325_v46  ;;  %2244 = vmatpush.bf16.msrb.mxu3 %v3469_v60 }
 0x2ed   : > { %v3945_v4 = vpop.eup %3944  ;;  %3946 = vrsqrt.f32 %v5110_v58  ;;  %vm1383_vm11 = vweird.f32 %v5110_v58  ;;  %2256 = vmatpush.bf16.msrb.mxu0 %v3329_v55 }
 0x2ee   : > { %v1388_v10 = vmul.f32 %v3945_v4, %v5107_v27  ;;  %vm1394_vm7 = vweird.f32 %v3945_v4  ;;  %v1406_v27 = vperm.slane %v5116_v40, 1 }
 0x2ef   : > { %vm1395_vm9 = vmor %vm1393_vm8, %vm1394_vm7 }
 0x2f0   : > { %v1389_v19 = vmul.f32 %v3945_v4, %v1388_v10  ;;  %v1405_v10 = vperm.slane %v5116_v40, 0  ;;  %2245 = vmatpush.bf16.msrb.mxu3 %v3445_v14 }
 0x2f2   : > { %v1390_v26 = vmul.f32 0.5, %v1389_v19  ;;  %v3699_v19 = vld [vmem:[#allocation11 + $0x7c] sm:$0xf0]  ;;  %v1570_v24 = vpop.f32.mrf.mxu0 }
 0x2f3   : > { %v3947_v31 = vpop.eup %3946  ;;  %v3277_v30 = vor.u32 %v3699_v19, %v3276_v18 }
 0x2f4   : > { %v1391_v33 = vsub.f32 1.5, %v1390_v26  ;;  %v1378_v34 = vmul.f32 %v3947_v31, %v5110_v58  ;;  %vm1384_vm10 = vweird.f32 %v3947_v31  ;;  %v1583_v26 = vpop.f32.mrf.mxu1 }
 0x2f5   : > { %vm1385_vm12 = vmor %vm1383_vm11, %vm1384_vm10  ;;  %v3526_v26 = vld [vmem:[#allocation11 + $0x268] sm:$0xf0] }
 0x2f6   : > { %v1392_v38 = vmul.f32 %v3945_v4, %v1391_v33  ;;  %v1379_v39 = vmul.f32 %v3947_v31, %v1378_v34  ;;  %v3735_v33 = vld [vmem:[#allocation11 + $0x19c] sm:$0xf0] }
 0x2f8   : > { %v1396_v36 = vsel %vm1395_vm9, %v3945_v4, %v1392_v38  ;;  %v1380_v42 = vmul.f32 0.5, %v1379_v39  ;;  %v3301_v4 = vor.u32 %v3705_v63, %v3300_v62  ;;  %v3732_v38 = vld [vmem:[#allocation11 + $0x18c] sm:$0xf]  ;;  %v3421_v39 = vor.u32 %v3735_v33, %v3420_v32 }
 0x2f9   : > { %v1398_v44 = vperm.slane %v1396_v36, 0 }
 0x2fa   : > { %v1381_v48 = vsub.f32 1.5, %v1380_v42  ;;  %2229 = vmatpush.bf16.msrb.mxu2 %v3301_v4  ;;  %v3252_v42 = vld [vmem:[#allocation11 + $0x38] sm:$0xf]  ;;  %2246 = vmatpush.bf16.msrb.mxu3 %v3421_v39 }
 0x2fb   : > { %v1400_v52 = vmul.f32 %v1398_v44, %v5088_v16  ;;  %v1402_v53 = vmul.f32 %v1398_v44, %v5091_v17  ;;  %v3473_v16 = vor.u32 %v3744_v57, %v3470_v61  ;;  %v3702_v17 = vld [vmem:[#allocation11 + $0x9c] sm:$0xf]  ;;  %v3253_v37 = vor.u32 %v3693_v43, %v3252_v42  ;;  %v3230_v57 = vld [vmem:[#allocation11 + $0x20] sm:$0xf0]  ;;  %v1529_v61 = vld [vmem:[%s5629_s14] sm:$0x3] }
 0x2fc   : > { %v1382_v59 = vmul.f32 %v3947_v31, %v1381_v48  ;;  %v3305_v5 = vor.u32 %v3702_v17, %v3302_v2  ;;  %v3690_v44 = vld [vmem:[#allocation11 + $0x3c] sm:$0xf]  ;;  %v1551_v63 = vperm.slane %v1529_v61, 0  ;;  %s4397_s14 = sshra.s32 %s2877_s13, 4  ;;  %s4398_s14 = int_to_ptr.hbm [resolvable:$true] %s4397_s14 }
 0x2fd   : > { %v1410_v0 = vmul.f32 %v1406_v27, %v1400_v52  ;;  %v1412_v1 = vmul.f32 %v1406_v27, %v1402_v53  ;;  %2272 = vmatpush.bf16.msrb.mxu1 %v3473_v16  ;;  %v3254_v27 = vld [vmem:[#allocation11 + $0x50] sm:$0xf0]  ;;  %v3687_v52 = vld [vmem:[#allocation11 + $0x1c] sm:$0xf0]  ;;  %v3684_v53 = vld [vmem:[#allocation11 + $0xc] sm:$0xf]  ;;  %p4404_p7 = scmp.lt.s32.totalorder %s4398_s14, %s5639_s23 }
 0x2fe   : > { %v1386_v3 = vsel %vm1385_vm12, %v3947_v31, %v1382_v59  ;;  %2257 = vmatpush.bf16.msrb.mxu0 %v3305_v5  ;;  %v3278_v31 = vld [vmem:[#allocation11 + $0x80] sm:$0xf0]  ;;  %2230 = vmatpush.bf16.msrb.mxu2 %v3277_v30  ;;  %v3257_v48 = vor.u32 %v3690_v44, %v3254_v27  ;;  %v3229_v56 = vor.u32 %v3687_v52, %v3228_v51  ;;  %v3598_v52 = vld [vmem:[#allocation11 + $0x2f8] sm:$0xf0]  ;;  %s4399_s11 = scalar_lea.hbm %s4398_s14, 32 }
 0x2ff   : > { %v1397_v58 = vperm.slane %v1386_v3, 0  ;;  %v5134_v12 = vadd.f32 %v1416_v54, %v1410_v0  ;;  %v5136_v9 = vadd.f32 %v1416_v54, %v1412_v1  ;;  %v3233_v60 = vor.u32 %v3684_v53, %v3230_v57  ;;  %v3775_v51 = vld [vmem:[#allocation11 + $0x2e4] sm:$0xf]  ;;  %p4400_p1 = scmp.ne.s32.totalorder %s4398_s14, %s4399_s11  ;;  %p4405_p9 = scmp.lt.s32.totalorder %s4403_s29, %s4399_s11 }
 0x300   : > { %v1552_v0 = vperm.slane %v1529_v61, 1  ;;  %v5159_v4 = vadd.f32 %v5123_v45, %v1551_v63  ;;  %v3601_v61 = vor.u32 %v3775_v51, %v3598_v52  ;;  %v3380_v45 = vld [vmem:[#allocation11 + $0x130] sm:$0xf]  ;;  %v3748_v52 = vld [vmem:[#allocation11 + $0x204] sm:$0xf0] }
 0x301   : > { %v1399_v20 = vmul.f32 %v1397_v58, %v5098_v28  ;;  %v1401_v21 = vmul.f32 %v1397_v58, %v5101_v29  ;;  %v3196_v22 = vmul.f32 -1.442695, %v5134_v12  ;;  %v3198_v23 = vmul.f32 -1.442695, %v5136_v9  ;;  %2273 = vmatpush.bf16.msrb.mxu1 %v3449_v15  ;;  %v3422_v29 = vld [vmem:[#allocation11 + $0x1a0] sm:$0xf0]  ;;  %p4401_p3 = pnand %p4400_p1, %p4694_p0  ;;  %p4406_p5 = por %p4405_p9, %p4404_p7 }
 0x302   : > { %v3281_v28 = vor.u32 %v3696_v25, %v3278_v31  ;;  %v3425_v40 = vor.u32 %v3732_v38, %v3422_v29  ;;  %2231 = vmatpush.bf16.msrb.mxu2 %v3253_v37  ;;  %v1582_v5 = vadd.f32 %v5126_v49, %v1552_v0  ;;  %v1585_v14 = vperm.slane %v5159_v4, 0  ;;  %v3476_v51 = vld [vmem:[#allocation11 + $0x1f0] sm:$0xf] }
 0x303   : > { %v1409_v34 = vmul.f32 %v1405_v10, %v1399_v20  ;;  %v1411_v35 = vmul.f32 %v1405_v10, %v1401_v21  ;;  %3948 = vpow2.f32 %v3196_v22  ;;  %p4402_p13 = pneg %p4401_p3 }
 0x304   : > { %3950 = vpow2.f32 %v3198_v23  ;;  %2258 = vmatpush.bf16.msrb.mxu0 %v3281_v28  ;;  %v1586_v18 = vperm.slane %v1582_v5, 0 }
 0x305   : > { %v5143_v41 = vadd.f32 %v1415_v11, %v1409_v34  ;;  %v5145_v36 = vadd.f32 %v1415_v11, %v1411_v35  ;;  %2274 = vmatpush.bf16.msrb.mxu1 %v3425_v40  ;;  %v3596_v35 = vld [vmem:[#allocation11 + $0x2e0] sm:$0xf]  ;;  %v3778_v40 = vld [vmem:[#allocation11 + $0x2f4] sm:$0xf0]  ;;  %p4407_p8 = pnand %p4406_p5, %p4402_p13 }
 0x306   : > { %2232 = vmatpush.bf16.msrb.mxu2 %v3229_v56 }
 0x307   : > { %v3195_v46 = vmul.f32 -1.442695, %v5143_v41  ;;  %v3197_v47 = vmul.f32 -1.442695, %v5145_v36 }
 0x308   : > { %2259 = vmatpush.bf16.msrb.mxu0 %v3257_v48 }
 0x309   : > { %v3949_v50 = vpop.eup %3948  ;;  %3952 = vpow2.f32 %v3195_v46 }
 0x30a   : > { %v3951_v54 = vpop.eup %3950  ;;  %3954 = vpow2.f32 %v3197_v47  ;;  %v1436_v55 = vadd.f32 1.0, %v3949_v50  ;;  %v3597_v50 = vor.u32 %v3778_v40, %v3596_v35  ;;  %v3358_v35 = vld [vmem:[#allocation11 + $0x118] sm:$0xf0]  ;;  %v3751_v40 = vld [vmem:[#allocation11 + $0x224] sm:$0xf] }
 0x30b   : > { %v1438_v59 = vadd.f32 1.0, %v3951_v54 }
 0x30c   : > { %3956 = vrcp.f32 %v1436_v55  ;;  %2260 = vmatpush.bf16.msrb.mxu0 %v3233_v60  ;;  %v1463_v7 = vand.u32 2147483647, %v1436_v55  ;;  %v1465_v8 = vand.u32 2147483648, %v1436_v55  ;;  %vm1459_vm13 = vweird.f32 %v1436_v55 }
 0x30d   : > { %3958 = vrcp.f32 %v1438_v59  ;;  %v1493_v13 = vand.u32 2147483647, %v1438_v59  ;;  %v1495_v11 = vand.u32 2147483648, %v1438_v59  ;;  %vm1489_vm2 = vweird.f32 %v1438_v59 }
 0x30e   : > { %vm5163_vm15 = vcmp.eq.f32.partialorder %v1463_v7, 8.507059e+37  ;;  %v1466_v22 = vor.u32 1.1754944e-38, %v1465_v8  ;;  %v3727_v7 = vld [vmem:[#allocation11 + $0x164] sm:$0xf]  ;;  %v3406_v8 = vld [vmem:[#allocation11 + $0x178] sm:$0xf0] }
 0x30f   : > { %v3953_v62 = vpop.eup %3952  ;;  %vm5169_vm4 = vcmp.eq.f32.partialorder %v1493_v13, 8.507059e+37  ;;  %v1496_v30 = vor.u32 1.1754944e-38, %v1495_v11  ;;  %v3548_v13 = vld [vmem:[#allocation11 + $0x280] sm:$0xf]  ;;  %v3763_v11 = vld [vmem:[#allocation11 + $0x284] sm:$0xf] }
 0x310   : > { %v3955_v1 = vpop.eup %3954  ;;  %v5152_v16 = vadd.f32 1.0, %v3953_v62 }
 0x311   : > { %v5154_v17 = vadd.f32 1.0, %v3955_v1  ;;  %v3772_v1 = vld [vmem:[#allocation11 + $0x2c4] sm:$0xf0] }
 0x312   : > { %v3957_v2 = vpop.eup %3956  ;;  %3960 = vrcp.f32 %v5152_v16  ;;  %v1448_v32 = vand.u32 2147483647, %v5152_v16  ;;  %v1450_v33 = vand.u32 2147483648, %v5152_v16  ;;  %vm1444_vm9 = vweird.f32 %v5152_v16 }
 0x313   : > { %v3959_v3 = vpop.eup %3958  ;;  %3962 = vrcp.f32 %v5154_v17  ;;  %v1455_v6 = vmul.f32 %v3957_v2, %v1436_v55  ;;  %vm1460_vm14 = vweird.f32 %v3957_v2  ;;  %v1478_v38 = vand.u32 2147483647, %v5154_v17 }
 0x314   : > { %v1485_v58 = vmul.f32 %v3959_v3, %v1438_v59  ;;  %vm1490_vm3 = vweird.f32 %v3959_v3  ;;  %vm1461_vm5 = vmor %vm1459_vm13, %vm1460_vm14  ;;  %v1480_v29 = vand.u32 2147483648, %v5154_v17  ;;  %v1451_v53 = vor.u32 1.1754944e-38, %v1450_v33  ;;  %v3718_v33 = vld [vmem:[#allocation11 + $0x114] sm:$0xf0] }
 0x315   : > { %v1456_v10 = vsub.f32 1.0, %v1455_v6  ;;  %vm1491_vm6 = vmor %vm1489_vm2, %vm1490_vm3  ;;  %vm1474_vm11 = vweird.f32 %v5154_v17  ;;  %vm1449_vm12 = vcmp.eq.f32.partialorder %v1448_v32, 8.507059e+37  ;;  %vm1479_vm14 = vcmp.eq.f32.partialorder %v1478_v38, 8.507059e+37  ;;  %v3730_v6 = vld [vmem:[#allocation11 + $0x174] sm:$0xf0] }
 0x316   : > { %v1486_v15 = vsub.f32 1.0, %v1485_v58  ;;  %v1481_v57 = vor.u32 1.1754944e-38, %v1480_v29  ;;  %v3356_v32 = vld [vmem:[#allocation11 + $0x100] sm:$0xf] }
 0x317   : > { %v1457_v20 = vmul.f32 %v3957_v2, %v1456_v10  ;;  %v3500_v29 = vld [vmem:[#allocation11 + $0x220] sm:$0xf] }
 0x318   : > { %v3961_v19 = vpop.eup %3960  ;;  %v1487_v23 = vmul.f32 %v3959_v3, %v1486_v15  ;;  %v3550_v15 = vld [vmem:[#allocation11 + $0x298] sm:$0xf0] }
 0x319   : > { %v3963_v49 = vpop.eup %3962  ;;  %v1440_v21 = vmul.f32 %v3961_v19, %v5152_v16  ;;  %v1458_v25 = vadd.f32 %v3957_v2, %v1457_v20  ;;  %vm1445_vm7 = vweird.f32 %v3961_v19  ;;  %v3769_v16 = vld [vmem:[#allocation11 + $0x2b4] sm:$0xf]  ;;  %v3409_v20 = vor.u32 %v3727_v7, %v3406_v8  ;;  %v3286_v7 = vld [vmem:[#allocation11 + $0x88] sm:$0xf0] }
 0x31a   : > { %v1470_v24 = vmul.f32 %v3963_v49, %v5154_v17  ;;  %v1488_v34 = vadd.f32 %v3959_v3, %v1487_v23  ;;  %vm1475_vm8 = vweird.f32 %v3963_v49  ;;  %vm1446_vm10 = vmor %vm1444_vm9, %vm1445_vm7  ;;  %v3574_v17 = vld [vmem:[#allocation11 + $0x2c8] sm:$0xf0]  ;;  %v3524_v23 = vld [vmem:[#allocation11 + $0x250] sm:$0xf] }
 0x31b   : > { %v1441_v31 = vsub.f32 1.0, %v1440_v21  ;;  %v1462_v39 = vsel %vm1461_vm5, %v3957_v2, %v1458_v25  ;;  %vm1476_vm13 = vmor %vm1474_vm11, %vm1475_vm8  ;;  %v3577_v10 = vor.u32 %v3769_v16, %v3574_v17  ;;  %v3721_v21 = vld [vmem:[#allocation11 + $0x134] sm:$0xf]  ;;  %v3454_v16 = vld [vmem:[#allocation11 + $0x1d8] sm:$0xf0] }
 0x31c   : > { %v1471_v28 = vsub.f32 1.0, %v1470_v24  ;;  %v1467_v43 = vsel %vm5163_vm15, %v1466_v22, %v1462_v39  ;;  %v1492_v37 = vsel %vm1491_vm6, %v3959_v3, %v1488_v34  ;;  %v3404_v3 = vld [vmem:[#allocation11 + $0x160] sm:$0xf]  ;;  %v3382_v22 = vld [vmem:[#allocation11 + $0x148] sm:$0xf0] }
 0x31d   : > { %v1442_v42 = vmul.f32 %v3961_v19, %v1441_v31  ;;  %v1497_v27 = vsel %vm5169_vm4, %v1496_v30, %v1492_v37  ;;  %v1500_v46 = vmul.f32 %v1467_v43, %v5134_v12  ;;  %v3760_v24 = vld [vmem:[#allocation11 + $0x264] sm:$0xf0]  ;;  %v3757_v25 = vld [vmem:[#allocation11 + $0x254] sm:$0xf]  ;;  %v3385_v31 = vor.u32 %v3721_v21, %v3382_v22  ;;  %v3715_v34 = vld [vmem:[#allocation11 + $0x104] sm:$0xf] }
 0x31e   : > { %v1472_v44 = vmul.f32 %v3963_v49, %v1471_v28  ;;  %v1502_v48 = vmul.f32 %v1497_v27, %v5136_v9  ;;  %v3572_v9 = vld [vmem:[#allocation11 + $0x2b0] sm:$0xf]  ;;  %v3525_v28 = vor.u32 %v3760_v24, %v3524_v23  ;;  %v3529_v38 = vor.u32 %v3757_v25, %v3526_v26  ;;  %v3754_v39 = vld [vmem:[#allocation11 + $0x234] sm:$0xf0]  ;;  %v3712_v27 = vld [vmem:[#allocation11 + $0xe4] sm:$0xf0] }
 0x31f   : > { %v1443_v47 = vadd.f32 %v3961_v19, %v1442_v42  ;;  %v1588_v55 = vadd.f32 %v1586_v18, %v1500_v46  ;;  %v3573_v58 = vor.u32 %v3772_v1, %v3572_v9  ;;  %v3502_v42 = vld [vmem:[#allocation11 + $0x238] sm:$0xf0]  ;;  %v3357_v43 = vor.u32 %v3718_v33, %v3356_v32  ;;  %v3709_v46 = vld [vmem:[#allocation11 + $0xd4] sm:$0xf]  ;;  %v3739_v1 = vld [vmem:[#allocation11 + $0x1c4] sm:$0xf] }
 0x320   : > { %v1473_v54 = vadd.f32 %v3963_v49, %v1472_v44  ;;  %v1590_v12 = vadd.f32 %v1586_v18, %v1502_v48  ;;  %v3361_v37 = vor.u32 %v3715_v34, %v3358_v35  ;;  %v3332_v44 = vld [vmem:[#allocation11 + $0xd0] sm:$0xf]  ;;  %v3501_v48 = vor.u32 %v3754_v39, %v3500_v29  ;;  %v3688_v24 = vld [vmem:[#allocation11 + $0x24] sm:$0xf0]  ;;  %v3685_v25 = vld [vmem:[#allocation11 + $0x14] sm:$0xf] }
 0x321   : > { %v1447_v56 = vsel %vm1446_vm10, %v3961_v19, %v1443_v47  ;;  %v3405_v19 = vor.u32 %v3730_v6, %v3404_v3  ;;  %v3334_v47 = vld [vmem:[#allocation11 + $0xe8] sm:$0xf0]  ;;  %v3284_v3 = vld [vmem:[#allocation11 + $0x70] sm:$0xf]  ;;  %v3697_v6 = vld [vmem:[#allocation11 + $0x74] sm:$0xf] }
 0x322   : > { %v1452_v59 = vsel %vm1449_vm12, %v1451_v53, %v1447_v56  ;;  %v1477_v60 = vsel %vm1476_vm13, %v3963_v49, %v1473_v54  ;;  %v5191_v0 = vpack.c.bf16 %v1590_v12, %v1588_v55  ;;  %v3724_v49 = vld [vmem:[#allocation11 + $0x144] sm:$0xf0]  ;;  %v3745_v53 = vld [vmem:[#allocation11 + $0x1f4] sm:$0xf]  ;;  %v3478_v54 = vld [vmem:[#allocation11 + $0x208] sm:$0xf0]  ;;  %v3333_v55 = vor.u32 %v3712_v27, %v3332_v44 }
 0x323   : > { %v1482_v62 = vsel %vm1479_vm14, %v1481_v57, %v1477_v60  ;;  %v1499_v63 = vmul.f32 %v1452_v59, %v5143_v41  ;;  %v3381_v30 = vor.u32 %v3724_v49, %v3380_v45  ;;  %v3337_v56 = vor.u32 %v3709_v46, %v3334_v47  ;;  %v3308_v57 = vld [vmem:[#allocation11 + $0xa0] sm:$0xf]  ;;  %v3706_v12 = vld [vmem:[#allocation11 + $0xb4] sm:$0xf0]  ;;  %v3703_v59 = vld [vmem:[#allocation11 + $0xa4] sm:$0xf] }
 0x324   : > { %v1501_v2 = vmul.f32 %v1482_v62, %v5145_v36  ;;  %2191 = vmatmul.bf16.vlgmr.msra.gmra.mxu3 %v5191_v0  ;;  %2219 = vmatmul.bf16.vlgmr.msra.gmra.mxu1 %v5191_v0  ;;  %v3766_v36 = vld [vmem:[#allocation11 + $0x294] sm:$0xf0]  ;;  %v3310_v60 = vld [vmem:[#allocation11 + $0xb8] sm:$0xf0]  ;;  %v3481_v9 = vor.u32 %v3745_v53, %v3478_v54  ;;  %v3452_v62 = vld [vmem:[#allocation11 + $0x1c0] sm:$0xf]  ;;  %v3309_v17 = vor.u32 %v3706_v12, %v3308_v57 }
 0x325   : > { %v1587_v5 = vadd.f32 %v1585_v14, %v1499_v63  ;;  %2295 = vmatpush.bf16.msra.mxu3 %v3597_v50  ;;  %2323 = vmatpush.bf16.msra.mxu1 %v3601_v61  ;;  %v3549_v4 = vor.u32 %v3766_v36, %v3548_v13  ;;  %v3505_v50 = vor.u32 %v3751_v40, %v3502_v42  ;;  %v3742_v63 = vld [vmem:[#allocation11 + $0x1d4] sm:$0xf0]  ;;  %v3733_v13 = vld [vmem:[#allocation11 + $0x194] sm:$0xf]  ;;  %v3430_v36 = vld [vmem:[#allocation11 + $0x1a8] sm:$0xf0] }
 0x326   : > { %v1589_v41 = vadd.f32 %v1585_v14, %v1501_v2  ;;  %v3553_v14 = vor.u32 %v3763_v11, %v3550_v15  ;;  %v3477_v61 = vor.u32 %v3748_v52, %v3476_v51  ;;  %v3313_v2 = vor.u32 %v3703_v59, %v3310_v60  ;;  %v3691_v45 = vld [vmem:[#allocation11 + $0x44] sm:$0xf]  ;;  %v3262_v49 = vld [vmem:[#allocation11 + $0x58] sm:$0xf0]  ;;  %v3236_v23 = vld [vmem:[#allocation11 + $0x10] sm:$0xf] }
 0x327   : > { %v3453_v8 = vor.u32 %v3742_v63, %v3452_v62  ;;  %v3289_v15 = vor.u32 %v3697_v6, %v3286_v7  ;;  %v3433_v22 = vor.u32 %v3733_v13, %v3430_v36  ;;  %v3238_v26 = vld [vmem:[#allocation11 + $0x28] sm:$0xf0]  ;;  %v5213_v44 = vld [vmem:[#allocation19 + $0x1f0] sm:$0xff]  ;;  %v5228_v53 = vld [vmem:[#allocation19 + $0x1c0] sm:$0xff] }
 0x328   : > { %v5200_v18 = vpack.c.bf16 %v1589_v41, %v1587_v5  ;;  %v3700_v5 = vld [vmem:[#allocation11 + $0x84] sm:$0xf0]  ;;  %v3457_v41 = vor.u32 %v3739_v1, %v3454_v16  ;;  %v5225_v52 = vld [vmem:[#allocation19 + $0xf0] sm:$0xff] }
 0x329   : > { %2296 = vmatpush.bf16.msra.mxu3 %v3573_v58  ;;  %2324 = vmatpush.bf16.msra.mxu1 %v3577_v10  ;;  %v3428_v58 = vld [vmem:[#allocation11 + $0x190] sm:$0xf]  ;;  %v3736_v10 = vld [vmem:[#allocation11 + $0x1a4] sm:$0xf0]  ;;  %v3285_v11 = vor.u32 %v3700_v5, %v3284_v3 }
 0x32a   : > { %2177 = vmatmul.bf16.vlgmr.msra.gmra.mxu2 %v5200_v18  ;;  %2205 = vmatmul.bf16.vlgmr.msra.gmra.mxu0 %v5200_v18  ;;  %v3429_v21 = vor.u32 %v3736_v10, %v3428_v58  ;;  %v5234_v57 = vld [vmem:[#allocation19 + $0xe0] sm:$0xff]  ;;  %v5237_v12 = vld [vmem:[#allocation19 + $0x1b0] sm:$0xff] }
 0x32b   : > { %2281 = vmatpush.bf16.msra.mxu2 %v3405_v19  ;;  %2309 = vmatpush.bf16.msra.mxu0 %v3409_v20  ;;  %v3260_v19 = vld [vmem:[#allocation11 + $0x40] sm:$0xf]  ;;  %v3694_v20 = vld [vmem:[#allocation11 + $0x54] sm:$0xf0] }
 0x32c   : > { %v5248_v63 = vld [vmem:[#allocation19 + $0xc0] sm:$0xff]  ;;  %v5251_v1 = vld [vmem:[#allocation19 + $0x190] sm:$0xff] }
 0x32d   : > { %2297 = vmatpush.bf16.msra.mxu3 %v3549_v4  ;;  %2325 = vmatpush.bf16.msra.mxu1 %v3553_v14  ;;  %v3261_v4 = vor.u32 %v3694_v20, %v3260_v19  ;;  %v3265_v14 = vor.u32 %v3691_v45, %v3262_v49  ;;  %v5255_v16 = vld [vmem:[#allocation19 + $0xb0] sm:$0xff]  ;;  %v5263_v6 = vld [vmem:[#allocation19 + $0xa0] sm:$0xff] }
 0x32e   : > { %v5266_v7 = vld [vmem:[#allocation19 + $0x170] sm:$0xff]  ;;  %v5272_v58 = vld [vmem:[#allocation19 + $0x160] sm:$0xff] }
 0x32f   : > { %2282 = vmatpush.bf16.msra.mxu2 %v3381_v30  ;;  %2310 = vmatpush.bf16.msra.mxu0 %v3385_v31  ;;  %v3237_v30 = vor.u32 %v3688_v24, %v3236_v23  ;;  %v3241_v31 = vor.u32 %v3685_v25, %v3238_v26  ;;  %v5275_v10 = vld [vmem:[#allocation19 + $0x80] sm:$0xff]  ;;  %v5278_v13 = vld [vmem:[#allocation19 + $0x150] sm:$0xff] }
 0x330   : > { %v5287_v20 = vld [vmem:[#allocation19 + $0x60] sm:$0xff]  ;;  %v5290_v45 = vld [vmem:[#allocation19 + $0x130] sm:$0xff] }
 0x331   : > { %2298 = vmatpush.bf16.msra.mxu3 %v3525_v28  ;;  %2326 = vmatpush.bf16.msra.mxu1 %v3529_v38  ;;  %v5299_v24 = vld [vmem:[#allocation19 + $0x40] sm:$0xff]  ;;  %v5302_v25 = vld [vmem:[#allocation19 + $0x110] sm:$0xff] }
 0x332   : > { %v5305_v26 = vld [vmem:[#allocation19 + $0x30] sm:$0xff] }
 0x333   : > { %2283 = vmatpush.bf16.msra.mxu2 %v3357_v43  ;;  %2311 = vmatpush.bf16.msra.mxu0 %v3361_v37 }
 0x334   : > { %2247 = vmatmul.bf16.vlgmr.msrb.gmra.mxu3 %v5191_v0  ;;  %2275 = vmatmul.bf16.vlgmr.msrb.gmra.mxu1 %v5191_v0 }
 0x335   : > { %2299 = vmatpush.bf16.msra.mxu3 %v3501_v48  ;;  %2327 = vmatpush.bf16.msra.mxu1 %v3505_v50  ;;  %v5218_v48 = vld [vmem:[#allocation19 + $0x1e0] sm:$0xff]  ;;  %v5221_v50 = vld [vmem:[#allocation19 + $0x1d0] sm:$0xff] }
 0x337   : > { %2284 = vmatpush.bf16.msra.mxu2 %v3333_v55  ;;  %2312 = vmatpush.bf16.msra.mxu0 %v3337_v56  ;;  %v3990_v55 = vld [vmem:[#allocation16 + $0x8] sm:$0xff] }
 0x339   : > { %2300 = vmatpush.bf16.msra.mxu3 %v3477_v61  ;;  %2328 = vmatpush.bf16.msra.mxu1 %v3481_v9  ;;  %v5242_v61 = vld [vmem:[#allocation19 + $0xd0] sm:$0xff]  ;;  %v5245_v9 = vld [vmem:[#allocation19 + $0x1a0] sm:$0xff] }
 0x33a   : > { %2233 = vmatmul.bf16.vlgmr.msrb.gmra.mxu2 %v5200_v18  ;;  %2261 = vmatmul.bf16.vlgmr.msrb.gmra.mxu0 %v5200_v18 }
 0x33b   : > { %2285 = vmatpush.bf16.msra.mxu2 %v3309_v17  ;;  %2313 = vmatpush.bf16.msra.mxu0 %v3313_v2  ;;  %v5258_v17 = vld [vmem:[#allocation19 + $0x180] sm:$0xff] }
 0x33d   : > { %2301 = vmatpush.bf16.msra.mxu3 %v3453_v8  ;;  %2329 = vmatpush.bf16.msra.mxu1 %v3457_v41  ;;  %v5269_v41 = vld [vmem:[#allocation19 + $0x90] sm:$0xff] }
 0x33f   : > { %2286 = vmatpush.bf16.msra.mxu2 %v3285_v11  ;;  %2314 = vmatpush.bf16.msra.mxu0 %v3289_v15  ;;  %v5281_v11 = vld [vmem:[#allocation19 + $0x70] sm:$0xff]  ;;  %v5284_v15 = vld [vmem:[#allocation19 + $0x140] sm:$0xff] }
 0x341   : > { %2302 = vmatpush.bf16.msra.mxu3 %v3429_v21  ;;  %2330 = vmatpush.bf16.msra.mxu1 %v3433_v22 }
 0x343   : > { %2287 = vmatpush.bf16.msra.mxu2 %v3261_v4  ;;  %2315 = vmatpush.bf16.msra.mxu0 %v3265_v14  ;;  %v5293_v4 = vld [vmem:[#allocation19 + $0x50] sm:$0xff]  ;;  %v5296_v14 = vld [vmem:[#allocation19 + $0x120] sm:$0xff] }
 0x344   : > { %2303 = vmatmul.bf16.vlgmr.msra.gmra.mxu3 %v5191_v0  ;;  %2331 = vmatmul.bf16.vlgmr.msra.gmra.mxu1 %v5191_v0  ;;  %v3984_v0 = vld [vmem:[#allocation16] sm:$0xff] }
 0x347   : > { %2288 = vmatpush.bf16.msra.mxu2 %v3237_v30  ;;  %2316 = vmatpush.bf16.msra.mxu0 %v3241_v31 }
 0x34a   : > { %2289 = vmatmul.bf16.vlgmr.msra.gmra.mxu2 %v5200_v18  ;;  %2317 = vmatmul.bf16.vlgmr.msra.gmra.mxu0 %v5200_v18 }
 0x3a1   : > { %v2220_v32 = vpop.f32.mrf.mxu1 }
 0x3a7   : > { %v2192_v33 = vpop.f32.mrf.mxu3  ;;  %v2206_v34 = vpop.f32.mrf.mxu0 }
 0x3a8   : > { %v2221_v42 = vadd.f32 %v2220_v32, %v2206_v34  ;;  %v4014_v32 = vld [vmem:[#allocation17] sm:$0xff] }
 0x3a9   : > { %v2222_v35 = vpop.f32.mrf.mxu1 }
 0x3ad   : > { %v2178_v28 = vpop.f32.mrf.mxu2 }
 0x3ae   : > { %v2193_v46 = vadd.f32 %v2192_v33, %v2178_v28  ;;  %v5309_v33 = vld [vmem:[#allocation19 + $0x100] sm:$0xff] }
 0x3af   : > { %v2194_v38 = vpop.f32.mrf.mxu3  ;;  %v2208_v29 = vpop.f32.mrf.mxu0  ;;  %v5315_v28 = vld [vmem:[#allocation19 + $0x20] sm:$0xff] }
 0x3b0   : > { %v2223_v39 = vadd.f32 %v2222_v35, %v2208_v29  ;;  %v5312_v35 = vld [vmem:[#allocation19 + $0x1f8] sm:$0xff]  ;;  %v5319_v29 = vld [vmem:[#allocation19 + $0x1e8] sm:$0xff] }
 0x3b1   : > { %v2276_v40 = vpop.f32.mrf.mxu1 }
 0x3b2   : > { %2374 = vmatpush.msrb.mxu3 %v2223_v39  ;;  %v5322_v39 = vld [vmem:[#allocation19 + $0x10] sm:$0xff] }
 0x3b4   : > { %2375 = vmatpush.msrb.mxu3 %v2221_v42  ;;  %v5330_v42 = vld [vmem:[#allocation19] sm:$0xff] }
 0x3b5   : > { %v2180_v43 = vpop.f32.mrf.mxu2  ;;  %3604 = vmatmul.msk.f32.vlgmr.msrb.gmra.mxu3 %vm1056_vm1, %v3984_v0 }
 0x3b6   : > { %v2195_v37 = vadd.f32 %v2194_v38, %v2180_v43  ;;  %2481 = vmatpush.msra.mxu3 %v5213_v44  ;;  %v5333_v43 = vld [vmem:[#allocation19 + $0xf8] sm:$0xff] }
 0x3b7   : > { %v2248_v18 = vpop.f32.mrf.mxu3  ;;  %v2262_v27 = vpop.f32.mrf.mxu0 }
 0x3b8   : > { %v5216_v47 = vadd.f32 %v2276_v40, %v2262_v27  ;;  %2351 = vmatpush.msrb.mxu2 %v2195_v37  ;;  %2482 = vmatpush.msra.mxu3 %v5218_v48  ;;  %v5326_v40 = vld [vmem:[#allocation19 + $0x1d8] sm:$0xff] }
 0x3b9   : > { %v2278_v51 = vpop.f32.mrf.mxu1  ;;  %v4024_v37 = vld [vmem:[#allocation17 + $0x8] sm:$0xff] }
 0x3ba   : > { %2352 = vmatpush.msrb.mxu2 %v2193_v46  ;;  %2483 = vmatpush.msra.mxu3 %v5221_v50  ;;  %v5349_v27 = vld [vmem:[#allocation19 + $0xd8] sm:$0xff]  ;;  %v5352_v46 = vld [vmem:[#allocation19 + $0x1a8] sm:$0xff] }
 0x3bb   : > { %3602 = vmatmul.msk.f32.vlgmr.msrb.gmra.mxu2 %vm1056_vm1, %v3984_v0  ;;  %v5336_v0 = vld [vmem:[#allocation19 + $0x1c8] sm:$0xff] }
 0x3bc   : > { %2461 = vmatpush.msra.mxu2 %v5225_v52  ;;  %2484 = vmatpush.msra.mxu3 %v5228_v53 }
 0x3bd   : > { %v2234_v54 = vpop.f32.mrf.mxu2  ;;  %3605 = vmatmul.msk.f32.gmra.mxu3 %vm1056_vm1, %v3990_v55 }
 0x3be   : > { %v5232_v56 = vadd.f32 %v2248_v18, %v2234_v54  ;;  %2462 = vmatpush.msra.mxu2 %v5234_v57  ;;  %2485 = vmatpush.msra.mxu3 %v5237_v12  ;;  %v5344_v18 = vld [vmem:[#allocation19 + $0x1b8] sm:$0xff] }
 0x3bf   : > { %v2264_v59 = vpop.f32.mrf.mxu0  ;;  %v2250_v62 = vpop.f32.mrf.mxu3  ;;  %v5376_v54 = vld [vmem:[#allocation19 + $0x178] sm:$0xff] }
 0x3c0   : > { %v5240_v60 = vadd.f32 %v2278_v51, %v2264_v59  ;;  %2463 = vmatpush.msra.mxu2 %v5242_v61  ;;  %2486 = vmatpush.msra.mxu3 %v5245_v9  ;;  %v5365_v51 = vld [vmem:[#allocation19 + $0xb8] sm:$0xff] }
 0x3c1   : > { %v2332_v2 = vpop.f32.mrf.mxu1  ;;  %v5392_v59 = vld [vmem:[#allocation19 + $0x158] sm:$0xff] }
 0x3c2   : > { %2464 = vmatpush.msra.mxu2 %v5248_v63  ;;  %2487 = vmatpush.msra.mxu3 %v5251_v1 }
 0x3c3   : > { %3603 = vmatmul.msk.f32.gmra.mxu2 %vm1056_vm1, %v3990_v55  ;;  %v5381_v55 = vld [vmem:[#allocation19 + $0x98] sm:$0xff] }
 0x3c4   : > { %2465 = vmatpush.msra.mxu2 %v5255_v16  ;;  %2488 = vmatpush.msra.mxu3 %v5258_v17 }
 0x3c5   : > { %v2236_v3 = vpop.f32.mrf.mxu2 }
 0x3c6   : > { %v5261_v5 = vadd.f32 %v2250_v62, %v2236_v3  ;;  %2466 = vmatpush.msra.mxu2 %v5263_v6  ;;  %2489 = vmatpush.msra.mxu3 %v5266_v7  ;;  %v4041_v62 = vld [vmem:[#allocation19 + $0x68] sm:$0xff]  ;;  %v4047_v3 = vld [vmem:[#allocation19 + $0x38] sm:$0xff] }
 0x3c7   : > { %v2318_v8 = vpop.f32.mrf.mxu0  ;;  %v2304_v36 = vpop.f32.mrf.mxu3 }
 0x3c8   : > { %2467 = vmatpush.msra.mxu2 %v5269_v41  ;;  %2490 = vmatpush.msra.mxu3 %v5272_v58  ;;  %v2333_v23 = vadd.f32 %v2332_v2, %v2318_v8  ;;  %v4046_v2 = vld [vmem:[#allocation19 + $0x118] sm:$0xff] }
 0x3c9   : > { %v2334_v49 = vpop.f32.mrf.mxu1  ;;  %v4050_v8 = vld [vmem:[#allocation19 + $0x18] sm:$0xff] }
 0x3ca   : > { %2468 = vmatpush.msra.mxu2 %v5275_v10  ;;  %2491 = vmatpush.msra.mxu3 %v5278_v13 }
 0x3cc   : > { %2469 = vmatpush.msra.mxu2 %v5281_v11  ;;  %2492 = vmatpush.msra.mxu3 %v5284_v15 }
 0x3cd   : > { %v2290_v19 = vpop.f32.mrf.mxu2 }
 0x3ce   : > { %2470 = vmatpush.msra.mxu2 %v5287_v20  ;;  %2493 = vmatpush.msra.mxu3 %v5290_v45  ;;  %v2305_v38 = vadd.f32 %v2304_v36, %v2290_v19 }
 0x3cf   : > { %v2320_v21 = vpop.f32.mrf.mxu0  ;;  %v2306_v30 = vpop.f32.mrf.mxu3 }
 0x3d0   : > { %v2335_v22 = vadd.f32 %v2334_v49, %v2320_v21  ;;  %2471 = vmatpush.msra.mxu2 %v5293_v4  ;;  %2494 = vmatpush.msra.mxu3 %v5296_v14 }
 0x3d2   : > { %2424 = vmatpush.msrb.mxu1 %v2335_v22  ;;  %2472 = vmatpush.msra.mxu2 %v5299_v24 }
 0x3d3   : > { %2495 = vmatpush.msra.mxu3 %v5302_v25 }
 0x3d4   : > { %2425 = vmatpush.msrb.mxu1 %v2333_v23  ;;  %2473 = vmatpush.msra.mxu2 %v5305_v26 }
 0x3d5   : > { %v2292_v31 = vpop.f32.mrf.mxu2  ;;  %3608 = vmatmul.msk.f32.vlgmr.msrb.gmra.mxu1 %vm1056_vm1, %v4014_v32  ;;  %2496 = vmatpush.msra.mxu3 %v5309_v33 }
 0x3d6   : > { %v2307_v34 = vadd.f32 %v2306_v30, %v2292_v31  ;;  %2521 = vmatpush.msra.mxu1 %v5312_v35  ;;  %2474 = vmatpush.msra.mxu2 %v5315_v28 }
 0x3d7   : > { %2585 = vmatpush.msrb.mxu3 %v5213_v44  ;;  %v5341_v44 = vld [vmem:[#allocation19 + $0xe8] sm:$0xff] }
 0x3d8   : > { %2401 = vmatpush.msrb.mxu0 %v2307_v34  ;;  %2522 = vmatpush.msra.mxu1 %v5319_v29 }
 0x3d9   : > { %2475 = vmatpush.msra.mxu2 %v5322_v39  ;;  %2586 = vmatpush.msrb.mxu3 %v5218_v48  ;;  %v5357_v48 = vld [vmem:[#allocation19 + $0xc8] sm:$0xff] }
 0x3da   : > { %2402 = vmatpush.msrb.mxu0 %v2305_v38  ;;  %2523 = vmatpush.msra.mxu1 %v5326_v40 }
 0x3db   : > { %3606 = vmatmul.msk.f32.vlgmr.msrb.gmra.mxu0 %vm1056_vm1, %v4014_v32  ;;  %2476 = vmatpush.msra.mxu2 %v5330_v42 }
 0x3dc   : > { %2501 = vmatpush.msra.mxu0 %v5333_v43  ;;  %2524 = vmatpush.msra.mxu1 %v5336_v0 }
 0x3dd   : > { %3609 = vmatmul.msk.f32.gmra.mxu1 %vm1056_vm1, %v4024_v37  ;;  %2587 = vmatpush.msrb.mxu3 %v5221_v50  ;;  %v5360_v50 = vld [vmem:[#allocation19 + $0x198] sm:$0xff] }
 0x3de   : > { %2502 = vmatpush.msra.mxu0 %v5341_v44  ;;  %2525 = vmatpush.msra.mxu1 %v5344_v18 }
 0x3df   : > { %2565 = vmatpush.msrb.mxu2 %v5225_v52  ;;  %2588 = vmatpush.msrb.mxu3 %v5228_v53  ;;  %v5368_v52 = vld [vmem:[#allocation19 + $0x188] sm:$0xff] }
 0x3e0   : > { %2503 = vmatpush.msra.mxu0 %v5349_v27  ;;  %2526 = vmatpush.msra.mxu1 %v5352_v46  ;;  %v5373_v53 = vld [vmem:[#allocation19 + $0xa8] sm:$0xff] }
 0x3e1   : > { %2566 = vmatpush.msrb.mxu2 %v5234_v57  ;;  %2589 = vmatpush.msrb.mxu3 %v5237_v12  ;;  %v5384_v57 = vld [vmem:[#allocation19 + $0x168] sm:$0xff] }
 0x3e2   : > { %2504 = vmatpush.msra.mxu0 %v5357_v48  ;;  %2527 = vmatpush.msra.mxu1 %v5360_v50  ;;  %v5389_v12 = vld [vmem:[#allocation19 + $0x88] sm:$0xff] }
 0x3e3   : > { %3607 = vmatmul.msk.f32.gmra.mxu0 %vm1056_vm1, %v4024_v37  ;;  %2567 = vmatpush.msrb.mxu2 %v5242_v61  ;;  %v4039_v61 = vld [vmem:[#allocation19 + $0x78] sm:$0xff] }
 0x3e4   : > { %2505 = vmatpush.msra.mxu0 %v5365_v51  ;;  %2528 = vmatpush.msra.mxu1 %v5368_v52 }
 0x3e5   : > { %2590 = vmatpush.msrb.mxu3 %v5245_v9  ;;  %2568 = vmatpush.msrb.mxu2 %v5248_v63  ;;  %v4040_v9 = vld [vmem:[#allocation19 + $0x148] sm:$0xff]  ;;  %v4042_v63 = vld [vmem:[#allocation19 + $0x138] sm:$0xff] }
 0x3e6   : > { %2506 = vmatpush.msra.mxu0 %v5373_v53  ;;  %2529 = vmatpush.msra.mxu1 %v5376_v54 }
 0x3e7   : > { %2591 = vmatpush.msrb.mxu3 %v5251_v1  ;;  %2569 = vmatpush.msrb.mxu2 %v5255_v16  ;;  %v4043_v1 = vld [vmem:[#allocation19 + $0x58] sm:$0xff]  ;;  %v4044_v16 = vld [vmem:[#allocation19 + $0x128] sm:$0xff] }
 0x3e8   : > { %2507 = vmatpush.msra.mxu0 %v5381_v55  ;;  %2530 = vmatpush.msra.mxu1 %v5384_v57 }
 0x3e9   : > { %2592 = vmatpush.msrb.mxu3 %v5258_v17  ;;  %2570 = vmatpush.msrb.mxu2 %v5263_v6  ;;  %v4045_v17 = vld [vmem:[#allocation19 + $0x48] sm:$0xff] }
 0x3ea   : > { %2508 = vmatpush.msra.mxu0 %v5389_v12  ;;  %2531 = vmatpush.msra.mxu1 %v5392_v59  ;;  %v4048_v6 = vld [vmem:[#allocation19 + $0x108] sm:$0xff] }
 0x3eb   : > { %2593 = vmatpush.msrb.mxu3 %v5266_v7  ;;  %2571 = vmatpush.msrb.mxu2 %v5269_v41  ;;  %v4049_v7 = vld [vmem:[#allocation19 + $0x28] sm:$0xff] }
 0x3ec   : > { %2509 = vmatpush.msra.mxu0 %v4039_v61  ;;  %2532 = vmatpush.msra.mxu1 %v4040_v9  ;;  %v4051_v41 = vld [vmem:[#allocation19 + $0x8] sm:$0xff] }
 0x3ed   : > { %2594 = vmatpush.msrb.mxu3 %v5272_v58  ;;  %2572 = vmatpush.msrb.mxu2 %v5275_v10 }
 0x3ee   : > { %2510 = vmatpush.msra.mxu0 %v4041_v62  ;;  %2533 = vmatpush.msra.mxu1 %v4042_v63 }
 0x3ef   : > { %2595 = vmatpush.msrb.mxu3 %v5278_v13  ;;  %2573 = vmatpush.msrb.mxu2 %v5281_v11  ;;  %v2437_v11 = vld [vmem:[%s5634_s10] sm:$0x3] }
 0x3f0   : > { %2511 = vmatpush.msra.mxu0 %v4043_v1  ;;  %2534 = vmatpush.msra.mxu1 %v4044_v16  ;;  %v2440_v49 = vperm.slane %v2437_v11, 1  ;;  %v2439_v30 = vperm.slane %v2437_v11, 0 }
 0x3f1   : > { %2596 = vmatpush.msrb.mxu3 %v5284_v15  ;;  %2574 = vmatpush.msrb.mxu2 %v5287_v20 }
 0x3f2   : > { %2512 = vmatpush.msra.mxu0 %v4045_v17  ;;  %2535 = vmatpush.msra.mxu1 %v4046_v2 }
 0x3f3   : > { %2597 = vmatpush.msrb.mxu3 %v5290_v45  ;;  %2575 = vmatpush.msrb.mxu2 %v5293_v4 }
 0x3f4   : > { %2513 = vmatpush.msra.mxu0 %v4047_v3  ;;  %2536 = vmatpush.msra.mxu1 %v4048_v6 }
 0x3f5   : > { %2598 = vmatpush.msrb.mxu3 %v5296_v14  ;;  %2576 = vmatpush.msrb.mxu2 %v5299_v24 }
 0x3f6   : > { %2625 = vmatpush.msrb.mxu1 %v5312_v35  ;;  %2514 = vmatpush.msra.mxu0 %v4049_v7 }
 0x3f7   : > { %2599 = vmatpush.msrb.mxu3 %v5302_v25  ;;  %2577 = vmatpush.msrb.mxu2 %v5305_v26 }
 0x3f8   : > { %2626 = vmatpush.msrb.mxu1 %v5319_v29  ;;  %2515 = vmatpush.msra.mxu0 %v4050_v8 }
 0x3f9   : > { %2600 = vmatpush.msrb.mxu3 %v5309_v33  ;;  %2578 = vmatpush.msrb.mxu2 %v5315_v28 }
 0x3fa   : > { %2627 = vmatpush.msrb.mxu1 %v5326_v40  ;;  %2516 = vmatpush.msra.mxu0 %v4051_v41 }
 0x3fb   : > { %2579 = vmatpush.msrb.mxu2 %v5322_v39 }
 0x3fc   : > { %2605 = vmatpush.msrb.mxu0 %v5333_v43  ;;  %2628 = vmatpush.msrb.mxu1 %v5336_v0 }
 0x3fd   : > { %2580 = vmatpush.msrb.mxu2 %v5330_v42 }
 0x3fe   : > { %2606 = vmatpush.msrb.mxu0 %v5341_v44  ;;  %2629 = vmatpush.msrb.mxu1 %v5344_v18  ;;  %v3785_v44 = vld [vmem:[#allocation14 + $0x34] sm:$0xf]  ;;  %v3642_v18 = vld [vmem:[#allocation14 + $0x38] sm:$0xf0] }
 0x400   : > { %2607 = vmatpush.msrb.mxu0 %v5349_v27  ;;  %2630 = vmatpush.msrb.mxu1 %v5352_v46  ;;  %v3783_v27 = vld [vmem:[#allocation14 + $0x24] sm:$0xf]  ;;  %v3645_v46 = vor.u32 %v3785_v44, %v3642_v18 }
 0x402   : > { %2608 = vmatpush.msrb.mxu0 %v5357_v48  ;;  %2631 = vmatpush.msrb.mxu1 %v5360_v50  ;;  %v3634_v48 = vld [vmem:[#allocation14 + $0x28] sm:$0xf0]  ;;  %v3640_v50 = vld [vmem:[#allocation14 + $0x30] sm:$0xf] }
 0x404   : > { %2609 = vmatpush.msrb.mxu0 %v5365_v51  ;;  %2632 = vmatpush.msrb.mxu1 %v5368_v52  ;;  %v3786_v51 = vld [vmem:[#allocation14 + $0x34] sm:$0xf0] }
 0x405   : > { %v3641_v52 = vor.u32 %v3786_v51, %v3640_v50 }
 0x406   : > { %2610 = vmatpush.msrb.mxu0 %v5373_v53  ;;  %2633 = vmatpush.msrb.mxu1 %v5376_v54  ;;  %v3632_v53 = vld [vmem:[#allocation14 + $0x20] sm:$0xf] }
 0x408   : > { %2611 = vmatpush.msrb.mxu0 %v5381_v55  ;;  %2634 = vmatpush.msrb.mxu1 %v5384_v57  ;;  %v3637_v57 = vor.u32 %v3783_v27, %v3634_v48 }
 0x40a   : > { %2612 = vmatpush.msrb.mxu0 %v5389_v12  ;;  %2635 = vmatpush.msrb.mxu1 %v5392_v59  ;;  %v3784_v12 = vld [vmem:[#allocation14 + $0x24] sm:$0xf0] }
 0x40c   : > { %2613 = vmatpush.msrb.mxu0 %v4039_v61  ;;  %2636 = vmatpush.msrb.mxu1 %v4040_v9  ;;  %v3781_v61 = vld [vmem:[#allocation14 + $0x14] sm:$0xf]  ;;  %v3626_v9 = vld [vmem:[#allocation14 + $0x18] sm:$0xf0] }
 0x40e   : > { %2614 = vmatpush.msrb.mxu0 %v4041_v62  ;;  %2637 = vmatpush.msrb.mxu1 %v4042_v63  ;;  %v3633_v62 = vor.u32 %v3784_v12, %v3632_v53  ;;  %v3624_v63 = vld [vmem:[#allocation14 + $0x10] sm:$0xf]  ;;  %v2671_v53 = vld [vmem:[#allocation13] sm:$0x3] }
 0x410   : > { %2615 = vmatpush.msrb.mxu0 %v4043_v1  ;;  %2638 = vmatpush.msrb.mxu1 %v4044_v16  ;;  %v3782_v1 = vld [vmem:[#allocation14 + $0x14] sm:$0xf0] }
 0x412   : > { %2616 = vmatpush.msrb.mxu0 %v4045_v17  ;;  %2639 = vmatpush.msrb.mxu1 %v4046_v2  ;;  %v3629_v17 = vor.u32 %v3781_v61, %v3626_v9 }
 0x414   : > { %2617 = vmatpush.msrb.mxu0 %v4047_v3  ;;  %2640 = vmatpush.msrb.mxu1 %v4048_v6  ;;  %v3779_v6 = vld [vmem:[#allocation14 + $0x4] sm:$0xf] }
 0x416   : > { %2618 = vmatpush.msrb.mxu0 %v4049_v7  ;;  %v3618_v7 = vld [vmem:[#allocation14 + $0x8] sm:$0xf0] }
 0x418   : > { %2619 = vmatpush.msrb.mxu0 %v4050_v8  ;;  %v3625_v8 = vor.u32 %v3782_v1, %v3624_v63 }
 0x41a   : > { %2620 = vmatpush.msrb.mxu0 %v4051_v41 }
 0x438   : > { %v2377_v58 = vpop.f32.mrf.mxu3 }
 0x439   : > { %v2384_v15 = vadd.f32 %v2377_v58, %v5216_v47 }
 0x43e   : > { %v2354_v10 = vpop.f32.mrf.mxu2 }
 0x43f   : > { %v2383_v14 = vadd.f32 %v2354_v10, %v5232_v56  ;;  %v3616_v10 = vld [vmem:[#allocation14] sm:$0xf] }
 0x440   : > { %v2380_v36 = vpop.f32.mrf.mxu3 }
 0x441   : > { %v2386_v20 = vadd.f32 %v2380_v36, %v5240_v60 }
 0x446   : > { %v2357_v4 = vpop.f32.mrf.mxu2 }
 0x447   : > { %v2385_v25 = vadd.f32 %v2357_v4, %v5261_v5 }
 0x452   : > { %v2427_v13 = vpop.f32.mrf.mxu1 }
 0x453   : > { %v2434_v45 = vadd.f32 %v2427_v13, %v2384_v15  ;;  %v3780_v13 = vld [vmem:[#allocation14 + $0x4] sm:$0xf0] }
 0x455   : > { %v2444_v23 = vadd.f32 %v2440_v49, %v2434_v45 }
 0x458   : > { %v2404_v19 = vpop.f32.mrf.mxu0 }
 0x459   : > { %v2433_v26 = vadd.f32 %v2404_v19, %v2383_v14  ;;  %v3621_v19 = vor.u32 %v3779_v6, %v3618_v7 }
 0x45a   : > { %v2430_v21 = vpop.f32.mrf.mxu1 }
 0x45b   : > { %v2436_v22 = vadd.f32 %v2430_v21, %v2386_v20  ;;  %v2443_v34 = vadd.f32 %v2439_v30, %v2433_v26 }
 0x45d   : > { %v2446_v24 = vadd.f32 %v2440_v49, %v2436_v22  ;;  %v3617_v49 = vor.u32 %v3780_v13, %v3616_v10 }
 0x45f   : > { %v2454_v31 = vadd.f32 %v2446_v24, %v2444_v23 }
 0x460   : > { %v2407_v32 = vpop.f32.mrf.mxu0 }
 0x461   : > { %v2455_v33 = vrot.slane %v2454_v31, 4  ;;  %v2435_v47 = vadd.f32 %v2407_v32, %v2385_v25 }
 0x463   : > { %v2456_v35 = vadd.f32 %v2455_v33, %v2454_v31  ;;  %v2445_v60 = vadd.f32 %v2439_v30, %v2435_v47 }
 0x465   : > { %v2457_v28 = vrot.slane %v2456_v35, 2  ;;  %v2447_v38 = vadd.f32 %v2445_v60, %v2443_v34 }
 0x467   : > { %v2458_v29 = vadd.f32 %v2457_v28, %v2456_v35  ;;  %v2448_v39 = vrot.slane %v2447_v38, 4 }
 0x469   : > { %v2449_v40 = vadd.f32 %v2448_v39, %v2447_v38  ;;  %v2459_v42 = vrot.slane %v2458_v29, 1  ;;  %v4052_v38 = vld [vmem:[%s4755_s20] sm:$0xff]  ;;  %s5636_s20 = sld [smem:[#allocation50_spill]] }
 0x46b   : > { %v2450_v56 = vrot.slane %v2449_v40, 2  ;;  %v2460_v43 = vadd.f32 %v2459_v42, %v2458_v29 }
 0x46d   : > { %v2451_v0 = vadd.f32 %v2450_v56, %v2449_v40  ;;  %2497 = vmatmul.f32.vlgmr.msra.gmra.mxu3 %v2460_v43  ;;  %2537 = vmatmul.f32.vlgmr.msra.gmra.mxu1 %v2460_v43 }
 0x46e   : > { %2843 = vmatpush.bf16.msra.mxu3 %v3645_v46 }
 0x46f   : > { %v2452_v5 = vrot.slane %v2451_v0, 1 }
 0x471   : > { %v2453_v37 = vadd.f32 %v2452_v5, %v2451_v0 }
 0x472   : > { %2844 = vmatpush.bf16.msra.mxu3 %v3637_v57  ;;  %v2681_v57 = vld [vmem:[%s5635_s16] sm:$0x3] }
 0x473   : > { %2477 = vmatmul.f32.vlgmr.msra.gmra.mxu2 %v2453_v37  ;;  %2517 = vmatmul.f32.vlgmr.msra.gmra.mxu0 %v2453_v37  ;;  %v2683_v10 = vperm.slane %v2681_v57, 0 }
 0x474   : > { %2829 = vmatpush.bf16.msra.mxu2 %v3641_v52 }
 0x476   : > { %2845 = vmatpush.bf16.msra.mxu3 %v3629_v17 }
 0x478   : > { %2830 = vmatpush.bf16.msra.mxu2 %v3633_v62  ;;  %v2684_v62 = vperm.slane %v2681_v57, 1 }
 0x47a   : > { %2846 = vmatpush.bf16.msra.mxu3 %v3621_v19 }
 0x47c   : > { %2831 = vmatpush.bf16.msra.mxu2 %v3625_v8 }
 0x480   : > { %2832 = vmatpush.bf16.msra.mxu2 %v3617_v49 }
 0x4ea   : > { %v2538_v54 = vpop.f32.mrf.mxu1 }
 0x4f0   : > { %v2518_v55 = vpop.f32.mrf.mxu0  ;;  %v2498_v41 = vpop.f32.mrf.mxu3 }
 0x4f1   : > { %v2539_v59 = vadd.f32 %v2538_v54, %v2518_v55 }
 0x4f3   : > { %v2542_v16 = vperm.slane %v2539_v59, 0  ;;  %v2674_v59 = vperm.slane %v2671_v53, 1 }
 0x4f5   : > { %v5439_v2 = vsub.f32 %v2444_v23, %v2542_v16  ;;  %v5441_v3 = vsub.f32 %v2446_v24, %v2542_v16 }
 0x4f6   : > { %v2478_v58 = vpop.f32.mrf.mxu2 }
 0x4f7   : > { %v2548_v36 = vmul.f32 %v5439_v2, %v5439_v2  ;;  %v2550_v11 = vmul.f32 %v5441_v3, %v5441_v3  ;;  %v2499_v15 = vadd.f32 %v2498_v41, %v2478_v58  ;;  %v2673_v41 = vperm.slane %v2671_v53, 0 }
 0x4f9   : > { %v2558_v20 = vadd.f32 %v2550_v11, %v2548_v36  ;;  %v2541_v45 = vperm.slane %v2499_v15, 0 }
 0x4fb   : > { %v2559_v21 = vrot.slane %v2558_v20, 4  ;;  %v5447_v22 = vsub.f32 %v2443_v34, %v2541_v45  ;;  %v5449_v4 = vsub.f32 %v2445_v60, %v2541_v45 }
 0x4fd   : > { %v2560_v14 = vadd.f32 %v2559_v21, %v2558_v20  ;;  %v2547_v23 = vmul.f32 %v5447_v22, %v5447_v22  ;;  %v2549_v24 = vmul.f32 %v5449_v4, %v5449_v4 }
 0x4ff   : > { %v2561_v25 = vrot.slane %v2560_v14, 2  ;;  %v2551_v26 = vadd.f32 %v2549_v24, %v2547_v23 }
 0x501   : > { %v2552_v30 = vrot.slane %v2551_v26, 4  ;;  %v2562_v31 = vadd.f32 %v2561_v25, %v2560_v14 }
 0x503   : > { %v2553_v32 = vadd.f32 %v2552_v30, %v2551_v26  ;;  %v2563_v33 = vrot.slane %v2562_v31, 1  ;;  %v5480_v26 = vld [vmem:[%s5636_s20] sm:$0x3] }
 0x505   : > { %v2554_v47 = vrot.slane %v2553_v32, 2  ;;  %v2564_v34 = vadd.f32 %v2563_v33, %v2562_v31 }
 0x507   : > { %2601 = vmatmul.f32.vlgmr.msrb.gmra.mxu3 %v2564_v34  ;;  %2641 = vmatmul.f32.vlgmr.msrb.gmra.mxu1 %v2564_v34  ;;  %v2555_v35 = vadd.f32 %v2554_v47, %v2553_v32  ;;  %v2782_v34 = vperm.slane %v5480_v26, 1 }
 0x509   : > { %v2556_v60 = vrot.slane %v2555_v35, 1 }
 0x50b   : > { %v2557_v28 = vadd.f32 %v2556_v60, %v2555_v35 }
 0x50d   : > { %2581 = vmatmul.f32.vlgmr.msrb.gmra.mxu2 %v2557_v28  ;;  %2621 = vmatmul.f32.vlgmr.msrb.gmra.mxu0 %v2557_v28 }
 0x50f   : > { %3647 = vmatmul.msk.bf16.vlgmr.msra.gmra.mxu3 %vm968_vm0, %v4052_v38 }
 0x515   : > { %3646 = vmatmul.msk.bf16.vlgmr.msra.gmra.mxu2 %vm968_vm0, %v4052_v38 }
 0x584   : > { %v2642_v40 = vpop.f32.mrf.mxu1 }
 0x58a   : > { %v2622_v29 = vpop.f32.mrf.mxu0  ;;  %v2602_v0 = vpop.f32.mrf.mxu3 }
 0x58b   : > { %v2623_v39 = vadd.f32 1e-05, %v2622_v29 }
 0x58d   : > { %v2643_v42 = vadd.f32 %v2642_v40, %v2623_v39 }
 0x58f   : > { %3964 = vrsqrt.f32 %v2643_v42  ;;  %vm2661_vm0 = vweird.f32 %v2643_v42 }
 0x590   : > { %v2582_v56 = vpop.f32.mrf.mxu2 }
 0x591   : > { %v2583_v43 = vadd.f32 1e-05, %v2582_v56 }
 0x592   : > { %v2848_v23 = vpop.f32.mrf.mxu3 }
 0x593   : > { %v2603_v5 = vadd.f32 %v2602_v0, %v2583_v43  ;;  %v2849_v43 = vadd.f32 %v2848_v23, %v2782_v34 }
 0x595   : > { %v3965_v37 = vpop.eup %3964  ;;  %3966 = vrsqrt.f32 %v2603_v5  ;;  %vm2651_vm3 = vweird.f32 %v2603_v5 }
 0x596   : > { %v2656_v44 = vmul.f32 %v3965_v37, %v2643_v42  ;;  %vm2662_vm1 = vweird.f32 %v3965_v37 }
 0x597   : > { %vm2663_vm15 = vmor %vm2661_vm0, %vm2662_vm1 }
 0x598   : > { %v2657_v18 = vmul.f32 %v3965_v37, %v2656_v44  ;;  %v2834_v0 = vpop.f32.mrf.mxu2 }
 0x59a   : > { %v2658_v27 = vmul.f32 0.5, %v2657_v18  ;;  %v2850_v60 = vpop.f32.mrf.mxu3 }
 0x59b   : > { %v3967_v46 = vpop.eup %3966 }
 0x59c   : > { %v2659_v48 = vsub.f32 1.5, %v2658_v27  ;;  %v2646_v50 = vmul.f32 %v3967_v46, %v2603_v5  ;;  %vm2652_vm2 = vweird.f32 %v3967_v46  ;;  %v2851_v5 = vadd.f32 %v2850_v60, %v2782_v34 }
 0x59d   : > { %vm2653_vm4 = vmor %vm2651_vm3, %vm2652_vm2 }
 0x59e   : > { %v2660_v51 = vmul.f32 %v3965_v37, %v2659_v48  ;;  %v2647_v52 = vmul.f32 %v3967_v46, %v2646_v50 }
 0x5a0   : > { %v2664_v54 = vsel %vm2663_vm15, %v3965_v37, %v2660_v51  ;;  %v2648_v55 = vmul.f32 0.5, %v2647_v52 }
 0x5a1   : > { %v2666_v12 = vperm.slane %v2664_v54, 0 }
 0x5a2   : > { %v2649_v61 = vsub.f32 1.5, %v2648_v55 }
 0x5a3   : > { %v2668_v9 = vmul.f32 %v2666_v12, %v5439_v2  ;;  %v2670_v63 = vmul.f32 %v2666_v12, %v5441_v3 }
 0x5a4   : > { %v2650_v1 = vmul.f32 %v3967_v46, %v2649_v61 }
 0x5a5   : > { %v2678_v16 = vmul.f32 %v2674_v59, %v2668_v9  ;;  %v2680_v17 = vmul.f32 %v2674_v59, %v2670_v63 }
 0x5a6   : > { %v2654_v6 = vsel %vm2653_vm4, %v3967_v46, %v2650_v1 }
 0x5a7   : > { %v2665_v7 = vperm.slane %v2654_v6, 0  ;;  %v5463_v8 = vadd.f32 %v2684_v62, %v2678_v16  ;;  %v5465_v58 = vadd.f32 %v2684_v62, %v2680_v17 }
 0x5a9   : > { %v3611_v13 = vmul.f32 -1.442695, %v5463_v8  ;;  %v2667_v2 = vmul.f32 %v2665_v7, %v5447_v22  ;;  %v3613_v36 = vmul.f32 -1.442695, %v5465_v58  ;;  %v2669_v3 = vmul.f32 %v2665_v7, %v5449_v4 }
 0x5ab   : > { %3968 = vpow2.f32 %v3611_v13  ;;  %v2677_v11 = vmul.f32 %v2673_v41, %v2667_v2  ;;  %v2679_v15 = vmul.f32 %v2673_v41, %v2669_v3  ;;  %v2781_v13 = vperm.slane %v5480_v26, 0 }
 0x5ac   : > { %3970 = vpow2.f32 %v3613_v36 }
 0x5ad   : > { %v5471_v19 = vadd.f32 %v2683_v10, %v2677_v11  ;;  %v5473_v20 = vadd.f32 %v2683_v10, %v2679_v15  ;;  %v2836_v11 = vpop.f32.mrf.mxu2 }
 0x5ae   : > { %v2837_v23 = vadd.f32 %v2836_v11, %v2781_v13 }
 0x5af   : > { %v3610_v45 = vmul.f32 -1.442695, %v5471_v19  ;;  %v3612_v49 = vmul.f32 -1.442695, %v5473_v20 }
 0x5b1   : > { %v3969_v21 = vpop.eup %3968  ;;  %3972 = vpow2.f32 %v3610_v45 }
 0x5b2   : > { %v3971_v14 = vpop.eup %3970  ;;  %v2704_v22 = vadd.f32 1.0, %v3969_v21  ;;  %3974 = vpow2.f32 %v3612_v49  ;;  %v2835_v21 = vadd.f32 %v2834_v0, %v2781_v13 }
 0x5b3   : > { %v2706_v24 = vadd.f32 1.0, %v3971_v14 }
 0x5b4   : > { %3976 = vrcp.f32 %v2704_v22  ;;  %v2731_v38 = vand.u32 2147483647, %v2704_v22  ;;  %v2733_v29 = vand.u32 2147483648, %v2704_v22  ;;  %vm2727_vm6 = vweird.f32 %v2704_v22 }
 0x5b5   : > { %3978 = vrcp.f32 %v2706_v24  ;;  %v2761_v40 = vand.u32 2147483647, %v2706_v24  ;;  %v2763_v42 = vand.u32 2147483648, %v2706_v24  ;;  %vm2757_vm7 = vweird.f32 %v2706_v24 }
 0x5b6   : > { %vm2732_vm9 = vcmp.eq.f32.partialorder %v2731_v38, 8.507059e+37  ;;  %v2734_v46 = vor.u32 1.1754944e-38, %v2733_v29 }
 0x5b7   : > { %v3973_v4 = vpop.eup %3972  ;;  %vm5490_vm11 = vcmp.eq.f32.partialorder %v2761_v40, 8.507059e+37  ;;  %v2764_v52 = vor.u32 1.1754944e-38, %v2763_v42 }
 0x5b8   : > { %v3975_v25 = vpop.eup %3974  ;;  %v5482_v30 = vadd.f32 1.0, %v3973_v4 }
 0x5b9   : > { %v5484_v31 = vadd.f32 1.0, %v3975_v25 }
 0x5ba   : > { %v3977_v32 = vpop.eup %3976  ;;  %3980 = vrcp.f32 %v5482_v30  ;;  %v2716_v57 = vand.u32 2147483647, %v5482_v30  ;;  %v2718_v12 = vand.u32 2147483648, %v5482_v30  ;;  %vm2712_vm1 = vweird.f32 %v5482_v30 }
 0x5bb   : > { %v3979_v33 = vpop.eup %3978  ;;  %v2723_v47 = vmul.f32 %v3977_v32, %v2704_v22  ;;  %3982 = vrcp.f32 %v5484_v31  ;;  %vm2728_vm5 = vweird.f32 %v3977_v32  ;;  %v2748_v62 = vand.u32 2147483648, %v5484_v31 }
 0x5bc   : > { %v2753_v35 = vmul.f32 %v3979_v33, %v2706_v24  ;;  %vm2758_vm8 = vweird.f32 %v3979_v33  ;;  %vm2729_vm10 = vmor %vm2727_vm6, %vm2728_vm5  ;;  %v2746_v7 = vand.u32 2147483647, %v5484_v31  ;;  %vm2742_vm15 = vweird.f32 %v5484_v31 }
 0x5bd   : > { %v2724_v28 = vsub.f32 1.0, %v2723_v47  ;;  %vm2759_vm12 = vmor %vm2757_vm7, %vm2758_vm8  ;;  %vm2717_vm2 = vcmp.eq.f32.partialorder %v2716_v57, 8.507059e+37  ;;  %v2749_v3 = vor.u32 1.1754944e-38, %v2748_v62 }
 0x5be   : > { %v2754_v39 = vsub.f32 1.0, %v2753_v35  ;;  %vm2747_vm4 = vcmp.eq.f32.partialorder %v2746_v7, 8.507059e+37 }
 0x5bf   : > { %v2725_v56 = vmul.f32 %v3977_v32, %v2724_v28 }
 0x5c0   : > { %v3981_v37 = vpop.eup %3980  ;;  %v2755_v44 = vmul.f32 %v3979_v33, %v2754_v39 }
 0x5c1   : > { %v3983_v18 = vpop.eup %3982  ;;  %v2726_v27 = vadd.f32 %v3977_v32, %v2725_v56  ;;  %v2708_v48 = vmul.f32 %v3981_v37, %v5482_v30  ;;  %vm2713_vm13 = vweird.f32 %v3981_v37 }
 0x5c2   : > { %v2756_v50 = vadd.f32 %v3979_v33, %v2755_v44  ;;  %v2738_v53 = vmul.f32 %v3983_v18, %v5484_v31  ;;  %vm2743_vm14 = vweird.f32 %v3983_v18  ;;  %vm2714_vm0 = vmor %vm2712_vm1, %vm2713_vm13 }
 0x5c3   : > { %v2730_v54 = vsel %vm2729_vm10, %v3977_v32, %v2726_v27  ;;  %v2709_v55 = vsub.f32 1.0, %v2708_v48  ;;  %vm2744_vm3 = vmor %vm2742_vm15, %vm2743_vm14 }
 0x5c4   : > { %v2735_v59 = vsel %vm2732_vm9, %v2734_v46, %v2730_v54  ;;  %v2760_v61 = vsel %vm2759_vm12, %v3979_v33, %v2756_v50  ;;  %v2739_v9 = vsub.f32 1.0, %v2738_v53 }
 0x5c5   : > { %v2768_v63 = vmul.f32 %v2735_v59, %v5463_v8  ;;  %v2710_v1 = vmul.f32 %v3981_v37, %v2709_v55  ;;  %v2765_v16 = vsel %vm5490_vm11, %v2764_v52, %v2760_v61  ;;  %v2719_v8 = vor.u32 1.1754944e-38, %v2718_v12 }
 0x5c6   : > { %v2770_v17 = vmul.f32 %v2765_v16, %v5465_v58  ;;  %v2740_v6 = vmul.f32 %v3983_v18, %v2739_v9 }
 0x5c7   : > { %v2854_v41 = vadd.f32 %v2849_v43, %v2768_v63  ;;  %v2711_v10 = vadd.f32 %v3981_v37, %v2710_v1 }
 0x5c8   : > { %v2856_v2 = vadd.f32 %v2851_v5, %v2770_v17  ;;  %v2741_v36 = vadd.f32 %v3983_v18, %v2740_v6 }
 0x5c9   : > { %2858 = vst [vmem:[%s747_s8 + $0x8] sm:$0xff] %v2854_v41  ;;  %v2715_v58 = vsel %vm2714_vm0, %v3981_v37, %v2711_v10 }
 0x5ca   : > { %v2720_v15 = vsel %vm2717_vm2, %v2719_v8, %v2715_v58  ;;  %2860 = vst [vmem:[%s747_s8 + $0x18] sm:$0xff] %v2856_v2  ;;  %v2745_v45 = vsel %vm2744_vm3, %v3983_v18, %v2741_v36 }
 0x5cb   : > { %v2767_v49 = vmul.f32 %v2720_v15, %v5471_v19  ;;  %v2750_v14 = vsel %vm2747_vm4, %v2749_v3, %v2745_v45 }
 0x5cc   : > { %v2769_v22 = vmul.f32 %v2750_v14, %v5473_v20 }
 0x5cd   : > { %v2853_v24 = vadd.f32 %v2835_v21, %v2767_v49 }
 0x5ce   : > { %v2855_v4 = vadd.f32 %v2837_v23, %v2769_v22 }
 0x5cf   : > { %2857 = vst [vmem:[%s747_s8] sm:$0xff] %v2853_v24 }
 0x5d0   : > { %2859 = vst [vmem:[%s747_s8 + $0x10] sm:$0xff] %v2855_v4 }
 0x5d1   : > { %4410 = shalt.err (!%p4407_p8)
}
 0x5d2   : > { %s4492_s6 = smov 256   ;;  %s4493_s26 = smov 16  }
 0x5d3   : > { %3828 = dma.vmem_to_hbm [thread:$0]  (%p4694_p0), %s2875_s22, 512, %s2877_s13, %s2862_s12, %s4492_s6, %s4492_s6, %s4493_s26  }
 0x5d4 PF: > { %s2891_s1 = sand.u32 1, %s4461_s24   ;;  %p5640_p10 = scmp.ge.s32.totalorder %s4473_s27, 2 }
 0x5d5   : > { %s2892_s20 = scalar_lea.sflag [#allocation4], %s2891_s1 }
 0x5d6   : > { %p3866_p11 = pnand %p5640_p10, %p4702_p6 }
 0x5d8   : > { %p3867_p12 = pneg %p3866_p11 }
 0x5da   : > { %4456 = dma.done.wait (%p3867_p12), %s2892_s20, 512  }
 0x5db   : > { %4458 = vsyncadd (%p3867_p12), %s2892_s20, 4294966784  ;;  %s5641_s18 = sld [smem:[#allocation29_spill]]  ;;  %p37_p2 = scmp.ge.s32.totalorder %s4670_s28, 4  }
 0x5dc   : > { %s5642_s26 = sld [smem:[#allocation30_spill]]  ;;  %s5643_s24 = smov %s4465_s25 }
 0x5dd   : > { %s5645_s27 = smov %s4670_s28  ;;  %39 = sbr.rel (!%p37_p2) target bundleno = 28 (0x1c), region = 182 }
 0x5e1   : > { %s5644_s25 = smov %s5641_s18 }
 0x5e2   :  { %2898 = vsyncpa [#allocation3], 1 }
 0x5e3   :  { %2900 = vsyncpa [#allocation3 + $0x1], 1 }
 0x5e4   :  { %2901 = vsyncpa [#allocation6], 1 }
 0x5e5   :  { %2903 = vsyncpa [#allocation6 + $0x1], 1 }
 0x5e6   :  { %2904 = vsyncpa [#allocation9], 1 }
 0x5e7   :  { %2905 = vsyncpa [#allocation12], 1 }
 0x5e8   :  { %2906 = vsyncpa [#allocation15], 1 }
 0x5e9   :  { %2907 = vsyncpa [#allocation18], 1 }
 0x5ea   :  { %2908 = vsyncpa [#allocation4], 1 }
 0x5eb   :  { %2910 = vsyncpa [#allocation4 + $0x1], 1 }

</bundles_post_ra>
